<compile_context>
chip_gen: v5e
topology: v5e:2x2
jax: 0.10.0
libtpu: 0.0.40
codegen_flags: <defaults>
</compile_context>

<pallas_src>
import functools
import math

import jax
import jax.numpy as jnp
from jax import lax
from jax.experimental import pallas as pl
from jax.experimental.pallas import tpu as pltpu

EPS = 1e-5
SQRT2 = math.sqrt(2.0)


# ---------------------------------------------------------------------------
# Fused kernel.
#   grid = (L // TL,)  ("arbitrary"): each step consumes one (B*N, TL, H) chunk
#   of the encoder hidden states (LayerNorm over H + partial sum over TL into a
#   VMEM scratch accumulator).  On the last step the RGCN layers and the head
#   run on the batch-folded (B*N, H) activation, which never leaves VMEM.
# ---------------------------------------------------------------------------
def _rgcn_fused_kernel(hs_ref, lg_ref, adj_ref,
                       enc_g_ref, enc_b_ref,
                       pwc_ref, pwl_ref, pb_ref, lng_ref, lnb_ref, wrel_ref,
                       hwT_ref, hb_ref,
                       out_ref, xsum_ref,
                       *, num_layers, relation_num, hidden_dim, batch, nodes, seq_len):
    H = hidden_dim
    R = relation_num
    BN = batch * nodes
    lstep = pl.program_id(0)

    @pl.when(lstep == 0)
    def _():
        xsum_ref[...] = jnp.zeros_like(xsum_ref)

    # ---- embed, streamed over L: single-pass LayerNorm over H, partial sum over TL ----
    hs = hs_ref[...].astype(jnp.float32)                       # (BN, TL, H)
    m1 = jnp.mean(hs, axis=-1, keepdims=True)
    m2 = jnp.mean(hs * hs, axis=-1, keepdims=True)
    var = jnp.maximum(m2 - m1 * m1, 0.0)
    hn = (hs - m1) * lax.rsqrt(var + EPS) * enc_g_ref[...] + enc_b_ref[...]
    xsum_ref[...] += jnp.sum(hn, axis=1)                       # (BN, H) f32

    # ---- last step: all RGCN layers + head on the batch-folded activation ----
    @pl.when(lstep == pl.num_programs(0) - 1)
    def _():
        x = xsum_ref[...] * (1.0 / seq_len)                    # (BN, H) f32 mean over L

        lg = lg_ref[...]                                       # (BN, 2) f32
        # hoisted loop-invariant broadcasts (JAX does not CSE broadcast_in_dim)
        lg0 = jnp.broadcast_to(lg[:, 0:1], (BN, H))
        lg1 = jnp.broadcast_to(lg[:, 1:2], (BN, H))

        # one-hot relation masks: computed once, reused by every layer
        adj = adj_ref[...].astype(jnp.int32)                   # (B, N, N)
        masks = [(adj == r).astype(jnp.bfloat16) for r in range(1, R)]

        for li in range(num_layers):
            # proj: column part on the MXU (bf16 in / f32 acc, B*N rows folded);
            # 2-wide logits part as VPU broadcast-FMAs.
            y = jnp.dot(x.astype(jnp.bfloat16), pwc_ref[li],
                        preferred_element_type=jnp.float32)    # (BN, H)
            wl = pwl_ref[li]                                   # (2, H) f32
            y = y + lg0 * wl[0:1, :] + lg1 * wl[1:2, :] + pb_ref[li]

            # single-pass LayerNorm(H)
            m1_ = jnp.mean(y, axis=-1, keepdims=True)
            m2_ = jnp.mean(y * y, axis=-1, keepdims=True)
            var_ = jnp.maximum(m2_ - m1_ * m1_, 0.0)
            y = (y - m1_) * lax.rsqrt(var_ + EPS) * lng_ref[li] + lnb_ref[li]

            # exact (erf) GELU -- PyTorch nn.GELU default.
            y = 0.5 * y * (1.0 + lax.erf(y * (1.0 / SQRT2)))
            # TODO(synk): dropout is identity (inference semantics).

            # all relation weights in one lane-dense matmul: (BN, H) @ (H, R*H)
            Y = jnp.dot(y.astype(jnp.bfloat16), wrel_ref[li],
                        preferred_element_type=jnp.float32)    # (BN, R*H)
            Y3 = Y.reshape(batch, nodes, R * H)
            acc = Y3[:, :, 0:H]                                # relation 0: identity support
            for r in range(1, R):
                acc = acc + jnp.einsum(
                    "bnm,bmh->bnh", masks[r - 1],
                    Y3[:, :, r * H:(r + 1) * H].astype(jnp.bfloat16),
                    preferred_element_type=jnp.float32)
            x = acc.reshape(BN, H)                             # (BN, H) f32

        # ---- head: Linear(H, 2) as two VPU broadcast-mul + lane-sums, then log-softmax ----
        hb = hb_ref[...]                                       # (1, 2)
        c0 = jnp.sum(x * hwT_ref[0:1, :], axis=-1, keepdims=True) + hb[0:1, 0:1]
        c1 = jnp.sum(x * hwT_ref[1:2, :], axis=-1, keepdims=True) + hb[0:1, 1:2]
        m = jnp.maximum(c0, c1)
        lse = jnp.log(jnp.exp(c0 - m) + jnp.exp(c1 - m)) + m
        out_ref[:, 0:1] = c0 - lse
        out_ref[:, 1:2] = c1 - lse


def rgcn_forward(hidden_states, logits, adj, params, *, l_chunk=None):
    """hidden_states (B,N,L,H) [bf16 ok], logits (B,N,2) f32, adj (B,N,N) int."""
    B, N, L, H = hidden_states.shape
    layers = params["layers"]
    NL = len(layers)
    R = layers[0]["V"].shape[0]
    BN = B * N

    TL = L if l_chunk is None else l_chunk
    if TL != L:
        # streamed chunk must respect the bf16 sublane tile on the second-minor dim
        assert L % TL == 0 and TL % 16 == 0
    num_chunks = L // TL

    # batch-folded views (row axis = B*N for all weight-shared matmuls)
    hs = hidden_states.reshape(BN, L, H).astype(jnp.bfloat16)
    lg = logits.reshape(BN, 2).astype(jnp.float32)
    adj8 = adj.astype(jnp.int8)                                  # 4x less HBM/VMEM than int32

    # Stack per-layer weights; pre-cast MXU operands to bf16 (f32 accumulation in-kernel).
    pwc = jnp.stack([lp["pw_col"] for lp in layers]).astype(jnp.bfloat16)    # (NL, H, H)
    pwl = jnp.stack([lp["pw_log"] for lp in layers]).astype(jnp.float32)     # (NL, 2, H)
    pb = jnp.stack([lp["pb"] for lp in layers]).astype(jnp.float32)          # (NL, 1, H)
    lng = jnp.stack([lp["ln_g"] for lp in layers]).astype(jnp.float32)       # (NL, 1, H)
    lnb = jnp.stack([lp["ln_b"] for lp in layers]).astype(jnp.float32)       # (NL, 1, H)
    # wrel[:, :, r*H:(r+1)*H] == permute(V @ W)[r]; keep R*H lane-dense (multiple of 128).
    wrel = jnp.stack([
        jnp.einsum("rk,hkd->hrd", lp["V"], lp["W"]).reshape(H, R * H)
        for lp in layers
    ]).astype(jnp.bfloat16)                                                  # (NL, H, R*H)
    hwT = params["head_w"].T.astype(jnp.float32)                             # (2, H)
    hb = params["head_b"].astype(jnp.float32)                                # (1, 2)

    kernel = functools.partial(_rgcn_fused_kernel,
                               num_layers=NL, relation_num=R, hidden_dim=H,
                               batch=B, nodes=N, seq_len=L)

    out_flat = pl.pallas_call(
        kernel,
        out_shape=jax.ShapeDtypeStruct((BN, 2), jnp.float32),
        grid_spec=pltpu.PrefetchScalarGridSpec(
            num_scalar_prefetch=0,
            grid=(num_chunks,),                                  # streams L; gives the pipeline steps
            in_specs=[
                pl.BlockSpec((BN, TL, H), lambda l: (0, l, 0)),  # hidden_states chunk (bf16)
                pl.BlockSpec((BN, 2), lambda l: (0, 0)),         # logits (resident, fetched once)
                pl.BlockSpec((B, N, N), lambda l: (0, 0, 0)),    # adj int8 (resident)
                pl.BlockSpec((1, H), lambda l: (0, 0)),          # enc LN gamma
                pl.BlockSpec((1, H), lambda l: (0, 0)),          # enc LN beta
                pl.BlockSpec((NL, H, H), lambda l: (0, 0, 0)),   # proj W (columns part)
                pl.BlockSpec((NL, 2, H), lambda l: (0, 0, 0)),   # proj W (logits part)
                pl.BlockSpec((NL, 1, H), lambda l: (0, 0, 0)),   # proj bias
                pl.BlockSpec((NL, 1, H), lambda l: (0, 0, 0)),   # layer LN gamma
                pl.BlockSpec((NL, 1, H), lambda l: (0, 0, 0)),   # layer LN beta
                pl.BlockSpec((NL, H, R * H), lambda l: (0, 0, 0)),  # flattened relation weights
                pl.BlockSpec((2, H), lambda l: (0, 0)),          # head W^T
                pl.BlockSpec((1, 2), lambda l: (0, 0)),          # head b
            ],
            out_specs=pl.BlockSpec((BN, 2), lambda l: (0, 0)),
            scratch_shapes=[pltpu.VMEM((BN, H), jnp.float32)],   # running sum over L
        ),
        compiler_params=pltpu.CompilerParams(
            dimension_semantics=("arbitrary",),                  # L is a reduction axis
            vmem_limit_bytes=32 * 1024 * 1024),
    )(hs, lg, adj8,
      params["enc_ln_g"], params["enc_ln_b"],
      pwc, pwl, pb, lng, lnb, wrel, hwT, hb)

    return out_flat.reshape(B, N, 2)


# ---------------------------------------------------------------------------
# Pure-JAX reference.  mm_dtype=float32 -> original module (f32) semantics;
# mm_dtype=bfloat16 -> same bf16-input / f32-accumulate matmuls as the kernel.
# ---------------------------------------------------------------------------
def rgcn_reference(hidden_states, logits, adj, params, mm_dtype=jnp.float32):
    f32 = jnp.float32
    h = hidden_states.astype(f32)
    mu = jnp.mean(h, -1, keepdims=True)
    var = jnp.mean((h - mu) ** 2, -1, keepdims=True)
    hn = (h - mu) * lax.rsqrt(var + EPS) * params["enc_ln_g"][0] + params["enc_ln_b"][0]
    x = jnp.mean(hn, axis=2)                                 # (B, N, H)
    R = params["layers"][0]["V"].shape[0]
    H = x.shape[-1]
    for lp in params["layers"]:
        y = jnp.einsum("bnh,hd->bnd", x.astype(mm_dtype), lp["pw_col"].astype(mm_dtype),
                       preferred_element_type=f32)
        y = y + logits[..., 0:1] * lp["pw_log"][0:1, :] + logits[..., 1:2] * lp["pw_log"][1:2, :]
        y = y + lp["pb"][0]
        mu = jnp.mean(y, -1, keepdims=True)
        var = jnp.mean((y - mu) ** 2, -1, keepdims=True)
        y = (y - mu) * lax.rsqrt(var + EPS) * lp["ln_g"][0] + lp["ln_b"][0]
        y = 0.5 * y * (1.0 + lax.erf(y / SQRT2))
        wrel_flat = jnp.einsum("rk,hkd->hrd", lp["V"], lp["W"]).reshape(H, R * H)
        Y = jnp.einsum("bnh,hm->bnm", y.astype(mm_dtype), wrel_flat.astype(mm_dtype),
                       preferred_element_type=f32)           # (B, N, R*H)
        acc = Y[..., 0:H]
        for r in range(1, R):
            a = (adj == r).astype(mm_dtype)
            yr = Y[..., r * H:(r + 1) * H].astype(mm_dtype)
            acc = acc + jnp.einsum("bnm,bmh->bnh", a, yr, preferred_element_type=f32)
        x = acc
    logits_out = jnp.einsum("bnh,hd->bnd", x, params["head_w"],
                            preferred_element_type=f32) + params["head_b"][0]
    return jax.nn.log_softmax(logits_out, axis=-1)


if __name__ == "__main__":
    B, N, L, H, R, NUM_LAYERS = 2, 8, 32, 32, 4, 2

    key = jax.random.PRNGKey(0)
    ks = jax.random.split(key, 16)

    # Synthetic encoder outputs (stand-in for the HuggingFace encoder).
    hidden_states = jax.random.normal(ks[0], (B, N, L, H), jnp.float32).astype(jnp.bfloat16)
    logits = jax.random.normal(ks[1], (B, N, 2), jnp.float32)
    adj = jax.random.randint(ks[2], (B, N, N), 0, R, jnp.int32)

    def xavier(k, shape, fan_in, fan_out):
        std = math.sqrt(2.0 / (fan_in + fan_out))
        return std * jax.random.normal(k, shape, jnp.float32)

    layers = []
    for li in range(NUM_LAYERS):
        lk = jax.random.split(ks[3 + li], 4)
        pw = 0.05 * jax.random.normal(lk[0], (H + 2, H), jnp.float32)   # Linear(2+H, H)^T
        layers.append(dict(
            pw_col=pw[:H],                                              # (H, H)
            pw_log=pw[H:],                                              # (2, H)
            pb=0.05 * jax.random.normal(lk[1], (1, H), jnp.float32),
            ln_g=jnp.ones((1, H), jnp.float32),
            ln_b=jnp.zeros((1, H), jnp.float32),
            W=xavier(lk[2], (H, 3, H), 3 * H, 3 * H),                   # (H, 3, H)
            V=xavier(lk[3], (R, 3), 3, R),                              # (R, 3)
        ))

    params = dict(
        enc_ln_g=jnp.ones((1, H), jnp.float32),
        enc_ln_b=jnp.zeros((1, H), jnp.float32),
        layers=layers,
        head_w=0.05 * jax.random.normal(ks[10], (H, 2), jnp.float32),
        head_b=0.05 * jax.random.normal(ks[11], (1, 2), jnp.float32),
    )

    out = jax.block_until_ready(
        rgcn_forward(hidden_states, logits, adj, params, l_chunk=16))   # 2 streamed L-chunks
    ref_bf16 = jax.block_until_ready(
        rgcn_reference(hidden_states, logits, adj, params, mm_dtype=jnp.bfloat16))
    ref_f32 = jax.block_until_ready(
        rgcn_reference(hidden_states, logits, adj, params, mm_dtype=jnp.float32))

    assert out.shape == (B, N, 2)
    # Tight check: kernel vs a reference using the same bf16-in / f32-accumulate matmuls.
    assert jnp.max(jnp.abs(out - ref_bf16)) < 2e-2, "mismatch vs bf16-matched reference"
    # Loose check: kernel vs pure-f32 module semantics (bounds the bf16 MXU drift).
    assert jnp.max(jnp.abs(out - ref_f32)) < 1e-1, "mismatch vs f32 reference"
    print("KERNEL_OK")
</pallas_src>

<mosaic_0001>
module attributes {stable_mosaic.version = 11 : i64} {
  func.func @_rgcn_fused_kernel(%arg0: i32, %arg1: memref<16x16x32xbf16, #tpu.memory_space<vmem>>, %arg2: memref<16x2xf32, #tpu.memory_space<vmem>>, %arg3: memref<2x8x8xi8, #tpu.memory_space<vmem>>, %arg4: memref<1x32xf32, #tpu.memory_space<vmem>>, %arg5: memref<1x32xf32, #tpu.memory_space<vmem>>, %arg6: memref<2x32x32xbf16, #tpu.memory_space<vmem>>, %arg7: memref<2x2x32xf32, #tpu.memory_space<vmem>>, %arg8: memref<2x1x32xf32, #tpu.memory_space<vmem>>, %arg9: memref<2x1x32xf32, #tpu.memory_space<vmem>>, %arg10: memref<2x1x32xf32, #tpu.memory_space<vmem>>, %arg11: memref<2x32x128xbf16, #tpu.memory_space<vmem>>, %arg12: memref<2x32xf32, #tpu.memory_space<vmem>>, %arg13: memref<1x2xf32, #tpu.memory_space<vmem>>, %arg14: memref<16x2xf32, #tpu.memory_space<vmem>>, %arg15: memref<16x32xf32, #tpu.memory_space<vmem>>) attributes {dimension_semantics = [#tpu.dimension_semantics<arbitrary>], iteration_bounds = array<i64: 2>, scalar_prefetch = 0 : i64, scratch_operands = 1 : i64, tpu.core_type = #tpu.core_type<tc>, window_params = [{transform_indices = @transform_0, window_bounds = array<i64: 16, 16, 32>}, {pipeline_mode = #tpu.pipeline_mode<synchronous>, transform_indices = @transform_1, window_bounds = array<i64: 16, 2>}, {pipeline_mode = #tpu.pipeline_mode<synchronous>, transform_indices = @transform_2, window_bounds = array<i64: 2, 8, 8>}, {pipeline_mode = #tpu.pipeline_mode<synchronous>, transform_indices = @transform_3, window_bounds = array<i64: 1, 32>}, {pipeline_mode = #tpu.pipeline_mode<synchronous>, transform_indices = @transform_4, window_bounds = array<i64: 1, 32>}, {pipeline_mode = #tpu.pipeline_mode<synchronous>, transform_indices = @transform_5, window_bounds = array<i64: 2, 32, 32>}, {pipeline_mode = #tpu.pipeline_mode<synchronous>, transform_indices = @transform_6, window_bounds = array<i64: 2, 2, 32>}, {pipeline_mode = #tpu.pipeline_mode<synchronous>, transform_indices = @transform_7, window_bounds = array<i64: 2, 1, 32>}, {pipeline_mode = #tpu.pipeline_mode<synchronous>, transform_indices = @transform_8, window_bounds = array<i64: 2, 1, 32>}, {pipeline_mode = #tpu.pipeline_mode<synchronous>, transform_indices = @transform_9, window_bounds = array<i64: 2, 1, 32>}, {pipeline_mode = #tpu.pipeline_mode<synchronous>, transform_indices = @transform_10, window_bounds = array<i64: 2, 32, 128>}, {pipeline_mode = #tpu.pipeline_mode<synchronous>, transform_indices = @transform_11, window_bounds = array<i64: 2, 32>}, {pipeline_mode = #tpu.pipeline_mode<synchronous>, transform_indices = @transform_12, window_bounds = array<i64: 1, 2>}, {pipeline_mode = #tpu.pipeline_mode<synchronous>, transform_indices = @transform_13, window_bounds = array<i64: 16, 2>}]} {
    %c0_i32 = arith.constant 0 : i32
    %0 = arith.cmpi eq, %arg0, %c0_i32 : i32
    %1 = arith.extui %0 : i1 to i32
    %c0_i32_0 = arith.constant 0 : i32
    %2 = arith.cmpi ne, %1, %c0_i32_0 : i32
    scf.if %2 {
      %cst_18 = arith.constant 0.000000e+00 : f32
      %40 = vector.broadcast %cst_18 : f32 to vector<16x32xf32>
      %c0_19 = arith.constant 0 : index
      %c0_20 = arith.constant 0 : index
      %41 = vector.load %arg15[%c0_19, %c0_20] : memref<16x32xf32, #tpu.memory_space<vmem>>, vector<16x32xf32>
      tpu.vector_store %arg15[%c0_19, %c0_20], %40 {strides = array<i32>} : memref<16x32xf32, #tpu.memory_space<vmem>>, vector<16x32xf32>,
    } else {
    }
    %c0 = arith.constant 0 : index
    %c0_1 = arith.constant 0 : index
    %c0_2 = arith.constant 0 : index
    %3 = vector.load %arg1[%c0, %c0_1, %c0_2] : memref<16x16x32xbf16, #tpu.memory_space<vmem>>, vector<16x16x32xbf16>
    %4 = arith.extf %3 : vector<16x16x32xbf16> to vector<16x16x32xf32>
    %cst = arith.constant dense<0.000000e+00> : vector<16x16xf32>
    %5 = vector.multi_reduction <add>, %4, %cst [2] : vector<16x16x32xf32> to vector<16x16xf32>
    %6 = vector.shape_cast %5 : vector<16x16xf32> to vector<16x16x1xf32>
    %cst_3 = arith.constant 3.200000e+01 : f32
    %7 = vector.broadcast %cst_3 : f32 to vector<16x16x1xf32>
    %8 = arith.divf %6, %7 : vector<16x16x1xf32>
    %9 = arith.mulf %4, %4 : vector<16x16x32xf32>
    %cst_4 = arith.constant dense<0.000000e+00> : vector<16x16xf32>
    %10 = vector.multi_reduction <add>, %9, %cst_4 [2] : vector<16x16x32xf32> to vector<16x16xf32>
    %11 = vector.shape_cast %10 : vector<16x16xf32> to vector<16x16x1xf32>
    %cst_5 = arith.constant 3.200000e+01 : f32
    %12 = vector.broadcast %cst_5 : f32 to vector<16x16x1xf32>
    %13 = arith.divf %11, %12 : vector<16x16x1xf32>
    %14 = arith.mulf %8, %8 : vector<16x16x1xf32>
    %15 = arith.subf %13, %14 : vector<16x16x1xf32>
    %cst_6 = arith.constant 0.000000e+00 : f32
    %16 = vector.broadcast %cst_6 : f32 to vector<16x16x1xf32>
    %17 = arith.maximumf %15, %16 : vector<16x16x1xf32>
    %18 = vector.broadcast %8 : vector<16x16x1xf32> to vector<16x16x32xf32>
    %19 = arith.subf %4, %18 : vector<16x16x32xf32>
    %cst_7 = arith.constant 9.99999974E-6 : f32
    %20 = vector.broadcast %cst_7 : f32 to vector<16x16x1xf32>
    %21 = arith.addf %17, %20 : vector<16x16x1xf32>
    %22 = math.rsqrt %21 : vector<16x16x1xf32>
    %23 = vector.broadcast %22 : vector<16x16x1xf32> to vector<16x16x32xf32>
    %24 = arith.mulf %19, %23 : vector<16x16x32xf32>
    %c0_8 = arith.constant 0 : index
    %c0_9 = arith.constant 0 : index
    %25 = vector.load %arg4[%c0_8, %c0_9] : memref<1x32xf32, #tpu.memory_space<vmem>>, vector<1x32xf32>
    %26 = vector.shape_cast %25 : vector<1x32xf32> to vector<1x1x32xf32>
    %27 = vector.broadcast %26 : vector<1x1x32xf32> to vector<16x16x32xf32>
    %28 = arith.mulf %24, %27 : vector<16x16x32xf32>
    %c0_10 = arith.constant 0 : index
    %c0_11 = arith.constant 0 : index
    %29 = vector.load %arg5[%c0_10, %c0_11] : memref<1x32xf32, #tpu.memory_space<vmem>>, vector<1x32xf32>
    %30 = vector.shape_cast %29 : vector<1x32xf32> to vector<1x1x32xf32>
    %31 = vector.broadcast %30 : vector<1x1x32xf32> to vector<16x16x32xf32>
    %32 = arith.addf %28, %31 : vector<16x16x32xf32>
    %c0_12 = arith.constant 0 : index
    %c0_13 = arith.constant 0 : index
    %33 = vector.load %arg15[%c0_12, %c0_13] : memref<16x32xf32, #tpu.memory_space<vmem>>, vector<16x32xf32>
    %cst_14 = arith.constant dense<0.000000e+00> : vector<16x32xf32>
    %34 = vector.multi_reduction <add>, %32, %cst_14 [1] : vector<16x16x32xf32> to vector<16x32xf32>
    %35 = arith.addf %33, %34 : vector<16x32xf32>
    %c0_15 = arith.constant 0 : index
    %c0_16 = arith.constant 0 : index
    %36 = vector.load %arg15[%c0_15, %c0_16] : memref<16x32xf32, #tpu.memory_space<vmem>>, vector<16x32xf32>
    tpu.vector_store %arg15[%c0_15, %c0_16], %35 {strides = array<i32>} : memref<16x32xf32, #tpu.memory_space<vmem>>, vector<16x32xf32>,
    %c1_i32 = arith.constant 1 : i32
    %37 = arith.cmpi eq, %arg0, %c1_i32 : i32
    %38 = arith.extui %37 : i1 to i32
    %c0_i32_17 = arith.constant 0 : i32
    %39 = arith.cmpi ne, %38, %c0_i32_17 : i32
    scf.if %39 {
      %c0_18 = arith.constant 0 : index
      %c0_19 = arith.constant 0 : index
      %40 = vector.load %arg15[%c0_18, %c0_19] : memref<16x32xf32, #tpu.memory_space<vmem>>, vector<16x32xf32>
      %cst_20 = arith.constant 3.125000e-02 : f32
      %41 = vector.broadcast %cst_20 : f32 to vector<16x32xf32>
      %42 = arith.mulf %40, %41 : vector<16x32xf32>
      %c0_21 = arith.constant 0 : index
      %c0_22 = arith.constant 0 : index
      %43 = vector.load %arg2[%c0_21, %c0_22] : memref<16x2xf32, #tpu.memory_space<vmem>>, vector<16x2xf32>
      %44 = vector.extract_strided_slice %43 {offsets = [0, 0], sizes = [16, 1], strides = [1, 1]} : vector<16x2xf32> to vector<16x1xf32>
      %45 = vector.shape_cast %44 : vector<16x1xf32> to vector<16x1xf32>
      %46 = vector.broadcast %45 : vector<16x1xf32> to vector<16x32xf32>
      %47 = vector.extract_strided_slice %43 {offsets = [0, 1], sizes = [16, 1], strides = [1, 1]} : vector<16x2xf32> to vector<16x1xf32>
      %48 = vector.shape_cast %47 : vector<16x1xf32> to vector<16x1xf32>
      %49 = vector.broadcast %48 : vector<16x1xf32> to vector<16x32xf32>
      %c0_23 = arith.constant 0 : index
      %c0_24 = arith.constant 0 : index
      %c0_25 = arith.constant 0 : index
      %50 = vector.load %arg3[%c0_23, %c0_24, %c0_25] : memref<2x8x8xi8, #tpu.memory_space<vmem>>, vector<2x8x8xi8>
      %51 = arith.extsi %50 : vector<2x8x8xi8> to vector<2x8x8xi32>
      %c1_i32_26 = arith.constant 1 : i32
      %52 = vector.broadcast %c1_i32_26 : i32 to vector<2x8x8xi32>
      %53 = arith.cmpi eq, %51, %52 : vector<2x8x8xi32>
      %54 = arith.extui %53 : vector<2x8x8xi1> to vector<2x8x8xi32>
      %55 = arith.sitofp %54 : vector<2x8x8xi32> to vector<2x8x8xf32>
      %56 = arith.truncf %55 : vector<2x8x8xf32> to vector<2x8x8xbf16>
      %c2_i32 = arith.constant 2 : i32
      %57 = vector.broadcast %c2_i32 : i32 to vector<2x8x8xi32>
      %58 = arith.cmpi eq, %51, %57 : vector<2x8x8xi32>
      %59 = arith.extui %58 : vector<2x8x8xi1> to vector<2x8x8xi32>
      %60 = arith.sitofp %59 : vector<2x8x8xi32> to vector<2x8x8xf32>
      %61 = arith.truncf %60 : vector<2x8x8xf32> to vector<2x8x8xbf16>
      %c3_i32 = arith.constant 3 : i32
      %62 = vector.broadcast %c3_i32 : i32 to vector<2x8x8xi32>
      %63 = arith.cmpi eq, %51, %62 : vector<2x8x8xi32>
      %64 = arith.extui %63 : vector<2x8x8xi1> to vector<2x8x8xi32>
      %65 = arith.sitofp %64 : vector<2x8x8xi32> to vector<2x8x8xf32>
      %66 = arith.truncf %65 : vector<2x8x8xf32> to vector<2x8x8xbf16>
      %67 = arith.truncf %42 : vector<16x32xf32> to vector<16x32xbf16>
      %c0_27 = arith.constant 0 : index
      %c0_28 = arith.constant 0 : index
      %c0_29 = arith.constant 0 : index
      %68 = vector.load %arg6[%c0_27, %c0_28, %c0_29] : memref<2x32x32xbf16, #tpu.memory_space<vmem>>, vector<1x32x32xbf16>
      %69 = vector.shape_cast %68 : vector<1x32x32xbf16> to vector<32x32xbf16>
      %cst_30 = arith.constant dense<0.000000e+00> : vector<16x32xf32>
      %70 = tpu.matmul %67, %69, %cst_30 {dimension_numbers = #tpu.dot_dimension_numbers<[1], [0], [0], [1], [0, 0, 1, 1], [], []>} : vector<16x32xbf16>, vector<32x32xbf16>, vector<16x32xf32> -> vector<16x32xf32>
      %c0_31 = arith.constant 0 : index
      %c0_32 = arith.constant 0 : index
      %c0_33 = arith.constant 0 : index
      %71 = vector.load %arg7[%c0_31, %c0_32, %c0_33] : memref<2x2x32xf32, #tpu.memory_space<vmem>>, vector<1x2x32xf32>
      %72 = vector.shape_cast %71 : vector<1x2x32xf32> to vector<2x32xf32>
      %73 = vector.extract_strided_slice %72 {offsets = [0, 0], sizes = [1, 32], strides = [1, 1]} : vector<2x32xf32> to vector<1x32xf32>
      %74 = vector.broadcast %73 : vector<1x32xf32> to vector<16x32xf32>
      %75 = arith.mulf %46, %74 : vector<16x32xf32>
      %76 = arith.addf %70, %75 : vector<16x32xf32>
      %77 = vector.extract_strided_slice %72 {offsets = [1, 0], sizes = [1, 32], strides = [1, 1]} : vector<2x32xf32> to vector<1x32xf32>
      %78 = vector.broadcast %77 : vector<1x32xf32> to vector<16x32xf32>
      %79 = arith.mulf %49, %78 : vector<16x32xf32>
      %80 = arith.addf %76, %79 : vector<16x32xf32>
      %c0_34 = arith.constant 0 : index
      %c0_35 = arith.constant 0 : index
      %c0_36 = arith.constant 0 : index
      %81 = vector.load %arg8[%c0_34, %c0_35, %c0_36] : memref<2x1x32xf32, #tpu.memory_space<vmem>>, vector<1x1x32xf32>
      %82 = vector.shape_cast %81 : vector<1x1x32xf32> to vector<1x32xf32>
      %83 = vector.broadcast %82 : vector<1x32xf32> to vector<16x32xf32>
      %84 = arith.addf %80, %83 : vector<16x32xf32>
      %cst_37 = arith.constant dense<0.000000e+00> : vector<16xf32>
      %85 = vector.multi_reduction <add>, %84, %cst_37 [1] : vector<16x32xf32> to vector<16xf32>
      %86 = vector.shape_cast %85 : vector<16xf32> to vector<16x1xf32>
      %cst_38 = arith.constant 3.200000e+01 : f32
      %87 = vector.broadcast %cst_38 : f32 to vector<16x1xf32>
      %88 = arith.divf %86, %87 : vector<16x1xf32>
      %89 = arith.mulf %84, %84 : vector<16x32xf32>
      %cst_39 = arith.constant dense<0.000000e+00> : vector<16xf32>
      %90 = vector.multi_reduction <add>, %89, %cst_39 [1] : vector<16x32xf32> to vector<16xf32>
      %91 = vector.shape_cast %90 : vector<16xf32> to vector<16x1xf32>
      %cst_40 = arith.constant 3.200000e+01 : f32
      %92 = vector.broadcast %cst_40 : f32 to vector<16x1xf32>
      %93 = arith.divf %91, %92 : vector<16x1xf32>
      %94 = arith.mulf %88, %88 : vector<16x1xf32>
      %95 = arith.subf %93, %94 : vector<16x1xf32>
      %cst_41 = arith.constant 0.000000e+00 : f32
      %96 = vector.broadcast %cst_41 : f32 to vector<16x1xf32>
      %97 = arith.maximumf %95, %96 : vector<16x1xf32>
      %98 = vector.broadcast %88 : vector<16x1xf32> to vector<16x32xf32>
      %99 = arith.subf %84, %98 : vector<16x32xf32>
      %cst_42 = arith.constant 9.99999974E-6 : f32
      %100 = vector.broadcast %cst_42 : f32 to vector<16x1xf32>
      %101 = arith.addf %97, %100 : vector<16x1xf32>
      %102 = math.rsqrt %101 : vector<16x1xf32>
      %103 = vector.broadcast %102 : vector<16x1xf32> to vector<16x32xf32>
      %104 = arith.mulf %99, %103 : vector<16x32xf32>
      %c0_43 = arith.constant 0 : index
      %c0_44 = arith.constant 0 : index
      %c0_45 = arith.constant 0 : index
      %105 = vector.load %arg9[%c0_43, %c0_44, %c0_45] : memref<2x1x32xf32, #tpu.memory_space<vmem>>, vector<1x1x32xf32>
      %106 = vector.shape_cast %105 : vector<1x1x32xf32> to vector<1x32xf32>
      %107 = vector.broadcast %106 : vector<1x32xf32> to vector<16x32xf32>
      %108 = arith.mulf %104, %107 : vector<16x32xf32>
      %c0_46 = arith.constant 0 : index
      %c0_47 = arith.constant 0 : index
      %c0_48 = arith.constant 0 : index
      %109 = vector.load %arg10[%c0_46, %c0_47, %c0_48] : memref<2x1x32xf32, #tpu.memory_space<vmem>>, vector<1x1x32xf32>
      %110 = vector.shape_cast %109 : vector<1x1x32xf32> to vector<1x32xf32>
      %111 = vector.broadcast %110 : vector<1x32xf32> to vector<16x32xf32>
      %112 = arith.addf %108, %111 : vector<16x32xf32>
      %cst_49 = arith.constant 5.000000e-01 : f32
      %113 = vector.broadcast %cst_49 : f32 to vector<16x32xf32>
      %114 = arith.mulf %113, %112 : vector<16x32xf32>
      %cst_50 = arith.constant 0.707106769 : f32
      %115 = vector.broadcast %cst_50 : f32 to vector<16x32xf32>
      %116 = arith.mulf %112, %115 : vector<16x32xf32>
      %117 = math.erf %116 : vector<16x32xf32>
      %cst_51 = arith.constant 1.000000e+00 : f32
      %118 = vector.broadcast %cst_51 : f32 to vector<16x32xf32>
      %119 = arith.addf %118, %117 : vector<16x32xf32>
      %120 = arith.mulf %114, %119 : vector<16x32xf32>
      %121 = arith.truncf %120 : vector<16x32xf32> to vector<16x32xbf16>
      %c0_52 = arith.constant 0 : index
      %c0_53 = arith.constant 0 : index
      %c0_54 = arith.constant 0 : index
      %122 = vector.load %arg11[%c0_52, %c0_53, %c0_54] : memref<2x32x128xbf16, #tpu.memory_space<vmem>>, vector<1x32x128xbf16>
      %123 = vector.shape_cast %122 : vector<1x32x128xbf16> to vector<32x128xbf16>
      %cst_55 = arith.constant dense<0.000000e+00> : vector<16x128xf32>
      %124 = tpu.matmul %121, %123, %cst_55 {dimension_numbers = #tpu.dot_dimension_numbers<[1], [0], [0], [1], [0, 0, 1, 1], [], []>} : vector<16x32xbf16>, vector<32x128xbf16>, vector<16x128xf32> -> vector<16x128xf32>
      %125 = vector.shape_cast %124 : vector<16x128xf32> to vector<2x8x128xf32>
      %126 = vector.extract_strided_slice %125 {offsets = [0, 0, 0], sizes = [2, 8, 32], strides = [1, 1, 1]} : vector<2x8x128xf32> to vector<2x8x32xf32>
      %127 = vector.extract_strided_slice %125 {offsets = [0, 0, 32], sizes = [2, 8, 32], strides = [1, 1, 1]} : vector<2x8x128xf32> to vector<2x8x32xf32>
      %128 = arith.truncf %127 : vector<2x8x32xf32> to vector<2x8x32xbf16>
      "tpu.trace_start"() <{level = 10 : i32, message = "bnm,bmh->bnh"}> : () -> ()
      %cst_56 = arith.constant dense<0.000000e+00> : vector<2x8x32xf32>
      %129 = tpu.matmul %56, %128, %cst_56 {dimension_numbers = #tpu.dot_dimension_numbers<[2], [1], [1], [2], [0, 0, 0, 1, 1, 2], [0], [0]>} : vector<2x8x8xbf16>, vector<2x8x32xbf16>, vector<2x8x32xf32> -> vector<2x8x32xf32>
      "tpu.trace_stop"() : () -> ()
      %130 = arith.addf %126, %129 : vector<2x8x32xf32>
      %131 = vector.extract_strided_slice %125 {offsets = [0, 0, 64], sizes = [2, 8, 32], strides = [1, 1, 1]} : vector<2x8x128xf32> to vector<2x8x32xf32>
      %132 = arith.truncf %131 : vector<2x8x32xf32> to vector<2x8x32xbf16>
      "tpu.trace_start"() <{level = 10 : i32, message = "bnm,bmh->bnh"}> : () -> ()
      %cst_57 = arith.constant dense<0.000000e+00> : vector<2x8x32xf32>
      %133 = tpu.matmul %61, %132, %cst_57 {dimension_numbers = #tpu.dot_dimension_numbers<[2], [1], [1], [2], [0, 0, 0, 1, 1, 2], [0], [0]>} : vector<2x8x8xbf16>, vector<2x8x32xbf16>, vector<2x8x32xf32> -> vector<2x8x32xf32>
      "tpu.trace_stop"() : () -> ()
      %134 = arith.addf %130, %133 : vector<2x8x32xf32>
      %135 = vector.extract_strided_slice %125 {offsets = [0, 0, 96], sizes = [2, 8, 32], strides = [1, 1, 1]} : vector<2x8x128xf32> to vector<2x8x32xf32>
      %136 = arith.truncf %135 : vector<2x8x32xf32> to vector<2x8x32xbf16>
      "tpu.trace_start"() <{level = 10 : i32, message = "bnm,bmh->bnh"}> : () -> ()
      %cst_58 = arith.constant dense<0.000000e+00> : vector<2x8x32xf32>
      %137 = tpu.matmul %66, %136, %cst_58 {dimension_numbers = #tpu.dot_dimension_numbers<[2], [1], [1], [2], [0, 0, 0, 1, 1, 2], [0], [0]>} : vector<2x8x8xbf16>, vector<2x8x32xbf16>, vector<2x8x32xf32> -> vector<2x8x32xf32>
      "tpu.trace_stop"() : () -> ()
      %138 = arith.addf %134, %137 : vector<2x8x32xf32>
      %139 = vector.shape_cast %138 : vector<2x8x32xf32> to vector<16x32xf32>
      %140 = arith.truncf %139 : vector<16x32xf32> to vector<16x32xbf16>
      %c1 = arith.constant 1 : index
      %c0_59 = arith.constant 0 : index
      %c0_60 = arith.constant 0 : index
      %141 = vector.load %arg6[%c1, %c0_59, %c0_60] : memref<2x32x32xbf16, #tpu.memory_space<vmem>>, vector<1x32x32xbf16>
      %142 = vector.shape_cast %141 : vector<1x32x32xbf16> to vector<32x32xbf16>
      %cst_61 = arith.constant dense<0.000000e+00> : vector<16x32xf32>
      %143 = tpu.matmul %140, %142, %cst_61 {dimension_numbers = #tpu.dot_dimension_numbers<[1], [0], [0], [1], [0, 0, 1, 1], [], []>} : vector<16x32xbf16>, vector<32x32xbf16>, vector<16x32xf32> -> vector<16x32xf32>
      %c1_62 = arith.constant 1 : index
      %c0_63 = arith.constant 0 : index
      %c0_64 = arith.constant 0 : index
      %144 = vector.load %arg7[%c1_62, %c0_63, %c0_64] : memref<2x2x32xf32, #tpu.memory_space<vmem>>, vector<1x2x32xf32>
      %145 = vector.shape_cast %144 : vector<1x2x32xf32> to vector<2x32xf32>
      %146 = vector.extract_strided_slice %145 {offsets = [0, 0], sizes = [1, 32], strides = [1, 1]} : vector<2x32xf32> to vector<1x32xf32>
      %147 = vector.broadcast %146 : vector<1x32xf32> to vector<16x32xf32>
      %148 = arith.mulf %46, %147 : vector<16x32xf32>
      %149 = arith.addf %143, %148 : vector<16x32xf32>
      %150 = vector.extract_strided_slice %145 {offsets = [1, 0], sizes = [1, 32], strides = [1, 1]} : vector<2x32xf32> to vector<1x32xf32>
      %151 = vector.broadcast %150 : vector<1x32xf32> to vector<16x32xf32>
      %152 = arith.mulf %49, %151 : vector<16x32xf32>
      %153 = arith.addf %149, %152 : vector<16x32xf32>
      %c1_65 = arith.constant 1 : index
      %c0_66 = arith.constant 0 : index
      %c0_67 = arith.constant 0 : index
      %154 = vector.load %arg8[%c1_65, %c0_66, %c0_67] : memref<2x1x32xf32, #tpu.memory_space<vmem>>, vector<1x1x32xf32>
      %155 = vector.shape_cast %154 : vector<1x1x32xf32> to vector<1x32xf32>
      %156 = vector.broadcast %155 : vector<1x32xf32> to vector<16x32xf32>
      %157 = arith.addf %153, %156 : vector<16x32xf32>
      %cst_68 = arith.constant dense<0.000000e+00> : vector<16xf32>
      %158 = vector.multi_reduction <add>, %157, %cst_68 [1] : vector<16x32xf32> to vector<16xf32>
      %159 = vector.shape_cast %158 : vector<16xf32> to vector<16x1xf32>
      %cst_69 = arith.constant 3.200000e+01 : f32
      %160 = vector.broadcast %cst_69 : f32 to vector<16x1xf32>
      %161 = arith.divf %159, %160 : vector<16x1xf32>
      %162 = arith.mulf %157, %157 : vector<16x32xf32>
      %cst_70 = arith.constant dense<0.000000e+00> : vector<16xf32>
      %163 = vector.multi_reduction <add>, %162, %cst_70 [1] : vector<16x32xf32> to vector<16xf32>
      %164 = vector.shape_cast %163 : vector<16xf32> to vector<16x1xf32>
      %cst_71 = arith.constant 3.200000e+01 : f32
      %165 = vector.broadcast %cst_71 : f32 to vector<16x1xf32>
      %166 = arith.divf %164, %165 : vector<16x1xf32>
      %167 = arith.mulf %161, %161 : vector<16x1xf32>
      %168 = arith.subf %166, %167 : vector<16x1xf32>
      %cst_72 = arith.constant 0.000000e+00 : f32
      %169 = vector.broadcast %cst_72 : f32 to vector<16x1xf32>
      %170 = arith.maximumf %168, %169 : vector<16x1xf32>
      %171 = vector.broadcast %161 : vector<16x1xf32> to vector<16x32xf32>
      %172 = arith.subf %157, %171 : vector<16x32xf32>
      %cst_73 = arith.constant 9.99999974E-6 : f32
      %173 = vector.broadcast %cst_73 : f32 to vector<16x1xf32>
      %174 = arith.addf %170, %173 : vector<16x1xf32>
      %175 = math.rsqrt %174 : vector<16x1xf32>
      %176 = vector.broadcast %175 : vector<16x1xf32> to vector<16x32xf32>
      %177 = arith.mulf %172, %176 : vector<16x32xf32>
      %c1_74 = arith.constant 1 : index
      %c0_75 = arith.constant 0 : index
      %c0_76 = arith.constant 0 : index
      %178 = vector.load %arg9[%c1_74, %c0_75, %c0_76] : memref<2x1x32xf32, #tpu.memory_space<vmem>>, vector<1x1x32xf32>
      %179 = vector.shape_cast %178 : vector<1x1x32xf32> to vector<1x32xf32>
      %180 = vector.broadcast %179 : vector<1x32xf32> to vector<16x32xf32>
      %181 = arith.mulf %177, %180 : vector<16x32xf32>
      %c1_77 = arith.constant 1 : index
      %c0_78 = arith.constant 0 : index
      %c0_79 = arith.constant 0 : index
      %182 = vector.load %arg10[%c1_77, %c0_78, %c0_79] : memref<2x1x32xf32, #tpu.memory_space<vmem>>, vector<1x1x32xf32>
      %183 = vector.shape_cast %182 : vector<1x1x32xf32> to vector<1x32xf32>
      %184 = vector.broadcast %183 : vector<1x32xf32> to vector<16x32xf32>
      %185 = arith.addf %181, %184 : vector<16x32xf32>
      %cst_80 = arith.constant 5.000000e-01 : f32
      %186 = vector.broadcast %cst_80 : f32 to vector<16x32xf32>
      %187 = arith.mulf %186, %185 : vector<16x32xf32>
      %cst_81 = arith.constant 0.707106769 : f32
      %188 = vector.broadcast %cst_81 : f32 to vector<16x32xf32>
      %189 = arith.mulf %185, %188 : vector<16x32xf32>
      %190 = math.erf %189 : vector<16x32xf32>
      %cst_82 = arith.constant 1.000000e+00 : f32
      %191 = vector.broadcast %cst_82 : f32 to vector<16x32xf32>
      %192 = arith.addf %191, %190 : vector<16x32xf32>
      %193 = arith.mulf %187, %192 : vector<16x32xf32>
      %194 = arith.truncf %193 : vector<16x32xf32> to vector<16x32xbf16>
      %c1_83 = arith.constant 1 : index
      %c0_84 = arith.constant 0 : index
      %c0_85 = arith.constant 0 : index
      %195 = vector.load %arg11[%c1_83, %c0_84, %c0_85] : memref<2x32x128xbf16, #tpu.memory_space<vmem>>, vector<1x32x128xbf16>
      %196 = vector.shape_cast %195 : vector<1x32x128xbf16> to vector<32x128xbf16>
      %cst_86 = arith.constant dense<0.000000e+00> : vector<16x128xf32>
      %197 = tpu.matmul %194, %196, %cst_86 {dimension_numbers = #tpu.dot_dimension_numbers<[1], [0], [0], [1], [0, 0, 1, 1], [], []>} : vector<16x32xbf16>, vector<32x128xbf16>, vector<16x128xf32> -> vector<16x128xf32>
      %198 = vector.shape_cast %197 : vector<16x128xf32> to vector<2x8x128xf32>
      %199 = vector.extract_strided_slice %198 {offsets = [0, 0, 0], sizes = [2, 8, 32], strides = [1, 1, 1]} : vector<2x8x128xf32> to vector<2x8x32xf32>
      %200 = vector.extract_strided_slice %198 {offsets = [0, 0, 32], sizes = [2, 8, 32], strides = [1, 1, 1]} : vector<2x8x128xf32> to vector<2x8x32xf32>
      %201 = arith.truncf %200 : vector<2x8x32xf32> to vector<2x8x32xbf16>
      "tpu.trace_start"() <{level = 10 : i32, message = "bnm,bmh->bnh"}> : () -> ()
      %cst_87 = arith.constant dense<0.000000e+00> : vector<2x8x32xf32>
      %202 = tpu.matmul %56, %201, %cst_87 {dimension_numbers = #tpu.dot_dimension_numbers<[2], [1], [1], [2], [0, 0, 0, 1, 1, 2], [0], [0]>} : vector<2x8x8xbf16>, vector<2x8x32xbf16>, vector<2x8x32xf32> -> vector<2x8x32xf32>
      "tpu.trace_stop"() : () -> ()
      %203 = arith.addf %199, %202 : vector<2x8x32xf32>
      %204 = vector.extract_strided_slice %198 {offsets = [0, 0, 64], sizes = [2, 8, 32], strides = [1, 1, 1]} : vector<2x8x128xf32> to vector<2x8x32xf32>
      %205 = arith.truncf %204 : vector<2x8x32xf32> to vector<2x8x32xbf16>
      "tpu.trace_start"() <{level = 10 : i32, message = "bnm,bmh->bnh"}> : () -> ()
      %cst_88 = arith.constant dense<0.000000e+00> : vector<2x8x32xf32>
      %206 = tpu.matmul %61, %205, %cst_88 {dimension_numbers = #tpu.dot_dimension_numbers<[2], [1], [1], [2], [0, 0, 0, 1, 1, 2], [0], [0]>} : vector<2x8x8xbf16>, vector<2x8x32xbf16>, vector<2x8x32xf32> -> vector<2x8x32xf32>
      "tpu.trace_stop"() : () -> ()
      %207 = arith.addf %203, %206 : vector<2x8x32xf32>
      %208 = vector.extract_strided_slice %198 {offsets = [0, 0, 96], sizes = [2, 8, 32], strides = [1, 1, 1]} : vector<2x8x128xf32> to vector<2x8x32xf32>
      %209 = arith.truncf %208 : vector<2x8x32xf32> to vector<2x8x32xbf16>
      "tpu.trace_start"() <{level = 10 : i32, message = "bnm,bmh->bnh"}> : () -> ()
      %cst_89 = arith.constant dense<0.000000e+00> : vector<2x8x32xf32>
      %210 = tpu.matmul %66, %209, %cst_89 {dimension_numbers = #tpu.dot_dimension_numbers<[2], [1], [1], [2], [0, 0, 0, 1, 1, 2], [0], [0]>} : vector<2x8x8xbf16>, vector<2x8x32xbf16>, vector<2x8x32xf32> -> vector<2x8x32xf32>
      "tpu.trace_stop"() : () -> ()
      %211 = arith.addf %207, %210 : vector<2x8x32xf32>
      %212 = vector.shape_cast %211 : vector<2x8x32xf32> to vector<16x32xf32>
      %c0_90 = arith.constant 0 : index
      %c0_91 = arith.constant 0 : index
      %213 = vector.load %arg13[%c0_90, %c0_91] : memref<1x2xf32, #tpu.memory_space<vmem>>, vector<1x2xf32>
      %c0_92 = arith.constant 0 : index
      %c0_93 = arith.constant 0 : index
      %214 = vector.load %arg12[%c0_92, %c0_93] : memref<2x32xf32, #tpu.memory_space<vmem>>, vector<1x32xf32>
      %215 = vector.broadcast %214 : vector<1x32xf32> to vector<16x32xf32>
      %216 = arith.mulf %212, %215 : vector<16x32xf32>
      %cst_94 = arith.constant dense<0.000000e+00> : vector<16xf32>
      %217 = vector.multi_reduction <add>, %216, %cst_94 [1] : vector<16x32xf32> to vector<16xf32>
      %218 = vector.shape_cast %217 : vector<16xf32> to vector<16x1xf32>
      %219 = vector.extract_strided_slice %213 {offsets = [0, 0], sizes = [1, 1], strides = [1, 1]} : vector<1x2xf32> to vector<1x1xf32>
      %220 = vector.broadcast %219 : vector<1x1xf32> to vector<16x1xf32>
      %221 = arith.addf %218, %220 : vector<16x1xf32>
      %c1_95 = arith.constant 1 : index
      %c0_96 = arith.constant 0 : index
      %222 = vector.load %arg12[%c1_95, %c0_96] : memref<2x32xf32, #tpu.memory_space<vmem>>, vector<1x32xf32>
      %223 = vector.broadcast %222 : vector<1x32xf32> to vector<16x32xf32>
      %224 = arith.mulf %212, %223 : vector<16x32xf32>
      %cst_97 = arith.constant dense<0.000000e+00> : vector<16xf32>
      %225 = vector.multi_reduction <add>, %224, %cst_97 [1] : vector<16x32xf32> to vector<16xf32>
      %226 = vector.shape_cast %225 : vector<16xf32> to vector<16x1xf32>
      %227 = vector.extract_strided_slice %213 {offsets = [0, 1], sizes = [1, 1], strides = [1, 1]} : vector<1x2xf32> to vector<1x1xf32>
      %228 = vector.broadcast %227 : vector<1x1xf32> to vector<16x1xf32>
      %229 = arith.addf %226, %228 : vector<16x1xf32>
      %230 = arith.maximumf %221, %229 : vector<16x1xf32>
      %231 = arith.subf %221, %230 : vector<16x1xf32>
      %232 = math.exp %231 : vector<16x1xf32>
      %233 = arith.subf %229, %230 : vector<16x1xf32>
      %234 = math.exp %233 : vector<16x1xf32>
      %235 = arith.addf %232, %234 : vector<16x1xf32>
      %236 = math.log %235 : vector<16x1xf32>
      %237 = arith.addf %236, %230 : vector<16x1xf32>
      %238 = arith.subf %221, %237 : vector<16x1xf32>
      %c0_98 = arith.constant 0 : index
      %c0_99 = arith.constant 0 : index
      %239 = vector.load %arg14[%c0_98, %c0_99] : memref<16x2xf32, #tpu.memory_space<vmem>>, vector<16x1xf32>
      tpu.vector_store %arg14[%c0_98, %c0_99], %238 {strides = array<i32>} : memref<16x2xf32, #tpu.memory_space<vmem>>, vector<16x1xf32>,
      %240 = arith.subf %229, %237 : vector<16x1xf32>
      %c0_100 = arith.constant 0 : index
      %c1_101 = arith.constant 1 : index
      %241 = vector.load %arg14[%c0_100, %c1_101] : memref<16x2xf32, #tpu.memory_space<vmem>>, vector<16x1xf32>
      tpu.vector_store %arg14[%c0_100, %c1_101], %240 {strides = array<i32>} : memref<16x2xf32, #tpu.memory_space<vmem>>, vector<16x1xf32>,
    } else {
    }
    return
  }
  func.func @transform_0(%arg0: i32) -> (i32, i32, i32) {
    %c0_i32 = arith.constant 0 : i32
    %c0_i32_0 = arith.constant 0 : i32
    %c0_i32_1 = arith.constant 0 : i32
    return %c0_i32, %arg0, %c0_i32_0 : i32, i32, i32
  }
  func.func @transform_1(%arg0: i32) -> (i32, i32) {
    %c0_i32 = arith.constant 0 : i32
    %c0_i32_0 = arith.constant 0 : i32
    %c0_i32_1 = arith.constant 0 : i32
    return %c0_i32, %c0_i32_0 : i32, i32
  }
  func.func @transform_2(%arg0: i32) -> (i32, i32, i32) {
    %c0_i32 = arith.constant 0 : i32
    %c0_i32_0 = arith.constant 0 : i32
    %c0_i32_1 = arith.constant 0 : i32
    %c0_i32_2 = arith.constant 0 : i32
    return %c0_i32, %c0_i32_0, %c0_i32_1 : i32, i32, i32
  }
  func.func @transform_3(%arg0: i32) -> (i32, i32) {
    %c0_i32 = arith.constant 0 : i32
    %c0_i32_0 = arith.constant 0 : i32
    %c0_i32_1 = arith.constant 0 : i32
    return %c0_i32, %c0_i32_0 : i32, i32
  }
  func.func @transform_4(%arg0: i32) -> (i32, i32) {
    %c0_i32 = arith.constant 0 : i32
    %c0_i32_0 = arith.constant 0 : i32
    %c0_i32_1 = arith.constant 0 : i32
    return %c0_i32, %c0_i32_0 : i32, i32
  }
  func.func @transform_5(%arg0: i32) -> (i32, i32, i32) {
    %c0_i32 = arith.constant 0 : i32
    %c0_i32_0 = arith.constant 0 : i32
    %c0_i32_1 = arith.constant 0 : i32
    %c0_i32_2 = arith.constant 0 : i32
    return %c0_i32, %c0_i32_0, %c0_i32_1 : i32, i32, i32
  }
  func.func @transform_6(%arg0: i32) -> (i32, i32, i32) {
    %c0_i32 = arith.constant 0 : i32
    %c0_i32_0 = arith.constant 0 : i32
    %c0_i32_1 = arith.constant 0 : i32
    %c0_i32_2 = arith.constant 0 : i32
    return %c0_i32, %c0_i32_0, %c0_i32_1 : i32, i32, i32
  }
  func.func @transform_7(%arg0: i32) -> (i32, i32, i32) {
    %c0_i32 = arith.constant 0 : i32
    %c0_i32_0 = arith.constant 0 : i32
    %c0_i32_1 = arith.constant 0 : i32
    %c0_i32_2 = arith.constant 0 : i32
    return %c0_i32, %c0_i32_0, %c0_i32_1 : i32, i32, i32
  }
  func.func @transform_8(%arg0: i32) -> (i32, i32, i32) {
    %c0_i32 = arith.constant 0 : i32
    %c0_i32_0 = arith.constant 0 : i32
    %c0_i32_1 = arith.constant 0 : i32
    %c0_i32_2 = arith.constant 0 : i32
    return %c0_i32, %c0_i32_0, %c0_i32_1 : i32, i32, i32
  }
  func.func @transform_9(%arg0: i32) -> (i32, i32, i32) {
    %c0_i32 = arith.constant 0 : i32
    %c0_i32_0 = arith.constant 0 : i32
    %c0_i32_1 = arith.constant 0 : i32
    %c0_i32_2 = arith.constant 0 : i32
    return %c0_i32, %c0_i32_0, %c0_i32_1 : i32, i32, i32
  }
  func.func @transform_10(%arg0: i32) -> (i32, i32, i32) {
    %c0_i32 = arith.constant 0 : i32
    %c0_i32_0 = arith.constant 0 : i32
    %c0_i32_1 = arith.constant 0 : i32
    %c0_i32_2 = arith.constant 0 : i32
    return %c0_i32, %c0_i32_0, %c0_i32_1 : i32, i32, i32
  }
  func.func @transform_11(%arg0: i32) -> (i32, i32) {
    %c0_i32 = arith.constant 0 : i32
    %c0_i32_0 = arith.constant 0 : i32
    %c0_i32_1 = arith.constant 0 : i32
    return %c0_i32, %c0_i32_0 : i32, i32
  }
  func.func @transform_12(%arg0: i32) -> (i32, i32) {
    %c0_i32 = arith.constant 0 : i32
    %c0_i32_0 = arith.constant 0 : i32
    %c0_i32_1 = arith.constant 0 : i32
    return %c0_i32, %c0_i32_0 : i32, i32
  }
  func.func @transform_13(%arg0: i32) -> (i32, i32) {
    %c0_i32 = arith.constant 0 : i32
    %c0_i32_0 = arith.constant 0 : i32
    %c0_i32_1 = arith.constant 0 : i32
    return %c0_i32, %c0_i32_0 : i32, i32
  }
}

</mosaic_0001>

<bundles_post_ra>
// kernel: tpu_custom_call.1
= control target key start
LH: loop header
LB: loop body
LE: loop exit
PB: predicated region body
PF: predicated region fallthrough
CT: control target
= control target key end

     0   :  { %s4693_s0 = inlined_call_operand.hbm [shape: bf16[16,32,32], index: 0, kind: input, shape index: {}]   ;;  %s4694_s1 = inlined_call_operand.vmem [shape: f32[16,2], index: 1, kind: input, shape index: {}]   ;;  %s4695_s2 = inlined_call_operand.vmem [shape: s8[2,8,8], index: 2, kind: input, shape index: {}]   ;;  %s4696_s3 = inlined_call_operand.vmem [shape: f32[1,32], index: 3, kind: input, shape index: {}]   ;;  %s4697_s4 = inlined_call_operand.vmem [shape: f32[1,32], index: 4, kind: input, shape index: {}]   ;;  %s4698_s5 = inlined_call_operand.hbm [shape: bf16[2,32,32], index: 5, kind: input, shape index: {}]   ;;  %s4699_s6 = inlined_call_operand.vmem [shape: f32[2,2,32], index: 6, kind: input, shape index: {}]   ;;  %s4700_s7 = inlined_call_operand.vmem [shape: f32[2,1,32], index: 7, kind: input, shape index: {}]   ;;  %s4701_s8 = inlined_call_operand.vmem [shape: f32[2,1,32], index: 8, kind: input, shape index: {}]   ;;  %s4702_s9 = inlined_call_operand.vmem [shape: f32[2,1,32], index: 9, kind: input, shape index: {}]   ;;  %s4703_s10 = inlined_call_operand.hbm [shape: bf16[2,32,128], index: 10, kind: input, shape index: {}]   ;;  %s4704_s11 = inlined_call_operand.vmem [shape: f32[2,32], index: 11, kind: input, shape index: {}]   ;;  %s4705_s12 = inlined_call_operand.vmem [shape: f32[1,2], index: 12, kind: input, shape index: {}]   ;;  %s4706_s13 = inlined_call_operand.vmem [shape: f32[16,2], index: 13, kind: output, shape index: {}]  }
   0x1   :  { %4749 = sst [smem:[#allocation62_spill]] %s4698_s5 }
   0x2   :  { %4750 = sst [smem:[#allocation63_spill]] %s4706_s13 }
   0x3   :  { %18 = vsyncpa [#allocation4], 0 }
   0x4   :  { %20 = vsyncpa [#allocation4 + $0x1], 0 }
   0x5   :  { %21 = vsyncpa [#allocation6], 0  ;;  %s3142_s25 = smov 0   ;;  %s3144_s26 = smov 0  }
   0x6   :  { %s3146_s27 = smov 0   ;;  %s3148_s28 = smov 0  }
   0x7 LB: > { %s3161_s29 = sadd.s32 4294967295, %s3050_s28   ;;  %s3164_s30 = sadd.s32 1, %s3050_s28   ;;  %s3050_s28 = sphi %s3148_s28, %s4884_s28   ;;  %s3046_s27 = sphi %s3146_s27, %s4888_s27   ;;  %s3042_s26 = sphi %s3144_s26, %s4887_s26   ;;  %s3038_s25 = sphi %s3142_s25, %s4886_s25  }
   0x8   : > { %4751 = sst [smem:[#allocation13_spill]] %s3164_s30  ;;  %s31_s14 = ssub.s32 %s3050_s28, %s3164_s30 }
   0x9   : > { %s34_s15 = sadd.s32 1, %s3046_s27  ;;  %p32_p0 = scmp.eq.s32.totalorder %s31_s14, 0 }
   0xa   : > { %p41_p1 = scmp.ne.s32.totalorder %s3046_s27, %s3042_s26  ;;  %p42_p2 = scmp.eq.s32.totalorder %s3050_s28, 0 }
   0xb   : > { %p47_p3 = scmp.ne.s32.totalorder %s3042_s26, %s3038_s25  ;;  %p48_p5 = scmp.eq.s32.totalorder %s3161_s29, 0 }
   0xc   : > { %s3174_s16 = scalar_select %p32_p0, %s3046_s27, %s34_s15  }
   0xd   : > { %p3176_p4 = por %p42_p2, %p41_p1  ;;  %p2591_p6 = scmp.ge.s32.totalorder %s3050_s28, 1 }
   0xe   : > { %4752 = sst [smem:[#allocation14_spill]] %s3174_s16  ;;  %p331_p7 = scmp.lt.s32.totalorder %s3050_s28, 3 }
   0xf   : > { %p3185_p8 = por %p48_p5, %p47_p3  ;;  %p2592_p9 = scmp.ne.s32.totalorder %s3161_s29, 0 }
  0x10   : > { %p3190_p10 = pnand %p2591_p6, %p331_p7  ;;  %s4756_s5 = sld [smem:[#allocation62_spill]] }
  0x11   : > { %s3052_s23 = smov [#allocation5]   ;;  %s380_s15 = sshll.u32 %s4703_s10, 4  ;;  %s381_s15 = int_to_ptr.hbm [resolvable:$true] %s380_s15 }
  0x12   : > { %p2779_p11 = pneg %p3190_p10  ;;  %s356_s24 = sshll.u32 %s3052_s23, 4  ;;  %s357_s24 = int_to_ptr.vmem [resolvable:$true] %s356_s24 }
  0x13   : > { %s3053_s16 = smov 64   ;;  %s3054_s30 = smov 4  }
  0x14   : > { %p2780_p12 = pnand %p2779_p11, %p48_p5  ;;  %s3055_s13 = smov [#allocation7]  }
  0x15   : > { %s382_s20 = sshll.u32 %s3055_s13, 4  ;;  %p2594_p13 = scmp.ge.s32.totalorder %s3050_s28, 2  ;;  %s383_s20 = int_to_ptr.vmem [resolvable:$true] %s382_s20 }
  0x16   : > { %s354_s22 = sshll.u32 %s4756_s5, 4  ;;  %s355_s22 = int_to_ptr.hbm [resolvable:$true] %s354_s22 }
  0x17   : > { %2782 = dma.hbm_to_vmem [thread:$0]  (!%p2780_p12), %s355_s22, 512, %s357_s24, [#allocation6], %s3053_s16, %s3053_s16, %s3054_s30  }
  0x18   : > { %2785 = dma.hbm_to_vmem [thread:$0]  (!%p2780_p12), %s381_s15, 512, %s383_s20, [#allocation6], %s3053_s16, %s3053_s16, %s3054_s30  }
  0x19   : > { %398 = sbr.rel (%p2594_p13) target bundleno = 44 (0x2c), region = 64 }
  0x1e   : > { %s402_s21 = sand.u32 1, %s3046_s27   ;;  %s2670_s23 = sshll.u32 %s3050_s28, 3 }
  0x1f   : > { %s2595_s25 = sshll.u32 %s402_s21, 7  ;;  %s411_s22 = scalar_lea.hbm %s4693_s0, %s2670_s23 }
  0x20   : > { %s2766_s13 = scalar_select %p3176_p4, [#allocation0], [#allocation10] }
  0x21   : > { %s424_s30 = sshll.u32 %s411_s22, 4  ;;  %s406_s16 = scalar_lea.vmem [#allocation3], %s2595_s25  ;;  %s425_s30 = int_to_ptr.hbm [resolvable:$true] %s424_s30 }
  0x22   : > { %s426_s24 = sshll.u32 %s406_s16, 4  ;;  %s416_s15 = sld [smem:[%s2766_s13]]   ;;  %s427_s24 = int_to_ptr.vmem [resolvable:$true] %s426_s24 }
  0x23   : > { %s3056_s20 = smov 256   ;;  %s3057_s28 = smov 128  }
  0x24   : > { %2767 = sst [smem:[#allocation9]] (%p3176_p4), %s3056_s20  ;;  %s3058_s5 = smov 2  }
  0x25   : > { %2768 = sst [smem:[#allocation9 + $0x1]] (%p3176_p4), %s3057_s28  ;;  %s3059_s23 = smov 64  }
  0x26   : > { %2769 = sst [smem:[#allocation9 + $0x2]] (%p3176_p4), %s3058_s5  ;;  %s3060_s22 = smov 4  }
  0x27   : > { %2770 = sst [smem:[#allocation9 + $0x3]] (%p3176_p4), %s3059_s23  ;;  %s403_s13 = scalar_lea.sflag [#allocation4], %s402_s21 }
  0x28   : > { %s2598_s14 = sshll.u32 %s416_s15, 26  ;;  %2771 = sst [smem:[#allocation9 + $0x4]] (%p3176_p4), %s3059_s23 }
  0x29   : > { %s2599_s25 = sadd.s32 134217728, %s2598_s14  ;;  %2772 = sst [smem:[#allocation9 + $0x5]] (%p3176_p4), %s3060_s22 }
  0x2a   : > { %s3061_s16 = smov [#allocation8]  }
  0x2b   : > { %2773 = dma.general (%p3176_p4), %s425_s30, 2048, %s427_s24, %s403_s13, %s3061_s16, [#allocation9], %s2599_s25, 0  }
  0x2c PF: > { %451 = sbr.rel (%p3190_p10) target bundleno = 2580 (0xa14), region = 72 }
  0x31   : > { %s453_s20 = sand.u32 1, %s3042_s26  }
  0x32   : > { %s2601_s28 = sshll.u32 %s453_s20, 7  ;;  %s454_s5 = scalar_lea.sflag [#allocation4], %s453_s20 }
  0x33   : > { %s3229_s15 = scalar_lea.vmem [#allocation3], %s2601_s28 }
  0x34   : > { %3029 = dma.done.wait (%p3185_p8), %s454_s5, 2048  }
  0x35   : > { %3031 = vsyncadd (%p3185_p8), %s454_s5, 4294965248 }
  0x36   : > { %3033 = dma.done.wait (%p48_p5), [#allocation6], 1024  }
  0x37   : > { %3035 = vsyncadd (%p48_p5), [#allocation6], 4294966272  ;;  %511 = sbr.rel (%p2592_p9) target bundleno = 63 (0x3f), region = 88 }
  0x3c   : > { %vm512_vm0 = vcmask 261120   ;;  %v3062_v0 = vmov 0.0  }
  0x3d   : > { %513 = vst.msk [vmem:[#allocation2] sm:$0xff] %vm512_vm0, %v3062_v0 }
  0x3e   : > { %514 = vst.msk [vmem:[#allocation2 + $0x8] sm:$0xff] %vm512_vm0, %v3062_v0 }
  0x3f PF: > { %v2744_v1 = vld [vmem:[%s3229_s15 + $0x10] sm:$0xff]   ;;  %vm579_vm1 = vcmask 261120   ;;  %v2743_v2 = vld [vmem:[%s3229_s15 + $0x8] sm:$0xff]   ;;  %v2680_v3 = vld [vmem:[%s3229_s15] sm:$0xff]   ;;  %p2605_p0 = scmp.ne.s32.totalorder %s3161_s29, 1 }
  0x40   : > { %v3244_v4 = vunpack.c.l.bf16 %v2744_v1  ;;  %v3246_v5 = vunpack.c.l.bf16 %v2743_v2  ;;  %v3248_v6 = vunpack.c.l.bf16 %v2680_v3  ;;  %v3256_v10 = vunpack.c.h.bf16 %v2744_v1  ;;  %v2746_v16 = vld [vmem:[%s3229_s15 + $0x20] sm:$0xff]   ;;  %v2745_v17 = vld [vmem:[%s3229_s15 + $0x18] sm:$0xff]   ;;  %v2747_v24 = vld [vmem:[%s3229_s15 + $0x28] sm:$0xff]   ;;  %s3066_s21 = smov (!%p2605_p0), 32   ;;  %s3067_s30 = smov (!%p2605_p0), 96  }
  0x41   : > { %v3258_v11 = vunpack.c.h.bf16 %v2743_v2  ;;  %v3260_v12 = vunpack.c.h.bf16 %v2680_v3  ;;  %v3270_v18 = vunpack.c.l.bf16 %v2746_v16  ;;  %v3272_v19 = vunpack.c.h.bf16 %v2745_v17  ;;  %v2749_v31 = vld [vmem:[%s3229_s15 + $0x38] sm:$0xff]   ;;  %v2748_v32 = vld [vmem:[%s3229_s15 + $0x30] sm:$0xff]   ;;  %v2750_v39 = vld [vmem:[%s3229_s15 + $0x40] sm:$0xff]   ;;  %s3068_s24 = smov (!%p2605_p0), 64   ;;  %s3071_s23 = smov (!%p2605_p0), 1  }
  0x42   : > { %4757 = vst [vmem:[#allocation15_spill] sm:$0xff] %v3244_v4  ;;  %v592_v7 = vsel %vm579_vm1, %v3244_v4, 0.0  ;;  %v586_v8 = vsel %vm579_vm1, %v3246_v5, 0.0  ;;  %v580_v9 = vsel %vm579_vm1, %v3248_v6, 0.0  ;;  %v595_v13 = vsel %vm579_vm1, %v3256_v10, 0.0  ;;  %v2752_v46 = vld [vmem:[%s3229_s15 + $0x50] sm:$0xff]  }
  0x43   : > { %593 = vadd.xlane.f32.xlu2 %v592_v7  ;;  %587 = vadd.xlane.f32.xlu1 %v586_v8  ;;  %4758 = vst [vmem:[#allocation16_spill] sm:$0xff] %v3256_v10  ;;  %v589_v14 = vsel %vm579_vm1, %v3258_v11, 0.0  ;;  %v583_v15 = vsel %vm579_vm1, %v3260_v12, 0.0  ;;  %v3274_v20 = vunpack.c.l.bf16 %v2745_v17  ;;  %v604_v21 = vsel %vm579_vm1, %v3270_v18, 0.0  ;;  %v2751_v47 = vld [vmem:[%s3229_s15 + $0x48] sm:$0xff]   ;;  %v2753_v54 = vld [vmem:[%s3229_s15 + $0x58] sm:$0xff]  }
  0x44   : > { %581 = vadd.xlane.f32.xlu0 %v580_v9  ;;  %4759 = vst [vmem:[#allocation17_spill] sm:$0xff] %v3270_v18  ;;  %v601_v22 = vsel %vm579_vm1, %v3272_v19, 0.0  ;;  %v3283_v25 = vunpack.c.h.bf16 %v2747_v24  ;;  %v3285_v26 = vunpack.c.l.bf16 %v2747_v24  ;;  %v3287_v27 = vunpack.c.h.bf16 %v2746_v16  ;;  %v2755_v61 = vld [vmem:[%s3229_s15 + $0x68] sm:$0xff]   ;;  %v2754_v62 = vld [vmem:[%s3229_s15 + $0x60] sm:$0xff]   ;;  %v2756_v8 = vld [vmem:[%s3229_s15 + $0x70] sm:$0xff]   ;;  %s4883_s22 = sld [smem:[#allocation63_spill]] (!%p2605_p0) }
  0x45   : > { %4760 = vst [vmem:[#allocation18_spill] sm:$0xff] %v3272_v19  ;;  %v598_v23 = vsel %vm579_vm1, %v3274_v20, 0.0  ;;  %v3297_v33 = vunpack.c.l.bf16 %v2749_v31  ;;  %v3299_v34 = vunpack.c.h.bf16 %v2748_v32  ;;  %v3301_v35 = vunpack.c.l.bf16 %v2748_v32 }
  0x46   : > { %4761 = vst [vmem:[#allocation19_spill] sm:$0xff] %v3283_v25  ;;  %v613_v28 = vsel %vm579_vm1, %v3283_v25, 0.0  ;;  %v610_v29 = vsel %vm579_vm1, %v3285_v26, 0.0  ;;  %v607_v30 = vsel %vm579_vm1, %v3287_v27, 0.0  ;;  %v3310_v40 = vunpack.c.h.bf16 %v2750_v39 }
  0x47   : > { %4762 = vst [vmem:[#allocation20_spill] sm:$0xff] %v3285_v26  ;;  %v622_v36 = vsel %vm579_vm1, %v3297_v33, 0.0  ;;  %v619_v37 = vsel %vm579_vm1, %v3299_v34, 0.0  ;;  %v616_v38 = vsel %vm579_vm1, %v3301_v35, 0.0  ;;  %v3312_v41 = vunpack.c.l.bf16 %v2750_v39 }
  0x48   : > { %4763 = vst [vmem:[#allocation21_spill] sm:$0xff] %v3287_v27  ;;  %v3314_v42 = vunpack.c.h.bf16 %v2749_v31  ;;  %v631_v43 = vsel %vm579_vm1, %v3310_v40, 0.0  ;;  %v3324_v48 = vunpack.c.l.bf16 %v2752_v46  ;;  %v3326_v49 = vunpack.c.h.bf16 %v2751_v47 }
  0x49   : > { %4764 = vst [vmem:[#allocation22_spill] sm:$0xff] %v3297_v33  ;;  %v628_v44 = vsel %vm579_vm1, %v3312_v41, 0.0  ;;  %v3328_v50 = vunpack.c.l.bf16 %v2751_v47  ;;  %v3337_v55 = vunpack.c.h.bf16 %v2753_v54  ;;  %v3339_v56 = vunpack.c.l.bf16 %v2753_v54 }
  0x4a   : > { %4765 = vst [vmem:[#allocation23_spill] sm:$0xff] %v3299_v34  ;;  %v625_v45 = vsel %vm579_vm1, %v3314_v42, 0.0  ;;  %v640_v51 = vsel %vm579_vm1, %v3324_v48, 0.0  ;;  %v637_v52 = vsel %vm579_vm1, %v3326_v49, 0.0  ;;  %v3341_v57 = vunpack.c.h.bf16 %v2752_v46 }
  0x4b   : > { %596 = vadd.xlane.f32.xlu2 %v595_v13  ;;  %590 = vadd.xlane.f32.xlu1 %v589_v14  ;;  %4766 = vst [vmem:[#allocation24_spill] sm:$0xff] %v3301_v35  ;;  %v634_v53 = vsel %vm579_vm1, %v3328_v50, 0.0  ;;  %v649_v58 = vsel %vm579_vm1, %v3337_v55, 0.0  ;;  %v646_v59 = vsel %vm579_vm1, %v3339_v56, 0.0  ;;  %v3351_v63 = vunpack.c.l.bf16 %v2755_v61 }
  0x4c   : > { %584 = vadd.xlane.f32.xlu0 %v583_v15  ;;  %4767 = vst [vmem:[#allocation25_spill] sm:$0xff] %v3314_v42  ;;  %v643_v60 = vsel %vm579_vm1, %v3341_v57, 0.0  ;;  %v3353_v0 = vunpack.c.h.bf16 %v2754_v62  ;;  %v3355_v1 = vunpack.c.l.bf16 %v2754_v62  ;;  %v3364_v9 = vunpack.c.h.bf16 %v2756_v8 }
  0x4d   : > { %4768 = vst [vmem:[#allocation26_spill] sm:$0xff] %v3337_v55  ;;  %v658_v2 = vsel %vm579_vm1, %v3351_v63, 0.0  ;;  %v3366_v13 = vunpack.c.l.bf16 %v2756_v8  ;;  %v3368_v14 = vunpack.c.h.bf16 %v2755_v61  ;;  %v717_v31 = vmul.f32 %v3246_v5, %v3246_v5 }
  0x4e   : > { %4769 = vst [vmem:[#allocation27_spill] sm:$0xff] %v3351_v63  ;;  %v655_v3 = vsel %vm579_vm1, %v3353_v0, 0.0  ;;  %v652_v7 = vsel %vm579_vm1, %v3355_v1, 0.0  ;;  %v667_v15 = vsel %vm579_vm1, %v3364_v9, 0.0  ;;  %v718_v32 = vmul.f32 %v3258_v11, %v3258_v11 }
  0x4f   : > { %4770 = vst [vmem:[#allocation28_spill] sm:$0xff] %v3353_v0  ;;  %v664_v16 = vsel %vm579_vm1, %v3366_v13, 0.0  ;;  %v661_v17 = vsel %vm579_vm1, %v3368_v14, 0.0  ;;  %v734_v54 = vmul.f32 %v3326_v49, %v3326_v49  ;;  %v736_v61 = vmul.f32 %v3341_v57, %v3341_v57 }
  0x50   : > { %4771 = vst [vmem:[#allocation29_spill] sm:$0xff] %v3355_v1  ;;  %v721_v62 = vmul.f32 %v3274_v20, %v3274_v20 }
  0x51   : > { %4772 = vst [vmem:[#allocation30_spill] sm:$0xff] %v3364_v9 }
  0x52   : > { %4773 = vst [vmem:[#allocation31_spill] sm:$0xff] %v3366_v13 }
  0x53   : > { %605 = vadd.xlane.f32.xlu2 %v604_v21  ;;  %602 = vadd.xlane.f32.xlu1 %v601_v22  ;;  %4774 = vst [vmem:[#allocation32_spill] sm:$0xff] %v3368_v14  ;;  %v2757_v21 = vld [vmem:[%s3229_s15 + $0x78] sm:$0xff]  }
  0x54   : > { %599 = vadd.xlane.f32.xlu0 %v598_v23  ;;  %v3377_v22 = vunpack.c.h.bf16 %v2757_v21  ;;  %v715_v23 = vmul.f32 %v3248_v6, %v3248_v6  ;;  %v3381_v24 = vunpack.c.l.bf16 %v2757_v21 }
  0x56   : > { %4775 = vst [vmem:[#allocation33_spill] sm:$0xff] %v3377_v22 }
  0x57   : > { %4776 = vst [vmem:[#allocation34_spill] sm:$0xff] %v3381_v24 }
  0x5b   : > { %614 = vadd.xlane.f32.xlu2 %v613_v28  ;;  %611 = vadd.xlane.f32.xlu1 %v610_v29  ;;  %v673_v28 = vsel %vm579_vm1, %v3377_v22, 0.0  ;;  %v747_v29 = vsel %vm579_vm1, %v715_v23, 0.0 }
  0x5c   : > { %608 = vadd.xlane.f32.xlu0 %v607_v30  ;;  %v670_v30 = vsel %vm579_vm1, %v3381_v24, 0.0 }
  0x63   : > { %623 = vadd.xlane.f32.xlu2 %v622_v36  ;;  %620 = vadd.xlane.f32.xlu1 %v619_v37  ;;  %v716_v36 = vmul.f32 %v3260_v12, %v3260_v12  ;;  %v753_v37 = vsel %vm579_vm1, %v717_v31, 0.0 }
  0x64   : > { %617 = vadd.xlane.f32.xlu0 %v616_v38  ;;  %v756_v38 = vsel %vm579_vm1, %v718_v32, 0.0  ;;  %v724_v32 = vmul.f32 %v3287_v27, %v3287_v27 }
  0x65   : > { %v750_v39 = vsel %vm579_vm1, %v716_v36, 0.0  ;;  %v739_v36 = vmul.f32 %v3355_v1, %v3355_v1 }
  0x6b   : > { %632 = vadd.xlane.f32.xlu2 %v631_v43  ;;  %629 = vadd.xlane.f32.xlu1 %v628_v44  ;;  %v732_v43 = vmul.f32 %v3310_v40, %v3310_v40  ;;  %v733_v44 = vmul.f32 %v3328_v50, %v3328_v50 }
  0x6c   : > { %626 = vadd.xlane.f32.xlu0 %v625_v45  ;;  %v731_v45 = vmul.f32 %v3312_v41, %v3312_v41 }
  0x6d   : > { %v798_v46 = vsel %vm579_vm1, %v732_v43, 0.0  ;;  %v801_v47 = vsel %vm579_vm1, %v733_v44, 0.0  ;;  %v774_v44 = vsel %vm579_vm1, %v724_v32, 0.0  ;;  %v728_v32 = vmul.f32 %v3299_v34, %v3299_v34 }
  0x73   : > { %641 = vadd.xlane.f32.xlu2 %v640_v51  ;;  %638 = vadd.xlane.f32.xlu1 %v637_v52  ;;  %v795_v51 = vsel %vm579_vm1, %v731_v45, 0.0  ;;  %v719_v52 = vmul.f32 %v3244_v4, %v3244_v4  ;;  %v819_v45 = vsel %vm579_vm1, %v739_v36, 0.0 }
  0x74   : > { %635 = vadd.xlane.f32.xlu0 %v634_v53  ;;  %v720_v53 = vmul.f32 %v3256_v10, %v3256_v10 }
  0x7b   : > { %650 = vadd.xlane.f32.xlu2 %v649_v58  ;;  %647 = vadd.xlane.f32.xlu1 %v646_v59  ;;  %v759_v58 = vsel %vm579_vm1, %v719_v52, 0.0  ;;  %v762_v59 = vsel %vm579_vm1, %v720_v53, 0.0  ;;  %v740_v52 = vmul.f32 %v3353_v0, %v3353_v0 }
  0x7c   : > { %644 = vadd.xlane.f32.xlu0 %v643_v60  ;;  %v804_v60 = vsel %vm579_vm1, %v734_v54, 0.0 }
  0x83   : > { %659 = vadd.xlane.f32.xlu2 %v658_v2  ;;  %656 = vadd.xlane.f32.xlu1 %v655_v3  ;;  %v735_v2 = vmul.f32 %v3324_v48, %v3324_v48  ;;  %v810_v3 = vsel %vm579_vm1, %v736_v61, 0.0  ;;  %v822_v61 = vsel %vm579_vm1, %v740_v52, 0.0  ;;  %v745_v52 = vmul.f32 %v3381_v24, %v3381_v24 }
  0x84   : > { %653 = vadd.xlane.f32.xlu0 %v652_v7  ;;  %v765_v7 = vsel %vm579_vm1, %v721_v62, 0.0  ;;  %v742_v62 = vmul.f32 %v3368_v14, %v3368_v14 }
  0x85   : > { %v807_v8 = vsel %vm579_vm1, %v735_v2, 0.0  ;;  %v727_v2 = vmul.f32 %v3301_v35, %v3301_v35 }
  0x8b   : > { %668 = vadd.xlane.f32.xlu2 %v667_v15  ;;  %665 = vadd.xlane.f32.xlu1 %v664_v16  ;;  %v737_v15 = vmul.f32 %v3339_v56, %v3339_v56  ;;  %v738_v16 = vmul.f32 %v3337_v55, %v3337_v55 }
  0x8c   : > { %662 = vadd.xlane.f32.xlu0 %v661_v17  ;;  %v722_v17 = vmul.f32 %v3272_v19, %v3272_v19 }
  0x8e   : > { %v768_v31 = vsel %vm579_vm1, %v722_v17, 0.0  ;;  %v783_v17 = vsel %vm579_vm1, %v727_v2, 0.0 }
  0x93   : > { %674 = vadd.xlane.f32.xlu1 %v673_v28  ;;  %748 = vadd.xlane.f32.xlu2 %v747_v29  ;;  %v813_v29 = vsel %vm579_vm1, %v737_v15, 0.0 }
  0x94   : > { %671 = vadd.xlane.f32.xlu0 %v670_v30  ;;  %v816_v30 = vsel %vm579_vm1, %v738_v16, 0.0  ;;  %v828_v16 = vsel %vm579_vm1, %v742_v62, 0.0 }
  0x9b   : > { %754 = vadd.xlane.f32.xlu1 %v753_v37  ;;  %757 = vadd.xlane.f32.xlu2 %v756_v38  ;;  %v723_v37 = vmul.f32 %v3270_v18, %v3270_v18 }
  0x9c   : > { %751 = vadd.xlane.f32.xlu0 %v750_v39 }
  0xa3   : > { %799 = vadd.xlane.f32.xlu1 %v798_v46  ;;  %802 = vadd.xlane.f32.xlu2 %v801_v47  ;;  %v771_v46 = vsel %vm579_vm1, %v723_v37, 0.0  ;;  %v725_v47 = vmul.f32 %v3285_v26, %v3285_v26 }
  0xa4   : > { %796 = vadd.xlane.f32.xlu0 %v795_v51  ;;  %v726_v51 = vmul.f32 %v3283_v25, %v3283_v25 }
  0xab   : > { %760 = vadd.xlane.f32.xlu1 %v759_v58  ;;  %763 = vadd.xlane.f32.xlu2 %v762_v59  ;;  %v777_v59 = vsel %vm579_vm1, %v725_v47, 0.0  ;;  %v786_v47 = vsel %vm579_vm1, %v728_v32, 0.0 }
  0xac   : > { %805 = vadd.xlane.f32.xlu0 %v804_v60  ;;  %v780_v60 = vsel %vm579_vm1, %v726_v51, 0.0  ;;  %v730_v51 = vmul.f32 %v3314_v42, %v3314_v42 }
  0xae   : > { %v792_v2 = vsel %vm579_vm1, %v730_v51, 0.0 }
  0xb3   : > { %811 = vadd.xlane.f32.xlu1 %v810_v3  ;;  %766 = vadd.xlane.f32.xlu2 %v765_v7  ;;  %v741_v3 = vmul.f32 %v3351_v63, %v3351_v63  ;;  %v3856_v63 = vld [vmem:[%s4697_s4] ss:$0 sm:$0xff] }
  0xb4   : > { %808 = vadd.xlane.f32.xlu0 %v807_v8 }
  0xb6   : > { %v3430_v21 = vpop.xlane.xlu2 %593  ;;  %v3432_v23 = vpop.xlane.xlu1 %587 }
  0xb7   : > { %v3434_v28 = vpop.xlane.xlu0 %581 }
  0xbb   : > { %814 = vadd.xlane.f32.xlu1 %v813_v29  ;;  %817 = vadd.xlane.f32.xlu2 %v816_v30  ;;  %v825_v29 = vsel %vm579_vm1, %v741_v3, 0.0  ;;  %v743_v30 = vmul.f32 %v3366_v13, %v3366_v13  ;;  %v837_v3 = vsel %vm579_vm1, %v745_v52, 0.0 }
  0xbc   : > { %769 = vadd.xlane.f32.xlu0 %v768_v31  ;;  %v744_v31 = vmul.f32 %v3364_v9, %v3364_v9 }
  0xbe   : > { %v3445_v38 = vpop.xlane.xlu2 %596  ;;  %v3447_v39 = vpop.xlane.xlu1 %590 }
  0xbf   : > { %v3449_v43 = vpop.xlane.xlu0 %584 }
  0xc3   : > { %775 = vadd.xlane.f32.xlu1 %v774_v44  ;;  %820 = vadd.xlane.f32.xlu2 %v819_v45  ;;  %v831_v45 = vsel %vm579_vm1, %v743_v30, 0.0 }
  0xc4   : > { %772 = vadd.xlane.f32.xlu0 %v771_v46  ;;  %v834_v46 = vsel %vm579_vm1, %v744_v31, 0.0 }
  0xc6   : > { %v3460_v53 = vpop.xlane.xlu2 %605  ;;  %v3462_v54 = vpop.xlane.xlu1 %602 }
  0xc7   : > { %v3464_v58 = vpop.xlane.xlu0 %599 }
  0xcb   : > { %778 = vadd.xlane.f32.xlu1 %v777_v59  ;;  %781 = vadd.xlane.f32.xlu2 %v780_v60  ;;  %v729_v59 = vmul.f32 %v3297_v33, %v3297_v33 }
  0xcc   : > { %823 = vadd.xlane.f32.xlu0 %v822_v61 }
  0xce   : > { %v3475_v7 = vpop.xlane.xlu2 %614  ;;  %v3477_v8 = vpop.xlane.xlu1 %611 }
  0xcf   : > { %v3479_v15 = vpop.xlane.xlu0 %608 }
  0xd3   : > { %829 = vadd.xlane.f32.xlu1 %v828_v16  ;;  %784 = vadd.xlane.f32.xlu2 %v783_v17  ;;  %v789_v16 = vsel %vm579_vm1, %v729_v59, 0.0  ;;  %v3063_v17 = vmov 32.0  }
  0xd4   : > { %826 = vadd.xlane.f32.xlu0 %v825_v29  ;;  %2844 = vrcp.f32 %v3063_v17  ;;  %v746_v29 = vmul.f32 %v3377_v22, %v3377_v22 }
  0xd6   : > { %v3490_v36 = vpop.xlane.xlu2 %623  ;;  %v3492_v37 = vpop.xlane.xlu1 %620 }
  0xd7   : > { %v3494_v44 = vpop.xlane.xlu0 %617 }
  0xdb   : > { %832 = vadd.xlane.f32.xlu1 %v831_v45  ;;  %835 = vadd.xlane.f32.xlu2 %v834_v46  ;;  %v840_v45 = vsel %vm579_vm1, %v746_v29, 0.0  ;;  %v2845_v46 = vpop.eup %2844 }
  0xdc   : > { %787 = vadd.xlane.f32.xlu0 %v786_v47  ;;  %v677_v47 = vmul.f32 32.0, %v2845_v46  ;;  %vm681_vm2 = vweird.f32 %v2845_v46 }
  0xde   : > { %v3505_v60 = vpop.xlane.xlu2 %632  ;;  %v3507_v61 = vpop.xlane.xlu1 %629 }
  0xdf   : > { %v3509_v62 = vpop.xlane.xlu0 %626 }
  0xe3   : > { %793 = vadd.xlane.f32.xlu1 %v792_v2  ;;  %838 = vadd.xlane.f32.xlu2 %v837_v3  ;;  %v678_v2 = vsub.f32 1.0, %v677_v47 }
  0xe4   : > { %790 = vadd.xlane.f32.xlu0 %v789_v16 }
  0xe5   : > { %v679_v3 = vmul.f32 %v2845_v46, %v678_v2 }
  0xe6   : > { %v3516_v30 = vpop.xlane.xlu2 %641  ;;  %v3518_v31 = vpop.xlane.xlu1 %638 }
  0xe7   : > { %v3520_v32 = vpop.xlane.xlu0 %635  ;;  %v680_v33 = vadd.f32 %v2845_v46, %v679_v3 }
  0xe9   : > { %v3535_v29 = vsel %vm681_vm2, %v2845_v46, %v680_v33 }
  0xea   : > { %v3543_v42 = vmul.f32 %v3535_v29, %v3430_v21  ;;  %v3549_v2 = vmul.f32 %v3535_v29, %v3432_v23  ;;  %v3553_v3 = vmul.f32 %v3535_v29, %v3434_v28  ;;  %v3557_v33 = vmul.f32 %v3535_v29, %v3445_v38 }
  0xeb   : > { %v3561_v46 = vmul.f32 %v3535_v29, %v3447_v39  ;;  %v3565_v21 = vmul.f32 %v3535_v29, %v3449_v43  ;;  %v3581_v39 = vmul.f32 %v3535_v29, %v3460_v53  ;;  %v3585_v43 = vmul.f32 %v3535_v29, %v3462_v54 }
  0xec   : > { %841 = vadd.xlane.f32.xlu0 %v840_v45  ;;  %4777 = vst [vmem:[#allocation35_spill] sm:$0xff] %v3543_v42  ;;  %v3569_v23 = vmul.f32 %v3543_v42, %v3543_v42  ;;  %v3575_v34 = vmul.f32 %v3549_v2, %v3549_v2  ;;  %v875_v14 = vmul.f32 %v3553_v3, %v3553_v3 }
  0xed   : > { %4779 = vst [vmem:[#allocation37_spill] sm:$0xff] %v3557_v33  ;;  %v3593_v13 = vmul.f32 %v3557_v33, %v3557_v33  ;;  %v878_v53 = vmul.f32 %v3561_v46, %v3561_v46  ;;  %v3603_v9 = vmul.f32 %v3565_v21, %v3565_v21  ;;  %v3607_v28 = vmul.f32 %v3535_v29, %v3464_v58 }
  0xee   : > { %v3523_v51 = vpop.xlane.xlu2 %650  ;;  %v3525_v52 = vpop.xlane.xlu1 %647  ;;  %4780 = vst [vmem:[#allocation38_spill] sm:$0xff] %v3581_v39  ;;  %v3615_v33 = vmul.f32 %v3535_v29, %v3475_v7  ;;  %v3619_v54 = vmul.f32 %v3535_v29, %v3477_v8  ;;  %v3626_v58 = vmul.f32 %v3581_v39, %v3581_v39  ;;  %v3632_v38 = vmul.f32 %v3585_v43, %v3585_v43 }
  0xef   : > { %v3527_v59 = vpop.xlane.xlu0 %644  ;;  %4781 = vst [vmem:[#allocation39_spill] sm:$0xff] %v3585_v43  ;;  %v3636_v7 = vmul.f32 %v3535_v29, %v3479_v15  ;;  %v3644_v8 = vmul.f32 %v3535_v29, %v3492_v37  ;;  %v3654_v15 = vmul.f32 %v3607_v28, %v3607_v28  ;;  %v3660_v18 = vmul.f32 %v3535_v29, %v3505_v60 }
  0xf0   : > { %4783 = vst [vmem:[#allocation41_spill] sm:$0xff] %v3615_v33  ;;  %v3664_v37 = vmul.f32 %v3615_v33, %v3615_v33  ;;  %v3682_v43 = vmul.f32 %v3535_v29, %v3507_v61  ;;  %v3725_v25 = vmul.f32 %v3535_v29, %v3520_v32 }
  0xf1   : > { %4784 = vst [vmem:[#allocation42_spill] sm:$0xff] %v3619_v54  ;;  %v892_v61 = vmul.f32 %v3660_v18, %v3660_v18 }
  0xf2   : > { %4786 = vst [vmem:[#allocation44_spill] sm:$0xff] %v3636_v7 }
  0xf3   : > { %4788 = vst [vmem:[#allocation46_spill] sm:$0xff] %v3644_v8 }
  0xf4   : > { %4790 = vst [vmem:[#allocation48_spill] sm:$0xff] %v3664_v37 }
  0xf6   : > { %v3529_v16 = vpop.xlane.xlu2 %659  ;;  %v3531_v17 = vpop.xlane.xlu1 %656 }
  0xf7   : > { %v3533_v22 = vpop.xlane.xlu0 %653  ;;  %v3791_v19 = vmul.f32 %v3535_v29, %v3531_v17 }
  0xf9   : > { %4800 = vst [vmem:[#allocation58_spill] sm:$0xff] %v3791_v19 }
  0xfe   : > { %v3537_v45 = vpop.xlane.xlu2 %668  ;;  %v3539_v24 = vpop.xlane.xlu1 %665 }
  0xff   : > { %v3545_v47 = vpop.xlane.xlu0 %662 }
 0x100   : > { %4778 = vst [vmem:[#allocation36_spill] sm:$0xff] %v3545_v47 }
 0x106   : > { %v3609_v47 = vpop.xlane.xlu1 %674  ;;  %v749_v42 = vpop.xlane.xlu2 %748 }
 0x107   : > { %4782 = vst [vmem:[#allocation40_spill] sm:$0xff] %v3609_v47  ;;  %v843_v10 = vmul.f32 %v749_v42, %v3535_v29  ;;  %v3622_v4 = vpop.xlane.xlu0 %671  ;;  %v3640_v42 = vmul.f32 %v3535_v29, %v3490_v36  ;;  %v3676_v36 = vmul.f32 %v3636_v7, %v3636_v7 }
 0x108   : > { %4785 = vst [vmem:[#allocation43_spill] sm:$0xff] %v3622_v4  ;;  %v3648_v4 = vmul.f32 %v3535_v29, %v3494_v44 }
 0x109   : > { %4787 = vst [vmem:[#allocation45_spill] sm:$0xff] %v3640_v42  ;;  %v907_v47 = vsub.f32 %v843_v10, %v875_v14  ;;  %v3670_v14 = vmul.f32 %v3619_v54, %v3619_v54  ;;  %v3686_v10 = vmul.f32 %v3640_v42, %v3640_v42  ;;  %v3704_v42 = vmul.f32 %v3535_v29, %v3509_v62 }
 0x10a   : > { %4789 = vst [vmem:[#allocation47_spill] sm:$0xff] %v3648_v4  ;;  %v3694_v39 = vmul.f32 %v3648_v4, %v3648_v4 }
 0x10b   : > { %4791 = vst [vmem:[#allocation49_spill] sm:$0xff] %v3670_v14  ;;  %v939_v44 = vmax.f32 %v907_v47, 0.0  ;;  %v3690_v47 = vmul.f32 %v3644_v8, %v3644_v8  ;;  %v3708_v8 = vmul.f32 %v3535_v29, %v3516_v30  ;;  %v3721_v30 = vmul.f32 %v3682_v43, %v3682_v43 }
 0x10c   : > { %4792 = vst [vmem:[#allocation50_spill] sm:$0xff] %v3686_v10  ;;  %v3737_v26 = vmul.f32 %v3704_v42, %v3704_v42 }
 0x10d   : > { %4793 = vst [vmem:[#allocation51_spill] sm:$0xff] %v3690_v47  ;;  %v3696_v33 = vadd.f32 1e-05, %v939_v44  ;;  %v3712_v44 = vmul.f32 %v3535_v29, %v3518_v31  ;;  %v3741_v32 = vmul.f32 %v3708_v8, %v3708_v8 }
 0x10e   : > { %4794 = vst [vmem:[#allocation52_spill] sm:$0xff] %v3694_v39  ;;  %v755_v10 = vpop.xlane.xlu1 %754  ;;  %v758_v47 = vpop.xlane.xlu2 %757 }
 0x10f   : > { %4795 = vst [vmem:[#allocation53_spill] sm:$0xff] %v3704_v42  ;;  %2846 = vrsqrt.f32 %v3696_v33  ;;  %v845_v60 = vmul.f32 %v755_v10, %v3535_v29  ;;  %v846_v4 = vmul.f32 %v758_v47, %v3535_v29  ;;  %v752_v35 = vpop.xlane.xlu0 %751  ;;  %v3732_v10 = vmul.f32 %v3535_v29, %v3523_v51 }
 0x110   : > { %v844_v31 = vmul.f32 %v752_v35, %v3535_v29  ;;  %4797 = vst [vmem:[#allocation55_spill] sm:$0xff] %v3737_v26  ;;  %v3745_v35 = vmul.f32 %v3535_v29, %v3525_v52  ;;  %v893_v42 = vmul.f32 %v3725_v25, %v3725_v25  ;;  %v3766_v51 = vmul.f32 %v3535_v29, %v3527_v59 }
 0x111   : > { %4796 = vst [vmem:[#allocation54_spill] sm:$0xff] %v3732_v10  ;;  %v909_v47 = vsub.f32 %v845_v60, %v3575_v34  ;;  %v910_v62 = vsub.f32 %v846_v4, %v878_v53  ;;  %v3752_v4 = vmul.f32 %v3712_v44, %v3712_v44  ;;  %v3797_v59 = vmul.f32 %v3535_v29, %v3533_v22 }
 0x112   : > { %4798 = vst [vmem:[#allocation56_spill] sm:$0xff] %v3745_v35  ;;  %v908_v54 = vsub.f32 %v844_v31, %v3603_v9  ;;  %v3762_v31 = vmul.f32 %v3732_v10, %v3732_v10  ;;  %v3776_v52 = vmul.f32 %v3745_v35, %v3745_v35  ;;  %vm1041_vm4 = vweird.f32 %v3696_v33 }
 0x113   : > { %v941_v34 = vmax.f32 %v909_v47, 0.0  ;;  %v942_v53 = vmax.f32 %v910_v62, 0.0  ;;  %4801 = vst [vmem:[#allocation59_spill] sm:$0xff] %v3797_v59 }
 0x114   : > { %v940_v26 = vmax.f32 %v908_v54, 0.0 }
 0x115   : > { %v2847_v9 = vpop.eup %2846  ;;  %v3768_v62 = vadd.f32 1e-05, %v941_v34  ;;  %v3770_v47 = vadd.f32 1e-05, %v942_v53  ;;  %v3785_v34 = vmul.f32 %v3535_v29, %v3529_v16 }
 0x116   : > { %v1036_v54 = vmul.f32 %v2847_v9, %v3696_v33  ;;  %v3779_v39 = vadd.f32 1e-05, %v940_v26  ;;  %v800_v7 = vpop.xlane.xlu1 %799  ;;  %v803_v27 = vpop.xlane.xlu2 %802  ;;  %vm1042_vm3 = vweird.f32 %v2847_v9  ;;  %v3842_v33 = vld [vmem:[%s4696_s3] ss:$0 sm:$0xff] }
 0x117   : > { %4799 = vst [vmem:[#allocation57_spill] sm:$0xff] %v3785_v34  ;;  %2848 = vrsqrt.f32 %v3768_v62  ;;  %v860_v53 = vmul.f32 %v800_v7, %v3535_v29  ;;  %v797_v60 = vpop.xlane.xlu0 %796  ;;  %v861_v37 = vmul.f32 %v803_v27, %v3535_v29  ;;  %v3803_v7 = vmul.f32 %v3766_v51, %v3766_v51  ;;  %vm1043_vm5 = vmor %vm1041_vm4, %vm1042_vm3 }
 0x118   : > { %v1037_v26 = vmul.f32 %v2847_v9, %v1036_v54  ;;  %2850 = vrsqrt.f32 %v3770_v47  ;;  %v859_v14 = vmul.f32 %v797_v60, %v3535_v29  ;;  %v3809_v27 = vmul.f32 %v3785_v34, %v3785_v34 }
 0x119   : > { %2852 = vrsqrt.f32 %v3779_v39  ;;  %v924_v16 = vsub.f32 %v860_v53, %v892_v61  ;;  %v925_v10 = vsub.f32 %v861_v37, %v893_v42  ;;  %v3816_v60 = vmul.f32 %v3791_v19, %v3791_v19 }
 0x11a   : > { %v1038_v54 = vmul.f32 0.5, %v1037_v26  ;;  %4802 = vst [vmem:[#allocation60_spill] sm:$0xff] %v3809_v27  ;;  %v923_v61 = vsub.f32 %v859_v14, %v3721_v30  ;;  %v3824_v37 = vmul.f32 %v3797_v59, %v3797_v59  ;;  %vm1061_vm6 = vweird.f32 %v3768_v62 }
 0x11b   : > { %v956_v55 = vmax.f32 %v924_v16, 0.0  ;;  %4803 = vst [vmem:[#allocation61_spill] sm:$0xff] %v3816_v60  ;;  %v957_v35 = vmax.f32 %v925_v10, 0.0  ;;  %vm1071_vm7 = vweird.f32 %v3770_v47  ;;  %v4804_v19 = vsub.f32 %v3248_v6, %v3553_v3 }
 0x11c   : > { %v1039_v53 = vsub.f32 1.5, %v1038_v54  ;;  %v955_v54 = vmax.f32 %v923_v61, 0.0  ;;  %vm1051_vm8 = vweird.f32 %v3779_v39 }
 0x11d   : > { %v3818_v17 = vpop.eup %2848  ;;  %v3827_v26 = vadd.f32 1e-05, %v956_v55  ;;  %v3833_v10 = vadd.f32 1e-05, %v957_v35 }
 0x11e   : > { %v3829_v14 = vpop.eup %2850  ;;  %v1040_v30 = vmul.f32 %v2847_v9, %v1039_v53  ;;  %v1056_v16 = vmul.f32 %v3818_v17, %v3768_v62  ;;  %v761_v35 = vpop.xlane.xlu1 %760  ;;  %vm1062_vm9 = vweird.f32 %v3818_v17 }
 0x11f   : > { %v3835_v22 = vpop.eup %2852  ;;  %v1066_v55 = vmul.f32 %v3829_v14, %v3770_v47  ;;  %2854 = vrsqrt.f32 %v3827_v26  ;;  %v764_v34 = vpop.xlane.xlu2 %763  ;;  %v847_v59 = vmul.f32 %v761_v35, %v3535_v29  ;;  %vm1072_vm10 = vweird.f32 %v3829_v14  ;;  %vm1063_vm13 = vmor %vm1061_vm6, %vm1062_vm9 }
 0x120   : > { %v1044_v61 = vsel %vm1043_vm5, %v2847_v9, %v1040_v30  ;;  %v1057_v53 = vmul.f32 %v3818_v17, %v1056_v16  ;;  %v1046_v42 = vmul.f32 %v3835_v22, %v3779_v39  ;;  %2856 = vrsqrt.f32 %v3833_v10  ;;  %vm1073_vm15 = vmor %vm1071_vm7, %vm1072_vm10 }
 0x121   : > { %v1355_v0 = vmul.f32 %v1044_v61, %v4804_v19  ;;  %v1067_v27 = vmul.f32 %v3829_v14, %v1066_v55  ;;  %v3865_v16 = vadd.f32 1e-05, %v955_v54  ;;  %v848_v6 = vmul.f32 %v764_v34, %v3535_v29  ;;  %v806_v19 = vpop.xlane.xlu0 %805 }
 0x122   : > { %v1058_v9 = vmul.f32 0.5, %v1057_v53  ;;  %v1047_v30 = vmul.f32 %v3835_v22, %v1046_v42  ;;  %vm1052_vm11 = vweird.f32 %v3835_v22  ;;  %vm1211_vm12 = vweird.f32 %v3827_v26 }
 0x123   : > { %v1391_v1 = vmul.f32 %v3842_v33, %v1355_v0  ;;  %v1068_v60 = vmul.f32 0.5, %v1067_v27  ;;  %2858 = vrsqrt.f32 %v3865_v16  ;;  %v911_v0 = vsub.f32 %v847_v59, %v3569_v23  ;;  %vm1053_vm2 = vmor %vm1051_vm8, %vm1052_vm11 }
 0x124   : > { %v1059_v3 = vsub.f32 1.5, %v1058_v9  ;;  %v1048_v55 = vmul.f32 0.5, %v1047_v30  ;;  %v3880_v53 = vmul.f32 %v806_v19, %v3535_v29  ;;  %v912_v59 = vsub.f32 %v848_v6, %v3593_v13 }
 0x125   : > { %v2855_v61 = vpop.eup %2854  ;;  %v1427_v42 = vadd.f32 %v3856_v63, %v1391_v1  ;;  %v1069_v54 = vsub.f32 1.5, %v1068_v60  ;;  %v943_v23 = vmax.f32 %v911_v0, 0.0  ;;  %vm1221_vm0 = vweird.f32 %v3833_v10 }
 0x126   : > { %v1060_v35 = vmul.f32 %v3818_v17, %v1059_v3  ;;  %v1049_v27 = vsub.f32 1.5, %v1048_v55  ;;  %v1206_v34 = vmul.f32 %v2855_v61, %v3827_v26  ;;  %v3882_v9 = vpop.eup %2856  ;;  %vm1212_vm14 = vweird.f32 %v2855_v61 }
 0x127   : > { %v1070_v1 = vmul.f32 %v3829_v14, %v1069_v54  ;;  %v1216_v62 = vmul.f32 %v3882_v9, %v3833_v10  ;;  %v1461_v3 = vsel %vm579_vm1, %v1427_v42, 0.0  ;;  %v4805_v13 = vsub.f32 %v3246_v5, %v3549_v2  ;;  %vm1213_vm5 = vmor %vm1211_vm12, %vm1212_vm14 }
 0x128   : > { %v1064_v60 = vsel %vm1063_vm13, %v3818_v17, %v1060_v35  ;;  %v1050_v30 = vmul.f32 %v3835_v22, %v1049_v27  ;;  %v1207_v19 = vmul.f32 %v2855_v61, %v1206_v34  ;;  %v3908_v47 = vadd.f32 1e-05, %v943_v23 }
 0x129   : > { %v1357_v6 = vmul.f32 %v1064_v60, %v4805_v13  ;;  %v1074_v17 = vsel %vm1073_vm15, %v3829_v14, %v1070_v1  ;;  %v2859_v55 = vpop.eup %2858  ;;  %v4806_v54 = vsub.f32 %v3258_v11, %v3561_v46  ;;  %v1217_v5 = vmul.f32 %v3882_v9, %v1216_v62 }
 0x12a   : > { %v1054_v42 = vsel %vm1053_vm2, %v3835_v22, %v1050_v30  ;;  %v1208_v35 = vmul.f32 0.5, %v1207_v19  ;;  %v4807_v14 = vsub.f32 %v3260_v12, %v3565_v21  ;;  %v1196_v39 = vmul.f32 %v2859_v55, %v3865_v16 }
 0x12b   : > { %v1358_v0 = vmul.f32 %v1074_v17, %v4806_v54  ;;  %v1393_v2 = vmul.f32 %v3842_v33, %v1357_v6  ;;  %v944_v34 = vmax.f32 %v912_v59, 0.0  ;;  %v1218_v60 = vmul.f32 0.5, %v1217_v5 }
 0x12c   : > { %v1356_v27 = vmul.f32 %v1054_v42, %v4807_v14  ;;  %v1209_v23 = vsub.f32 1.5, %v1208_v35  ;;  %2860 = vrsqrt.f32 %v3908_v47  ;;  %vm1222_vm3 = vweird.f32 %v3882_v9 }
 0x12d   : > { %v1394_v1 = vmul.f32 %v3842_v33, %v1358_v0  ;;  %v1429_v11 = vadd.f32 %v3856_v63, %v1393_v2  ;;  %v1197_v22 = vmul.f32 %v2859_v55, %v1196_v39  ;;  %v1219_v21 = vsub.f32 1.5, %v1218_v60  ;;  %vm3945_vm6 = vmor %vm1221_vm0, %vm1222_vm3 }
 0x12e   : > { %v1392_v46 = vmul.f32 %v3842_v33, %v1356_v27  ;;  %v1210_v12 = vmul.f32 %v2855_v61, %v1209_v23  ;;  %vm1202_vm4 = vweird.f32 %v2859_v55  ;;  %v3931_v13 = vadd.f32 1e-05, %v944_v34 }
 0x12f   : > { %v1430_v30 = vadd.f32 %v3856_v63, %v1394_v1  ;;  %v1470_v59 = vsel %vm579_vm1, %v1429_v11, 0.0  ;;  %v1198_v62 = vmul.f32 0.5, %v1197_v22  ;;  %v1220_v54 = vmul.f32 %v3882_v9, %v1219_v21 }
 0x130   : > { %v1428_v19 = vadd.f32 %v3856_v63, %v1392_v46  ;;  %v1214_v17 = vsel %vm1213_vm5, %v2855_v61, %v1210_v12  ;;  %v926_v0 = vsub.f32 %v3880_v53, %v3752_v4  ;;  %v4808_v5 = vsub.f32 %v3310_v40, %v3660_v18 }
 0x131   : > { %v1471_v6 = vsel %vm579_vm1, %v1430_v30, 0.0  ;;  %v1199_v61 = vsub.f32 1.5, %v1198_v62  ;;  %v3953_v4 = vmul.f32 %v3535_v29, %v3537_v45  ;;  %v1224_v18 = vsel %vm3945_vm6, %v3882_v9, %v1220_v54  ;;  %v812_v9 = vpop.xlane.xlu1 %811  ;;  %v809_v54 = vpop.xlane.xlu0 %808 }
 0x132   : > { %v1472_v42 = vadd.f32 %v1471_v6, %v1470_v59  ;;  %v1462_v35 = vsel %vm579_vm1, %v1428_v19, 0.0  ;;  %v1372_v2 = vmul.f32 %v1214_v17, %v4808_v5  ;;  %v3949_v14 = vpop.eup %2860  ;;  %2862 = vrsqrt.f32 %v3931_v13 }
 0x133   : > { %v1463_v53 = vadd.f32 %v1462_v35, %v1461_v3  ;;  %v1200_v27 = vmul.f32 %v2859_v55, %v1199_v61  ;;  %vm1201_vm7 = vweird.f32 %v3865_v16  ;;  %v3963_v39 = vmul.f32 %v3535_v29, %v3539_v24 }
 0x134   : > { %v1473_v40 = vrot.slane %v1472_v42, 4  ;;  %v1408_v10 = vmul.f32 %v3842_v33, %v1372_v2  ;;  %vm1203_vm8 = vmor %vm1201_vm7, %vm1202_vm4  ;;  %v1076_v45 = vmul.f32 %v3949_v14, %v3908_v47  ;;  %v958_v3 = vmax.f32 %v926_v0, 0.0 }
 0x135   : > { %v1464_v34 = vrot.slane %v1463_v53, 4  ;;  %vm1621_vm9 = vcmask 1041409   ;;  %v4811_v60 = vsub.f32 %v3328_v50, %v3725_v25  ;;  %v1204_v11 = vsel %vm1203_vm8, %v2859_v55, %v1200_v27 }
 0x136   : > { %v1474_v1 = vadd.f32 %v1473_v40, %v1472_v42  ;;  %v1444_v23 = vadd.f32 %v3856_v63, %v1408_v10  ;;  %v4812_v24 = vsub.f32 %v3312_v41, %v3682_v43  ;;  %v1077_v30 = vmul.f32 %v3949_v14, %v1076_v45  ;;  %v767_v41 = vpop.xlane.xlu2 %766 }
 0x137   : > { %v1373_v16 = vmul.f32 %v1224_v18, %v4811_v60  ;;  %v1465_v46 = vadd.f32 %v1464_v34, %v1463_v53  ;;  %v3976_v12 = vadd.f32 1e-05, %v958_v3  ;;  %vm1081_vm10 = vweird.f32 %v3908_v47 }
 0x138   : > { %v1371_v22 = vmul.f32 %v1204_v11, %v4812_v24  ;;  %v1475_v21 = vrot.slane %v1474_v1, 2  ;;  %vm1082_vm11 = vweird.f32 %v3949_v14  ;;  %v864_v59 = vmul.f32 %v812_v9, %v3535_v29  ;;  %v2863_v19 = vpop.eup %2862  ;;  %v4813_v11 = vld [vmem:[#allocation15_spill] sm:$0xff] }
 0x139   : > { %v1466_v25 = vrot.slane %v1465_v46, 2  ;;  %v1078_v55 = vmul.f32 0.5, %v1077_v30  ;;  %2864 = vrsqrt.f32 %v3976_v12  ;;  %v1534_v62 = vsel %vm579_vm1, %v1444_v23, 0.0  ;;  %vm1083_vm13 = vmor %vm1081_vm10, %vm1082_vm11 }
 0x13a   : > { %v1407_v50 = vmul.f32 %v3842_v33, %v1371_v22  ;;  %v1476_v43 = vadd.f32 %v1475_v21, %v1474_v1  ;;  %v1409_v6 = vmul.f32 %v3842_v33, %v1373_v16  ;;  %v1086_v17 = vmul.f32 %v2863_v19, %v3931_v13 }
 0x13b   : > { %v1467_v0 = vadd.f32 %v1466_v25, %v1465_v46  ;;  %v1079_v35 = vsub.f32 1.5, %v1078_v55  ;;  %vm1092_vm12 = vweird.f32 %v2863_v19  ;;  %v928_v26 = vsub.f32 %v864_v59, %v3803_v7  ;;  %v4814_v46 = vld [vmem:[#allocation35_spill] sm:$0xff]  ;;  %v4816_v55 = vld [vmem:[#allocation36_spill] sm:$0xff] }
 0x13c   : > { %v1443_v42 = vadd.f32 %v3856_v63, %v1407_v50  ;;  %v1477_v5 = vrot.slane %v1476_v43, 1  ;;  %v1087_v2 = vmul.f32 %v2863_v19, %v1086_v17  ;;  %v849_v61 = vmul.f32 %v767_v41, %v3535_v29 }
 0x13d   : > { %v1468_v53 = vrot.slane %v1467_v0, 1  ;;  %v1080_v40 = vmul.f32 %v3949_v14, %v1079_v35  ;;  %v863_v10 = vmul.f32 %v809_v54, %v3535_v29  ;;  %v960_v3 = vmax.f32 %v928_v26, 0.0  ;;  %v4818_v26 = vld [vmem:[#allocation37_spill] sm:$0xff] }
 0x13e   : > { %v1533_v18 = vsel %vm579_vm1, %v1443_v42, 0.0  ;;  %v1478_v27 = vadd.f32 %v1477_v5, %v1476_v43  ;;  %v1088_v45 = vmul.f32 0.5, %v1087_v2  ;;  %v913_v23 = vsub.f32 %v849_v61, %v3654_v15  ;;  %v818_v35 = vpop.xlane.xlu2 %817  ;;  %v4817_v2 = vld [vmem:[#allocation16_spill] sm:$0xff] }
 0x13f   : > { %v1535_v34 = vadd.f32 %v1534_v62, %v1533_v18  ;;  %v2865_v9 = vpop.eup %2864  ;;  %v1469_v7 = vadd.f32 %v1468_v53, %v1467_v0  ;;  %v1084_v1 = vsel %vm1083_vm13, %v3949_v14, %v1080_v40  ;;  %v927_v60 = vsub.f32 %v863_v10, %v3741_v32 }
 0x140   : > { %v4815_v24 = vsub.f32 %v4813_v11, %v4814_v46  ;;  %v1089_v30 = vsub.f32 1.5, %v1088_v45  ;;  %v1226_v21 = vmul.f32 %v2865_v9, %v3976_v12  ;;  %vm1091_vm14 = vweird.f32 %v3931_v13  ;;  %v815_v13 = vpop.xlane.xlu1 %814 }
 0x141   : > { %v1536_v16 = vrot.slane %v1535_v34, 4  ;;  %v4004_v47 = vsel %vm1621_vm9, %v1478_v27, %v1469_v7  ;;  %v4007_v59 = vadd.f32 1e-05, %v960_v3  ;;  %v945_v14 = vmax.f32 %v913_v23, 0.0  ;;  %vm1093_vm15 = vmor %vm1091_vm14, %vm1092_vm12  ;;  %v770_v3 = vpop.xlane.xlu0 %769 }
 0x142   : > { %v1359_v22 = vmul.f32 %v1084_v1, %v4815_v24  ;;  %v1090_v32 = vmul.f32 %v2863_v19, %v1089_v30  ;;  %v1227_v50 = vmul.f32 %v2865_v9, %v1226_v21  ;;  %v4012_v41 = vmul.f32 %v3535_v29, %v4816_v55 }
 0x143   : > { %v1537_v25 = vadd.f32 %v1536_v16, %v1535_v34  ;;  %2866 = vrsqrt.f32 %v4007_v59  ;;  %v4016_v43 = vadd.f32 1e-05, %v945_v14  ;;  %v959_v62 = vmax.f32 %v927_v60, 0.0 }
 0x144   : > { %v1395_v15 = vmul.f32 %v3842_v33, %v1359_v22  ;;  %v1445_v17 = vadd.f32 %v3856_v63, %v1409_v6  ;;  %v1094_v0 = vsel %vm1093_vm15, %v2863_v19, %v1090_v32  ;;  %v1228_v42 = vmul.f32 0.5, %v1227_v50  ;;  %v4820_v6 = vld [vmem:[#allocation30_spill] sm:$0xff] }
 0x145   : > { %v1538_v54 = vrot.slane %v1537_v25, 2  ;;  %v4819_v61 = vsub.f32 %v4817_v2, %v4818_v26  ;;  %2868 = vrsqrt.f32 %v4016_v43  ;;  %v4024_v18 = vadd.f32 1e-05, %v959_v62 }
 0x146   : > { %v1431_v5 = vadd.f32 %v3856_v63, %v1395_v15  ;;  %v4028_v40 = vmul.f32 %v3953_v4, %v3953_v4  ;;  %v1229_v10 = vsub.f32 1.5, %v1228_v42  ;;  %vm1232_vm0 = vweird.f32 %v2865_v9 }
 0x147   : > { %v1360_v53 = vmul.f32 %v1094_v0, %v4819_v61  ;;  %v865_v19 = vmul.f32 %v815_v13, %v3535_v29  ;;  %v1000_v27 = vsub.f32 %v4820_v6, %v3953_v4  ;;  %2870 = vrsqrt.f32 %v4024_v18  ;;  %v4875_v6 = vld [vmem:[#allocation46_spill] sm:$0xff] }
 0x148   : > { %v866_v45 = vmul.f32 %v818_v35, %v3535_v29  ;;  %v1542_v7 = vsel %vm579_vm1, %v1445_v17, 0.0  ;;  %v1230_v1 = vmul.f32 %v2865_v9, %v1229_v10  ;;  %vm1231_vm2 = vweird.f32 %v3976_v12  ;;  %v776_v35 = vpop.xlane.xlu1 %775 }
 0x149   : > { %v1396_v34 = vmul.f32 %v3842_v33, %v1360_v53  ;;  %v929_v23 = vsub.f32 %v865_v19, %v3776_v52  ;;  %v2867_v60 = vpop.eup %2866  ;;  %v1539_v16 = vadd.f32 %v1538_v54, %v1537_v25  ;;  %v1479_v11 = vsel %vm579_vm1, %v1431_v5, 0.0  ;;  %vm1233_vm3 = vmor %vm1231_vm2, %vm1232_vm0  ;;  %v821_v19 = vpop.xlane.xlu2 %820 }
 0x14a   : > { %v930_v24 = vsub.f32 %v866_v45, %v3762_v31  ;;  %v1234_v22 = vsel %vm1233_vm3, %v2865_v9, %v1230_v1  ;;  %v1246_v30 = vmul.f32 %v2867_v60, %v4007_v59  ;;  %vm1251_vm4 = vweird.f32 %v4007_v59 }
 0x14b   : > { %v1432_v46 = vadd.f32 %v3856_v63, %v1396_v34  ;;  %v850_v21 = vmul.f32 %v770_v3, %v3535_v29  ;;  %v2869_v12 = vpop.eup %2868  ;;  %v4821_v14 = vsub.f32 %v3326_v49, %v3712_v44  ;;  %v961_v15 = vmax.f32 %v929_v23, 0.0 }
 0x14c   : > { %v962_v32 = vmax.f32 %v930_v24, 0.0  ;;  %v1247_v55 = vmul.f32 %v2867_v60, %v1246_v30  ;;  %v1096_v31 = vmul.f32 %v2869_v12, %v4016_v43  ;;  %vm1101_vm5 = vweird.f32 %v4016_v43 }
 0x14d   : > { %v1480_v52 = vsel %vm579_vm1, %v1432_v46, 0.0  ;;  %v1374_v25 = vmul.f32 %v1234_v22, %v4821_v14  ;;  %v4052_v9 = vpop.eup %2870  ;;  %v1540_v62 = vrot.slane %v1539_v16, 1  ;;  %v4055_v17 = vadd.f32 1e-05, %v961_v15 }
 0x14e   : > { %v1481_v50 = vadd.f32 %v1480_v52, %v1479_v11  ;;  %v4057_v54 = vadd.f32 1e-05, %v962_v32  ;;  %v1248_v49 = vmul.f32 0.5, %v1247_v55  ;;  %v1097_v44 = vmul.f32 %v2869_v12, %v1096_v31 }
 0x14f   : > { %v1410_v13 = vmul.f32 %v3842_v33, %v1374_v25  ;;  %v1236_v42 = vmul.f32 %v4052_v9, %v4024_v18  ;;  %vm1623_vm6 = vcmask 1042434   ;;  %vm1252_vm7 = vweird.f32 %v2867_v60 }
 0x150   : > { %v1482_v0 = vrot.slane %v1481_v50, 4  ;;  %vm1241_vm8 = vweird.f32 %v4024_v18  ;;  %2872 = vrsqrt.f32 %v4055_v17  ;;  %v914_v2 = vsub.f32 %v850_v21, %v3632_v38  ;;  %vm1253_vm11 = vmor %vm1251_vm4, %vm1252_vm7 }
 0x151   : > { %v1446_v5 = vadd.f32 %v3856_v63, %v1410_v13  ;;  %v1249_v61 = vsub.f32 1.5, %v1248_v49  ;;  %v1098_v53 = vmul.f32 0.5, %v1097_v44  ;;  %v1237_v10 = vmul.f32 %v4052_v9, %v1236_v42 }
 0x152   : > { %v1483_v26 = vadd.f32 %v1482_v0, %v1481_v50  ;;  %vm1102_vm10 = vweird.f32 %v2869_v12  ;;  %2874 = vrsqrt.f32 %v4057_v54  ;;  %v852_v45 = vmul.f32 %v776_v35, %v3535_v29 }
 0x153   : > { %v1543_v34 = vsel %vm579_vm1, %v1446_v5, 0.0  ;;  %v1250_v23 = vmul.f32 %v2867_v60, %v1249_v61  ;;  %v1099_v11 = vsub.f32 1.5, %v1098_v53  ;;  %v1541_v46 = vadd.f32 %v1540_v62, %v1539_v16  ;;  %vm1103_vm12 = vmor %vm1101_vm5, %vm1102_vm10 }
 0x154   : > { %v1484_v3 = vrot.slane %v1483_v26, 2  ;;  %v1544_v1 = vadd.f32 %v1543_v34, %v1542_v7  ;;  %v1238_v38 = vmul.f32 0.5, %v1237_v10  ;;  %v946_v24 = vmax.f32 %v914_v2, 0.0 }
 0x155   : > { %v867_v22 = vmul.f32 %v821_v19, %v3535_v29  ;;  %v1254_v52 = vsel %vm1253_vm11, %v2867_v60, %v1250_v23  ;;  %v1100_v14 = vmul.f32 %v2869_v12, %v1099_v11  ;;  %v4822_v15 = vsub.f32 %v3341_v57, %v3766_v51 }
 0x156   : > { %v1485_v30 = vadd.f32 %v1484_v3, %v1483_v26  ;;  %v1545_v21 = vrot.slane %v1544_v1, 4  ;;  %v2873_v25 = vpop.eup %2872  ;;  %v1239_v16 = vsub.f32 1.5, %v1238_v38  ;;  %vm1242_vm13 = vweird.f32 %v4052_v9 }
 0x157   : > { %v1376_v7 = vmul.f32 %v1254_v52, %v4822_v15  ;;  %v916_v59 = vsub.f32 %v852_v45, %v3676_v36  ;;  %v1104_v55 = vsel %vm1103_vm12, %v2869_v12, %v1100_v14  ;;  %v1256_v60 = vmul.f32 %v2873_v25, %v4055_v17  ;;  %vm1243_vm15 = vmor %vm1241_vm8, %vm1242_vm13  ;;  %v4825_v15 = vld [vmem:[#allocation56_spill] sm:$0xff] }
 0x158   : > { %v1486_v32 = vrot.slane %v1485_v30, 1  ;;  %v1546_v50 = vadd.f32 %v1545_v21, %v1544_v1  ;;  %vm1261_vm14 = vweird.f32 %v4055_v17  ;;  %v2875_v31 = vpop.eup %2874  ;;  %v4823_v51 = vsub.f32 %v3274_v20, %v3607_v28 }
 0x159   : > { %v1412_v57 = vmul.f32 %v3842_v33, %v1376_v7  ;;  %v1240_v62 = vmul.f32 %v4052_v9, %v1239_v16  ;;  %v4088_v13 = vadd.f32 1e-05, %v946_v24  ;;  %v1257_v12 = vmul.f32 %v2873_v25, %v1256_v60 }
 0x15a   : > { %v1361_v43 = vmul.f32 %v1104_v55, %v4823_v51  ;;  %v1487_v0 = vadd.f32 %v1486_v32, %v1485_v30  ;;  %v1547_v36 = vrot.slane %v1546_v50, 2  ;;  %v1266_v49 = vmul.f32 %v2875_v31, %v4057_v54 }
 0x15b   : > { %v1448_v44 = vadd.f32 %v3856_v63, %v1412_v57  ;;  %v1244_v42 = vsel %vm1243_vm15, %v4052_v9, %v1240_v62  ;;  %v948_v35 = vmax.f32 %v916_v59, 0.0  ;;  %v931_v20 = vsub.f32 %v867_v22, %v3824_v37  ;;  %v773_v9 = vpop.xlane.xlu0 %772  ;;  %v779_v59 = vpop.xlane.xlu1 %778  ;;  %v4829_v62 = vld [vmem:[#allocation54_spill] sm:$0xff] }
 0x15c   : > { %v4098_v28 = vsel %vm1623_vm6, %v1487_v0, %v4004_v47  ;;  %v1548_v5 = vadd.f32 %v1547_v36, %v1546_v50  ;;  %v4824_v2 = vsub.f32 %v3324_v48, %v3708_v8  ;;  %v1258_v26 = vmul.f32 0.5, %v1257_v12 }
 0x15d   : > { %vm1262_vm0 = vweird.f32 %v2873_v25  ;;  %v1267_v61 = vmul.f32 %v2875_v31, %v1266_v49  ;;  %vm1271_vm2 = vweird.f32 %v4057_v54  ;;  %2876 = vrsqrt.f32 %v4088_v13 }
 0x15e   : > { %v1375_v18 = vmul.f32 %v1244_v42, %v4824_v2  ;;  %v1549_v53 = vrot.slane %v1548_v5, 1  ;;  %v1397_v37 = vmul.f32 %v3842_v33, %v1361_v43  ;;  %v1259_v47 = vsub.f32 1.5, %v1258_v26  ;;  %vm1263_vm3 = vmor %vm1261_vm14, %vm1262_vm0  ;;  %v4828_v43 = vld [vmem:[#allocation26_spill] sm:$0xff] }
 0x15f   : > { %v1552_v19 = vsel %vm579_vm1, %v1448_v44, 0.0  ;;  %v1268_v34 = vmul.f32 0.5, %v1267_v61  ;;  %v4108_v45 = vadd.f32 1e-05, %v948_v35  ;;  %v963_v48 = vmax.f32 %v931_v20, 0.0 }
 0x160   : > { %v1411_v10 = vmul.f32 %v3842_v33, %v1375_v18  ;;  %v1550_v8 = vadd.f32 %v1549_v53, %v1548_v5  ;;  %v1260_v1 = vmul.f32 %v2873_v25, %v1259_v47  ;;  %v851_v23 = vmul.f32 %v773_v9, %v3535_v29 }
 0x161   : > { %v1269_v11 = vsub.f32 1.5, %v1268_v34  ;;  %vm1272_vm4 = vweird.f32 %v2875_v31  ;;  %2878 = vrsqrt.f32 %v4108_v45  ;;  %v4116_v38 = vadd.f32 1e-05, %v963_v48  ;;  %v4831_v34 = vld [vmem:[#allocation49_spill] sm:$0xff] }
 0x162   : > { %v1447_v3 = vadd.f32 %v3856_v63, %v1411_v10  ;;  %v4119_v24 = vsel %vm1621_vm9, %v1550_v8, %v1541_v46  ;;  %v1264_v30 = vsel %vm1263_vm3, %v2873_v25, %v1260_v1  ;;  %v915_v21 = vsub.f32 %v851_v23, %v3626_v58  ;;  %v4827_v46 = vld [vmem:[#allocation31_spill] sm:$0xff]  ;;  %vm1273_vm9 = vmor %vm1271_vm2, %vm1272_vm4  ;;  %v782_v58 = vpop.xlane.xlu2 %781  ;;  %v4832_v8 = vld [vmem:[#allocation48_spill] sm:$0xff] }
 0x163   : > { %v2877_v52 = vpop.eup %2876  ;;  %v4826_v17 = vsub.f32 %v3339_v56, %v4825_v15  ;;  %v1270_v16 = vmul.f32 %v2875_v31, %v1269_v11  ;;  %2880 = vrsqrt.f32 %v4116_v38  ;;  %v4129_v32 = vmul.f32 %v3963_v39, %v3963_v39  ;;  %v824_v18 = vpop.xlane.xlu0 %823 }
 0x164   : > { %v1551_v22 = vsel %vm579_vm1, %v1447_v3, 0.0  ;;  %v999_v50 = vsub.f32 %v4827_v46, %v3963_v39  ;;  %v4134_v25 = vadd.f32 %v3856_v63, %v1397_v37  ;;  %v1106_v56 = vmul.f32 %v2877_v52, %v4088_v13 }
 0x165   : > { %v1553_v14 = vadd.f32 %v1552_v19, %v1551_v22  ;;  %v1377_v7 = vmul.f32 %v1264_v30, %v4826_v17  ;;  %v1274_v57 = vsel %vm1273_vm9, %v2875_v31, %v1270_v16  ;;  %v947_v51 = vmax.f32 %v915_v21, 0.0 }
 0x166   : > { %v4830_v0 = vsub.f32 %v4828_v43, %v4829_v62  ;;  %v1107_v12 = vmul.f32 %v2877_v52, %v1106_v56  ;;  %vm1111_vm5 = vweird.f32 %v4088_v13  ;;  %v853_v49 = vmul.f32 %v779_v59, %v3535_v29 }
 0x167   : > { %v1554_v55 = vrot.slane %v1553_v14, 4  ;;  %v1413_v60 = vmul.f32 %v3842_v33, %v1377_v7  ;;  %v2879_v44 = vpop.eup %2878  ;;  %v4147_v35 = vadd.f32 1e-05, %v947_v51  ;;  %v854_v20 = vmul.f32 %v782_v58, %v3535_v29 }
 0x168   : > { %v1378_v36 = vmul.f32 %v1274_v57, %v4830_v0  ;;  %v1108_v5 = vmul.f32 0.5, %v1107_v12  ;;  %v1126_v2 = vmul.f32 %v2879_v44, %v4108_v45  ;;  %vm1131_vm7 = vweird.f32 %v4108_v45  ;;  %v4834_v57 = vld [vmem:[#allocation39_spill] sm:$0xff]  ;;  %v4836_v12 = vld [vmem:[#allocation61_spill] sm:$0xff]  ;;  %v830_v45 = vpop.xlane.xlu1 %829 }
 0x169   : > { %v1555_v54 = vadd.f32 %v1554_v55, %v1553_v14  ;;  %v1449_v42 = vadd.f32 %v3856_v63, %v1413_v60  ;;  %v4153_v26 = vpop.eup %2880  ;;  %vm1112_vm8 = vweird.f32 %v2877_v52  ;;  %2882 = vrsqrt.f32 %v4147_v35  ;;  %v4833_v60 = vld [vmem:[#allocation18_spill] sm:$0xff] }
 0x16a   : > { %v1414_v31 = vmul.f32 %v3842_v33, %v1378_v36  ;;  %v1109_v37 = vsub.f32 1.5, %v1108_v5  ;;  %v1127_v10 = vmul.f32 %v2879_v44, %v1126_v2  ;;  %v1276_v47 = vmul.f32 %v4153_v26, %v4116_v38  ;;  %vm1113_vm10 = vmor %vm1111_vm5, %vm1112_vm8 }
 0x16b   : > { %v1556_v61 = vrot.slane %v1555_v54, 2  ;;  %v1560_v9 = vsel %vm579_vm1, %v1449_v42, 0.0  ;;  %v917_v48 = vsub.f32 %v853_v49, %v4831_v34  ;;  %v918_v3 = vsub.f32 %v854_v20, %v4832_v8 }
 0x16c   : > { %v1450_v53 = vadd.f32 %v3856_v63, %v1414_v31  ;;  %v868_v1 = vmul.f32 %v824_v18, %v3535_v29  ;;  %v1110_v11 = vmul.f32 %v2877_v52, %v1109_v37  ;;  %v1128_v22 = vmul.f32 0.5, %v1127_v10 }
 0x16d   : > { %v1557_v19 = vadd.f32 %v1556_v61, %v1555_v54  ;;  %v1277_v30 = vmul.f32 %v4153_v26, %v1276_v47  ;;  %vm1132_vm11 = vweird.f32 %v2879_v44  ;;  %v949_v15 = vmax.f32 %v917_v48, 0.0  ;;  %v4837_v61 = vld [vmem:[#allocation21_spill] sm:$0xff] }
 0x16e   : > { %v1561_v23 = vsel %vm579_vm1, %v1450_v53, 0.0  ;;  %v1114_v17 = vsel %vm1113_vm10, %v2877_v52, %v1110_v11  ;;  %v1129_v7 = vsub.f32 1.5, %v1128_v22  ;;  %v950_v59 = vmax.f32 %v918_v3, 0.0  ;;  %vm1133_vm12 = vmor %vm1131_vm7, %vm1132_vm11 }
 0x16f   : > { %v1558_v21 = vrot.slane %v1557_v19, 1  ;;  %v1562_v14 = vadd.f32 %v1561_v23, %v1560_v9  ;;  %v1278_v16 = vmul.f32 0.5, %v1277_v30  ;;  %v2883_v56 = vpop.eup %2882  ;;  %v4835_v51 = vsub.f32 %v4833_v60, %v4834_v57  ;;  %v4838_v9 = vld [vmem:[#allocation44_spill] sm:$0xff]  ;;  %v4843_v57 = vld [vmem:[#allocation29_spill] sm:$0xff] }
 0x170   : > { %v4171_v62 = vadd.f32 1e-05, %v949_v15  ;;  %v1130_v0 = vmul.f32 %v2879_v44, %v1129_v7  ;;  %v1116_v13 = vmul.f32 %v2883_v56, %v4147_v35  ;;  %v932_v49 = vsub.f32 %v868_v1, %v4836_v12  ;;  %v4842_v15 = vld [vmem:[#allocation32_spill] sm:$0xff] }
 0x171   : > { %v1559_v58 = vadd.f32 %v1558_v21, %v1557_v19  ;;  %v1563_v55 = vrot.slane %v1562_v14, 4  ;;  %v1362_v43 = vmul.f32 %v1114_v17, %v4835_v51  ;;  %v1279_v36 = vsub.f32 1.5, %v1278_v16  ;;  %v827_v16 = vpop.xlane.xlu0 %826  ;;  %v4844_v51 = vld [vmem:[#allocation59_spill] sm:$0xff] }
 0x172   : > { %2884 = vrsqrt.f32 %v4171_v62  ;;  %v4184_v20 = vmul.f32 %v4012_v41, %v4012_v41  ;;  %v1488_v31 = vsel %vm579_vm1, %v4134_v25, 0.0  ;;  %v1134_v5 = vsel %vm1133_vm12, %v2879_v44, %v1130_v0 }
 0x173   : > { %v1636_v52 = vsel %vm1623_vm6, %v1559_v58, %v4119_v24  ;;  %v1564_v54 = vadd.f32 %v1563_v55, %v1562_v14  ;;  %v1398_v42 = vmul.f32 %v3842_v33, %v1362_v43  ;;  %v1117_v2 = vmul.f32 %v2883_v56, %v1116_v13  ;;  %v4847_v13 = vld [vmem:[#allocation38_spill] sm:$0xff] }
 0x174   : > { %v4839_v53 = vsub.f32 %v4837_v61, %v4838_v9  ;;  %vm1282_vm6 = vweird.f32 %v4153_v26  ;;  %v1280_v10 = vmul.f32 %v4153_v26, %v1279_v36  ;;  %v4194_v19 = vadd.f32 1e-05, %v950_v59  ;;  %v4846_v36 = vld [vmem:[#allocation17_spill] sm:$0xff]  ;;  %v833_v61 = vpop.xlane.xlu1 %832 }
 0x175   : > { %v1565_v18 = vrot.slane %v1564_v54, 2  ;;  %v1434_v24 = vadd.f32 %v3856_v63, %v1398_v42  ;;  %v1118_v47 = vmul.f32 0.5, %v1117_v2  ;;  %v964_v34 = vmax.f32 %v932_v49, 0.0 }
 0x176   : > { %v1364_v37 = vmul.f32 %v1134_v5, %v4839_v53  ;;  %vm1281_vm13 = vweird.f32 %v4116_v38  ;;  %vm1122_vm14 = vweird.f32 %v2883_v56  ;;  %2886 = vrsqrt.f32 %v4194_v19 }
 0x177   : > { %v1566_v48 = vadd.f32 %v1565_v18, %v1564_v54  ;;  %v1489_v25 = vsel %vm579_vm1, %v1434_v24, 0.0  ;;  %v1119_v3 = vsub.f32 1.5, %v1118_v47  ;;  %vm1625_vm15 = vcmask 1043459   ;;  %vm4202_vm0 = vmor %vm1281_vm13, %vm1282_vm6 }
 0x178   : > { %v1490_v44 = vadd.f32 %v1489_v25, %v1488_v31  ;;  %v1400_v8 = vmul.f32 %v3842_v33, %v1364_v37  ;;  %v2885_v1 = vpop.eup %2884  ;;  %vm1121_vm2 = vweird.f32 %v4147_v35  ;;  %v4207_v22 = vadd.f32 1e-05, %v964_v34  ;;  %v785_v35 = vpop.xlane.xlu2 %784 }
 0x179   : > { %v1567_v23 = vrot.slane %v1566_v48, 1  ;;  %v1284_v30 = vsel %vm4202_vm0, %v4153_v26, %v1280_v10  ;;  %v1120_v21 = vmul.f32 %v2883_v56, %v1119_v3  ;;  %v1136_v14 = vmul.f32 %v2885_v1, %v4171_v62  ;;  %vm1123_vm3 = vmor %vm1121_vm2, %vm1122_vm14 }
 0x17a   : > { %v1491_v38 = vrot.slane %v1490_v44, 4  ;;  %v998_v17 = vsub.f32 %v4842_v15, %v4012_v41  ;;  %vm1141_vm4 = vweird.f32 %v4171_v62  ;;  %2888 = vrsqrt.f32 %v4207_v22 }
 0x17b   : > { %v1568_v7 = vadd.f32 %v1567_v23, %v1566_v48  ;;  %v1436_v58 = vadd.f32 %v3856_v63, %v1400_v8  ;;  %v1124_v55 = vsel %vm1123_vm3, %v2883_v56, %v1120_v21  ;;  %v1137_v26 = vmul.f32 %v2885_v1, %v1136_v14 }
 0x17c   : > { %v1492_v59 = vadd.f32 %v1491_v38, %v1490_v44  ;;  %v4845_v43 = vsub.f32 %v4843_v57, %v4844_v51  ;;  %v4848_v12 = vsub.f32 %v4846_v36, %v4847_v13  ;;  %v870_v54 = vmul.f32 %v830_v45, %v3535_v29  ;;  %v2887_v42 = vpop.eup %2886  ;;  %v4849_v45 = vld [vmem:[#allocation52_spill] sm:$0xff] }
 0x17d   : > { %v4220_v60 = vsel %vm1625_vm15, %v1568_v7, %v1636_v52  ;;  %v1138_v5 = vmul.f32 0.5, %v1137_v26  ;;  %v855_v56 = vmul.f32 %v785_v35, %v3535_v29  ;;  %v869_v2 = vmul.f32 %v827_v16, %v3535_v29  ;;  %v4850_v44 = vld [vmem:[#allocation60_spill] sm:$0xff] }
 0x17e   : > { %v4225_v0 = vmul.f32 %v1284_v30, %v4845_v43  ;;  %v1363_v49 = vmul.f32 %v1124_v55, %v4848_v12  ;;  %v1493_v31 = vrot.slane %v1492_v59, 2  ;;  %vm1142_vm9 = vweird.f32 %v2885_v1  ;;  %v4852_v55 = vld [vmem:[#allocation42_spill] sm:$0xff] }
 0x17f   : > { %v1146_v18 = vmul.f32 %v2887_v42, %v4194_v19  ;;  %vm1151_vm5 = vweird.f32 %v4194_v19  ;;  %v934_v24 = vsub.f32 %v870_v54, %v4184_v20  ;;  %v1498_v53 = vsel %vm579_vm1, %v1436_v58, 0.0  ;;  %vm1143_vm8 = vmor %vm1141_vm4, %vm1142_vm9  ;;  %v4851_v58 = vld [vmem:[#allocation20_spill] sm:$0xff] }
 0x180   : > { %v1399_v52 = vmul.f32 %v3842_v33, %v1363_v49  ;;  %v1494_v9 = vadd.f32 %v1493_v31, %v1492_v59  ;;  %v1139_v37 = vsub.f32 1.5, %v1138_v5  ;;  %v919_v10 = vsub.f32 %v855_v56, %v4849_v45  ;;  %v2889_v47 = vpop.eup %2888  ;;  %v836_v31 = vpop.xlane.xlu2 %835 }
 0x181   : > { %v1147_v48 = vmul.f32 %v2887_v42, %v1146_v18  ;;  %v966_v25 = vmax.f32 %v934_v24, 0.0  ;;  %v933_v8 = vsub.f32 %v869_v2, %v4850_v44  ;;  %v1286_v11 = vmul.f32 %v2889_v47, %v4207_v22 }
 0x182   : > { %v1435_v34 = vadd.f32 %v3856_v63, %v1399_v52  ;;  %v1495_v3 = vrot.slane %v1494_v9, 1  ;;  %v1140_v23 = vmul.f32 %v2885_v1, %v1139_v37  ;;  %vm1291_vm7 = vweird.f32 %v4207_v22  ;;  %v4860_v22 = vld [vmem:[#allocation58_spill] sm:$0xff] }
 0x183   : > { %v871_v20 = vmul.f32 %v833_v61, %v3535_v29  ;;  %v1148_v30 = vmul.f32 0.5, %v1147_v48  ;;  %v4248_v21 = vadd.f32 1e-05, %v966_v25  ;;  %v951_v14 = vmax.f32 %v919_v10, 0.0  ;;  %v4854_v61 = vld [vmem:[#allocation19_spill] sm:$0xff]  ;;  %v4857_v10 = vld [vmem:[#allocation40_spill] sm:$0xff] }
 0x184   : > { %v1497_v38 = vsel %vm579_vm1, %v1435_v34, 0.0  ;;  %v1496_v7 = vadd.f32 %v1495_v3, %v1494_v9  ;;  %v1144_v16 = vsel %vm1143_vm8, %v2885_v1, %v1140_v23  ;;  %v1287_v59 = vmul.f32 %v2889_v47, %v1286_v11  ;;  %v4855_v9 = vld [vmem:[#allocation41_spill] sm:$0xff]  ;;  %v788_v23 = vpop.xlane.xlu0 %787  ;;  %v4858_v11 = vld [vmem:[#allocation43_spill] sm:$0xff] }
 0x185   : > { %v1499_v35 = vadd.f32 %v1498_v53, %v1497_v38  ;;  %v4853_v26 = vsub.f32 %v4851_v58, %v4852_v55  ;;  %v1149_v51 = vsub.f32 1.5, %v1148_v30  ;;  %vm1152_vm10 = vweird.f32 %v2887_v42  ;;  %v4859_v38 = vld [vmem:[#allocation28_spill] sm:$0xff] }
 0x186   : > { %2890 = vrsqrt.f32 %v4248_v21  ;;  %v1626_v62 = vsel %vm1625_vm15, %v1496_v7, %v4098_v28  ;;  %v1288_v36 = vmul.f32 0.5, %v1287_v59  ;;  %v4256_v13 = vadd.f32 1e-05, %v951_v14  ;;  %vm1153_vm11 = vmor %vm1151_vm5, %vm1152_vm10 }
 0x187   : > { %v1365_v57 = vmul.f32 %v1144_v16, %v4853_v26  ;;  %v1500_v43 = vrot.slane %v1499_v35, 4  ;;  %v1150_v49 = vmul.f32 %v2887_v42, %v1149_v51  ;;  %v965_v1 = vmax.f32 %v933_v8, 0.0 }
 0x188   : > { %v935_v54 = vsub.f32 %v871_v20, %v4129_v32  ;;  %v1289_v56 = vsub.f32 1.5, %v1288_v36  ;;  %vm1292_vm12 = vweird.f32 %v2889_v47  ;;  %2892 = vrsqrt.f32 %v4256_v13 }
 0x189   : > { %v1401_v12 = vmul.f32 %v3842_v33, %v1365_v57  ;;  %v1501_v5 = vadd.f32 %v1500_v43, %v1499_v35  ;;  %v1154_v2 = vsel %vm1153_vm11, %v2887_v42, %v1150_v49  ;;  %v4264_v52 = vadd.f32 1e-05, %v965_v1  ;;  %vm1293_vm6 = vmor %vm1291_vm7, %vm1292_vm12 }
 0x18a   : > { %v967_v18 = vmax.f32 %v935_v54, 0.0  ;;  %v4856_v53 = vsub.f32 %v4854_v61, %v4855_v9  ;;  %v1290_v37 = vmul.f32 %v2889_v47, %v1289_v56  ;;  %v872_v45 = vmul.f32 %v836_v31, %v3535_v29 }
 0x18b   : > { %v1437_v28 = vadd.f32 %v3856_v63, %v1401_v12  ;;  %v1502_v24 = vrot.slane %v1501_v5, 2  ;;  %v4272_v34 = vmul.f32 %v3535_v29, %v4857_v10  ;;  %v1415_v48 = vmul.f32 %v3842_v33, %v4225_v0 }
 0x18c   : > { %v1366_v32 = vmul.f32 %v1154_v2, %v4856_v53  ;;  %v2891_v19 = vpop.eup %2890  ;;  %2894 = vrsqrt.f32 %v4264_v52  ;;  %v4279_v42 = vadd.f32 1e-05, %v967_v18  ;;  %v1294_v8 = vsel %vm1293_vm6, %v2889_v47, %v1290_v37  ;;  %v4862_v37 = vld [vmem:[#allocation51_spill] sm:$0xff] }
 0x18d   : > { %v1503_v25 = vadd.f32 %v1502_v24, %v1501_v5  ;;  %v1306_v3 = vmul.f32 %v2891_v19, %v4248_v21  ;;  %v4285_v20 = vmul.f32 %v3535_v29, %v4858_v11  ;;  %v1506_v0 = vsel %vm579_vm1, %v1437_v28, 0.0 }
 0x18e   : > { %v1402_v44 = vmul.f32 %v3842_v33, %v1366_v32  ;;  %v4861_v30 = vsub.f32 %v4859_v38, %v4860_v22  ;;  %2896 = vrsqrt.f32 %v4279_v42  ;;  %v4292_v7 = vpop.eup %2892  ;;  %v936_v59 = vsub.f32 %v872_v45, %v4028_v40 }
 0x18f   : > { %v1504_v35 = vrot.slane %v1503_v25, 1  ;;  %v1307_v16 = vmul.f32 %v2891_v19, %v1306_v3  ;;  %v1451_v58 = vadd.f32 %v3856_v63, %v1415_v48  ;;  %vm1627_vm13 = vcmask 1044484  }
 0x190   : > { %v1380_v14 = vmul.f32 %v1294_v8, %v4861_v30  ;;  %v1438_v47 = vadd.f32 %v3856_v63, %v1402_v44  ;;  %v1156_v26 = vmul.f32 %v4292_v7, %v4256_v13  ;;  %v856_v36 = vmul.f32 %v788_v23, %v3535_v29 }
 0x191   : > { %v1505_v57 = vadd.f32 %v1504_v35, %v1503_v25  ;;  %v1308_v43 = vmul.f32 0.5, %v1307_v16  ;;  %v968_v54 = vmax.f32 %v936_v59, 0.0  ;;  %vm1312_vm14 = vweird.f32 %v2891_v19  ;;  %v794_v35 = vpop.xlane.xlu1 %793 }
 0x192   : > { %v1416_v55 = vmul.f32 %v3842_v33, %v1380_v14  ;;  %v1507_v51 = vsel %vm579_vm1, %v1438_v47, 0.0  ;;  %v2895_v12 = vpop.eup %2894  ;;  %v1157_v40 = vmul.f32 %v4292_v7, %v1156_v26  ;;  %v1569_v28 = vsel %vm579_vm1, %v1451_v58, 0.0  ;;  %v4340_v58 = vld [vmem:[%s4697_s4] ss:$0 sm:$0xff] }
 0x193   : > { %v1508_v49 = vadd.f32 %v1507_v51, %v1506_v0  ;;  %v4305_v31 = vsel %vm1627_vm13, %v1505_v57, %v1626_v62  ;;  %v1309_v33 = vsub.f32 1.5, %v1308_v43  ;;  %v1296_v5 = vmul.f32 %v2895_v12, %v4264_v52 }
 0x194   : > { %v1452_v1 = vadd.f32 %v3856_v63, %v1416_v55  ;;  %v4308_v56 = vpop.eup %2896  ;;  %vm1311_vm15 = vweird.f32 %v4248_v21  ;;  %vm1629_vm0 = vcmask 1045509   ;;  %v1158_v53 = vmul.f32 0.5, %v1157_v40  ;;  %v791_v21 = vpop.xlane.xlu0 %790 }
 0x195   : > { %v1509_v2 = vrot.slane %v1508_v49, 4  ;;  %v1310_v24 = vmul.f32 %v2891_v19, %v1309_v33  ;;  %v1297_v61 = vmul.f32 %v2895_v12, %v1296_v5  ;;  %v1316_v62 = vmul.f32 %v4308_v56, %v4279_v42  ;;  %vm1313_vm2 = vmor %vm1311_vm15, %vm1312_vm14 }
 0x196   : > { %v1570_v18 = vsel %vm579_vm1, %v1452_v1, 0.0  ;;  %v4315_v32 = vadd.f32 1e-05, %v968_v54  ;;  %v920_v45 = vsub.f32 %v856_v36, %v4862_v37  ;;  %vm1301_vm3 = vweird.f32 %v4264_v52  ;;  %v4863_v36 = vld [vmem:[#allocation27_spill] sm:$0xff]  ;;  %v4864_v52 = vld [vmem:[#allocation57_spill] sm:$0xff] }
 0x197   : > { %v1571_v63 = vadd.f32 %v1570_v18, %v1569_v28  ;;  %v1510_v9 = vadd.f32 %v1509_v2, %v1508_v49  ;;  %v1314_v48 = vsel %vm1313_vm2, %v2891_v19, %v1310_v24  ;;  %v1298_v25 = vmul.f32 0.5, %v1297_v61  ;;  %v4327_v19 = vld [vmem:[%s4696_s3] ss:$0 sm:$0xff]  ;;  %v839_v28 = vpop.xlane.xlu2 %838 }
 0x198   : > { %v1317_v44 = vmul.f32 %v4308_v56, %v1316_v62  ;;  %v1382_v3 = vmul.f32 %v1314_v48, %v998_v17  ;;  %2898 = vrsqrt.f32 %v4315_v32  ;;  %vm1302_vm4 = vweird.f32 %v2895_v12 }
 0x199   : > { %v1572_v10 = vrot.slane %v1571_v63, 4  ;;  %v1511_v8 = vrot.slane %v1510_v9, 2  ;;  %v1299_v11 = vsub.f32 1.5, %v1298_v25  ;;  %v1159_v30 = vsub.f32 1.5, %v1158_v53  ;;  %vm1303_vm7 = vmor %vm1301_vm3, %vm1302_vm4 }
 0x19a   : > { %v1318_v0 = vmul.f32 0.5, %v1317_v44  ;;  %v1418_v22 = vmul.f32 %v4327_v19, %v1382_v3  ;;  %v952_v14 = vmax.f32 %v920_v45, 0.0  ;;  %vm1322_vm9 = vweird.f32 %v4308_v56  ;;  %v4870_v45 = vld [vmem:[#allocation55_spill] sm:$0xff] }
 0x19b   : > { %v1573_v23 = vadd.f32 %v1572_v10, %v1571_v63  ;;  %v1512_v38 = vadd.f32 %v1511_v8, %v1510_v9  ;;  %v1300_v15 = vmul.f32 %v2895_v12, %v1299_v11  ;;  %vm1162_vm5 = vweird.f32 %v4292_v7 }
 0x19c   : > { %v1319_v17 = vsub.f32 1.5, %v1318_v0  ;;  %vm1321_vm8 = vweird.f32 %v4279_v42  ;;  %v4335_v16 = vadd.f32 1e-05, %v952_v14  ;;  %v1454_v55 = vadd.f32 %v4340_v58, %v1418_v22  ;;  %v842_v9 = vpop.xlane.xlu0 %841 }
 0x19d   : > { %v1574_v41 = vrot.slane %v1573_v23, 2  ;;  %v1513_v47 = vrot.slane %v1512_v38, 1  ;;  %v1304_v26 = vsel %vm1303_vm7, %v2895_v12, %v1300_v15  ;;  %v4865_v49 = vsub.f32 %v4863_v36, %v4864_v52  ;;  %vm4349_vm10 = vmor %vm1321_vm8, %vm1322_vm9 }
 0x19e   : > { %v1320_v57 = vmul.f32 %v4308_v56, %v1319_v17  ;;  %v2899_v51 = vpop.eup %2898  ;;  %2900 = vrsqrt.f32 %v4335_v16  ;;  %v858_v40 = vmul.f32 %v794_v35, %v3535_v29  ;;  %v1160_v12 = vmul.f32 %v4292_v7, %v1159_v30  ;;  %v4872_v17 = vld [vmem:[#allocation24_spill] sm:$0xff]  ;;  %v4873_v35 = vld [vmem:[#allocation47_spill] sm:$0xff] }
 0x19f   : > { %v1575_v59 = vadd.f32 %v1574_v41, %v1573_v23  ;;  %v1514_v43 = vadd.f32 %v1513_v47, %v1512_v38  ;;  %v1381_v1 = vmul.f32 %v1304_v26, %v4865_v49  ;;  %v1326_v5 = vmul.f32 %v2899_v51, %v4315_v32  ;;  %v4871_v41 = vld [vmem:[#allocation50_spill] sm:$0xff] }
 0x1a0   : > { %v1324_v33 = vsel %vm4349_vm10, %v4308_v56, %v1320_v57  ;;  %v906_v2 = vmul.f32 %v4272_v34, %v4272_v34  ;;  %v905_v18 = vmul.f32 %v4285_v20, %v4285_v20  ;;  %v1579_v62 = vsel %vm579_vm1, %v1454_v55, 0.0 }
 0x1a1   : > { %v1576_v54 = vrot.slane %v1575_v59, 1  ;;  %v4366_v63 = vsel %vm1629_vm0, %v1514_v43, %v4305_v31  ;;  %v1417_v24 = vmul.f32 %v4327_v19, %v1381_v1  ;;  %vm1161_vm11 = vweird.f32 %v4256_v13 }
 0x1a2   : > { %v1327_v56 = vmul.f32 %v2899_v51, %v1326_v5  ;;  %vm4373_vm12 = vmor %vm1161_vm11, %vm1162_vm5  ;;  %v1383_v31 = vmul.f32 %v1324_v33, %v999_v50  ;;  %v922_v10 = vsub.f32 %v858_v40, %v4870_v45  ;;  %v873_v48 = vmul.f32 %v839_v28, %v3535_v29 }
 0x1a3   : > { %v1577_v61 = vadd.f32 %v1576_v54, %v1575_v59  ;;  %v1453_v37 = vadd.f32 %v4340_v58, %v1417_v24  ;;  %v1164_v25 = vsel %vm4373_vm12, %v4292_v7, %v1160_v12  ;;  %v857_v8 = vmul.f32 %v791_v21, %v3535_v29 }
 0x1a4   : > { %v1328_v44 = vmul.f32 0.5, %v1327_v56  ;;  %v2901_v3 = vpop.eup %2900  ;;  %v954_v39 = vmax.f32 %v922_v10, 0.0  ;;  %v937_v46 = vsub.f32 %v873_v48, %v905_v18  ;;  %v874_v50 = vmul.f32 %v842_v9, %v3535_v29 }
 0x1a5   : > { %v4385_v13 = vsel %vm1627_vm13, %v1577_v61, %v4220_v60  ;;  %v1578_v23 = vsel %vm579_vm1, %v1453_v37, 0.0  ;;  %vm1332_vm6 = vweird.f32 %v2899_v51  ;;  %v1166_v60 = vmul.f32 %v2901_v3, %v4335_v16 }
 0x1a6   : > { %v1580_v11 = vadd.f32 %v1579_v62, %v1578_v23  ;;  %v1329_v0 = vsub.f32 1.5, %v1328_v44  ;;  %v1419_v38 = vmul.f32 %v4327_v19, %v1383_v31  ;;  %vm1331_vm13 = vweird.f32 %v4315_v32  ;;  %v4878_v44 = vld [vmem:[#allocation25_spill] sm:$0xff]  ;;  %v4879_v23 = vld [vmem:[#allocation34_spill] sm:$0xff] }
 0x1a7   : > { %v4396_v7 = vadd.f32 1e-05, %v954_v39  ;;  %v969_v22 = vmax.f32 %v937_v46, 0.0  ;;  %v1167_v14 = vmul.f32 %v2901_v3, %v1166_v60  ;;  %v921_v15 = vsub.f32 %v857_v8, %v4871_v41  ;;  %vm1333_vm14 = vmor %vm1331_vm13, %vm1332_vm6 }
 0x1a8   : > { %v1581_v21 = vrot.slane %v1580_v11, 4  ;;  %v1330_v30 = vmul.f32 %v2899_v51, %v1329_v0  ;;  %v4874_v47 = vsub.f32 %v4872_v17, %v4873_v35  ;;  %v938_v26 = vsub.f32 %v874_v50, %v906_v2 }
 0x1a9   : > { %2902 = vrsqrt.f32 %v4396_v7  ;;  %v4403_v55 = vadd.f32 1e-05, %v969_v22  ;;  %v1168_v43 = vmul.f32 0.5, %v1167_v14  ;;  %v953_v36 = vmax.f32 %v921_v15, 0.0 }
 0x1aa   : > { %v1367_v59 = vmul.f32 %v1164_v25, %v4874_v47  ;;  %v1582_v57 = vadd.f32 %v1581_v21, %v1580_v11  ;;  %v1334_v32 = vsel %vm1333_vm14, %v2899_v51, %v1330_v30  ;;  %v1455_v52 = vadd.f32 %v4340_v58, %v1419_v38  ;;  %v4877_v25 = vld [vmem:[#allocation53_spill] sm:$0xff] }
 0x1ab   : > { %v1384_v49 = vmul.f32 %v1334_v32, %v1000_v27  ;;  %2904 = vrsqrt.f32 %v4403_v55  ;;  %v970_v1 = vmax.f32 %v938_v26, 0.0  ;;  %v1169_v40 = vsub.f32 1.5, %v1168_v43  ;;  %v4876_v27 = vld [vmem:[#allocation23_spill] sm:$0xff] }
 0x1ac   : > { %v1583_v42 = vrot.slane %v1582_v57, 2  ;;  %vm1172_vm15 = vweird.f32 %v2901_v3  ;;  %v4410_v54 = vadd.f32 1e-05, %v953_v36  ;;  %v1403_v12 = vmul.f32 %v4327_v19, %v1367_v59 }
 0x1ad   : > { %v1420_v51 = vmul.f32 %v4327_v19, %v1384_v49  ;;  %v4414_v33 = vadd.f32 1e-05, %v970_v1  ;;  %v1170_v28 = vmul.f32 %v2901_v3, %v1169_v40  ;;  %vm1171_vm2 = vweird.f32 %v4335_v16 }
 0x1ae   : > { %v1584_v5 = vadd.f32 %v1583_v42, %v1582_v57  ;;  %2906 = vrsqrt.f32 %v4410_v54  ;;  %v984_v2 = vsub.f32 %v4876_v27, %v4875_v6  ;;  %v1587_v18 = vsel %vm579_vm1, %v1455_v52, 0.0  ;;  %vm1173_vm3 = vmor %vm1171_vm2, %vm1172_vm15  ;;  %v4880_v27 = vld [vmem:[#allocation45_spill] sm:$0xff] }
 0x1af   : > { %v2903_v4 = vpop.eup %2902  ;;  %v1456_v24 = vadd.f32 %v4340_v58, %v1420_v51  ;;  %2908 = vrsqrt.f32 %v4414_v33  ;;  %v1174_v62 = vsel %vm1173_vm3, %v2901_v3, %v1170_v28  ;;  %v1439_v16 = vadd.f32 %v4340_v58, %v1403_v12 }
 0x1b0   : > { %v1585_v61 = vrot.slane %v1584_v5, 1  ;;  %v1186_v56 = vmul.f32 %v2903_v4, %v4396_v7  ;;  %v1368_v37 = vmul.f32 %v1174_v62, %v984_v2  ;;  %v986_v8 = vsub.f32 %v4878_v44, %v4877_v25  ;;  %v4881_v2 = vld [vmem:[#allocation22_spill] sm:$0xff] }
 0x1b1   : > { %v2905_v9 = vpop.eup %2904  ;;  %v1588_v53 = vsel %vm579_vm1, %v1456_v24, 0.0  ;;  %v1001_v39 = vsub.f32 %v4879_v23, %v4285_v20  ;;  %v1515_v22 = vsel %vm579_vm1, %v1439_v16, 0.0  ;;  %vm1631_vm4 = vcmask 1046534  }
 0x1b2   : > { %v1586_v31 = vadd.f32 %v1585_v61, %v1584_v5  ;;  %v1589_v45 = vadd.f32 %v1588_v53, %v1587_v18  ;;  %v1187_v10 = vmul.f32 %v2903_v4, %v1186_v56  ;;  %v1336_v48 = vmul.f32 %v2905_v9, %v4403_v55 }
 0x1b3   : > { %v1404_v3 = vmul.f32 %v4327_v19, %v1368_v37  ;;  %vm1192_vm9 = vweird.f32 %v2903_v4  ;;  %vm1342_vm5 = vweird.f32 %v2905_v9  ;;  %vm1341_vm8 = vweird.f32 %v4403_v55 }
 0x1b4   : > { %v2907_v46 = vpop.eup %2906  ;;  %v1639_v50 = vsel %vm1629_vm0, %v1586_v31, %v4385_v13  ;;  %v1590_v11 = vrot.slane %v1589_v45, 4  ;;  %v1188_v0 = vmul.f32 0.5, %v1187_v10  ;;  %v1337_v60 = vmul.f32 %v2905_v9, %v1336_v48  ;;  %vm1343_vm11 = vmor %vm1341_vm8, %vm1342_vm5 }
 0x1b5   : > { %v2909_v38 = vpop.eup %2908  ;;  %v1440_v21 = vadd.f32 %v4340_v58, %v1404_v3  ;;  %v1176_v30 = vmul.f32 %v2907_v46, %v4410_v54  ;;  %vm1191_vm0 = vweird.f32 %v4396_v7  ;;  %vm1181_vm10 = vweird.f32 %v4410_v54 }
 0x1b6   : > { %v1591_v14 = vadd.f32 %v1590_v11, %v1589_v45  ;;  %v1189_v20 = vsub.f32 1.5, %v1188_v0  ;;  %v1338_v41 = vmul.f32 0.5, %v1337_v60  ;;  %v1346_v15 = vmul.f32 %v2909_v38, %v4414_v33  ;;  %vm1193_vm7 = vmor %vm1191_vm0, %vm1192_vm9 }
 0x1b7   : > { %v1516_v17 = vsel %vm579_vm1, %v1440_v21, 0.0  ;;  %v1177_v13 = vmul.f32 %v2907_v46, %v1176_v30  ;;  %vm1182_vm12 = vweird.f32 %v2907_v46  ;;  %vm1352_vm6 = vweird.f32 %v2909_v38 }
 0x1b8   : > { %v1592_v35 = vrot.slane %v1591_v14, 2  ;;  %v1517_v47 = vadd.f32 %v1516_v17, %v1515_v22  ;;  %v1190_v59 = vmul.f32 %v2903_v4, %v1189_v20  ;;  %v1339_v26 = vsub.f32 1.5, %v1338_v41  ;;  %vm1183_vm13 = vmor %vm1181_vm10, %vm1182_vm12 }
 0x1b9   : > { %v1178_v57 = vmul.f32 0.5, %v1177_v13  ;;  %v1347_v32 = vmul.f32 %v2909_v38, %v1346_v15  ;;  %v985_v18 = vsub.f32 %v4881_v2, %v4880_v27  ;;  %vm1351_vm14 = vweird.f32 %v4414_v33 }
 0x1ba   : > { %v1593_v43 = vadd.f32 %v1592_v35, %v1591_v14  ;;  %v1518_v36 = vrot.slane %v1517_v47, 4  ;;  %v1194_v52 = vsel %vm1193_vm7, %v2903_v4, %v1190_v59  ;;  %v1340_v49 = vmul.f32 %v2905_v9, %v1339_v26  ;;  %v4882_v4 = vld [vmem:[#allocation33_spill] sm:$0xff]  ;;  %vm1353_vm15 = vmor %vm1351_vm14, %vm1352_vm6  ;;  %v1460_v35 = vld [vmem:[#allocation2 + $0x8] sm:$0xff] }
 0x1bb   : > { %v1370_v1 = vmul.f32 %v1194_v52, %v986_v8  ;;  %v1179_v7 = vsub.f32 1.5, %v1178_v57  ;;  %v1348_v42 = vmul.f32 0.5, %v1347_v32  ;;  %v1002_v24 = vsub.f32 %v4882_v4, %v4272_v34 }
 0x1bc   : > { %v1594_v40 = vrot.slane %v1593_v43, 1  ;;  %v1519_v12 = vadd.f32 %v1518_v36, %v1517_v47  ;;  %v1344_v51 = vsel %vm1343_vm11, %v2905_v9, %v1340_v49  ;;  %vm1633_vm2 = vcmask 1047559  }
 0x1bd   : > { %v1406_v55 = vmul.f32 %v4327_v19, %v1370_v1  ;;  %v1385_v5 = vmul.f32 %v1344_v51, %v1001_v39  ;;  %v1180_v28 = vmul.f32 %v2907_v46, %v1179_v7  ;;  %v1349_v6 = vsub.f32 1.5, %v1348_v42 }
 0x1be   : > { %v1595_v61 = vadd.f32 %v1594_v40, %v1593_v43  ;;  %v1520_v62 = vrot.slane %v1519_v12, 2 }
 0x1bf   : > { %v1442_v56 = vadd.f32 %v4340_v58, %v1406_v55  ;;  %v1184_v9 = vsel %vm1183_vm13, %v2907_v46, %v1180_v28  ;;  %v1350_v16 = vmul.f32 %v2909_v38, %v1349_v6  ;;  %v1421_v31 = vmul.f32 %v4327_v19, %v1385_v5 }
 0x1c0   : > { %v1640_v53 = vsel %vm1631_vm4, %v1595_v61, %v1639_v50  ;;  %v1521_v37 = vadd.f32 %v1520_v62, %v1519_v12  ;;  %v1369_v45 = vmul.f32 %v1184_v9, %v985_v18 }
 0x1c1   : > { %v1354_v34 = vsel %vm1353_vm15, %v2909_v38, %v1350_v16  ;;  %v1525_v25 = vsel %vm579_vm1, %v1442_v56, 0.0  ;;  %v1457_v8 = vadd.f32 %v4340_v58, %v1421_v31 }
 0x1c2   : > { %v1522_v10 = vrot.slane %v1521_v37, 1  ;;  %v1405_v48 = vmul.f32 %v4327_v19, %v1369_v45  ;;  %v1386_v54 = vmul.f32 %v1354_v34, %v1002_v24 }
 0x1c3   : > { %v1596_v11 = vsel %vm579_vm1, %v1457_v8, 0.0 }
 0x1c4   : > { %v1523_v44 = vadd.f32 %v1522_v10, %v1521_v37  ;;  %v1441_v33 = vadd.f32 %v4340_v58, %v1405_v48  ;;  %v1422_v23 = vmul.f32 %v4327_v19, %v1386_v54 }
 0x1c6   : > { %v1632_v39 = vsel %vm1631_vm4, %v1523_v44, %v4366_v63  ;;  %v1524_v3 = vsel %vm579_vm1, %v1441_v33, 0.0  ;;  %v1458_v46 = vadd.f32 %v4340_v58, %v1422_v23  ;;  %v1459_v63 = vld [vmem:[#allocation2] sm:$0xff] }
 0x1c7   : > { %v1526_v50 = vadd.f32 %v1525_v25, %v1524_v3 }
 0x1c8   : > { %v1597_v0 = vsel %vm579_vm1, %v1458_v46, 0.0 }
 0x1c9   : > { %v1527_v60 = vrot.slane %v1526_v50, 4  ;;  %v1598_v38 = vadd.f32 %v1597_v0, %v1596_v11 }
 0x1cb   : > { %v1528_v22 = vadd.f32 %v1527_v60, %v1526_v50  ;;  %v1599_v21 = vrot.slane %v1598_v38, 4 }
 0x1cd   : > { %v1529_v30 = vrot.slane %v1528_v22, 2  ;;  %v1600_v14 = vadd.f32 %v1599_v21, %v1598_v38 }
 0x1cf   : > { %v1530_v20 = vadd.f32 %v1529_v30, %v1528_v22  ;;  %v1601_v19 = vrot.slane %v1600_v14, 2 }
 0x1d1   : > { %v1531_v41 = vrot.slane %v1530_v20, 1  ;;  %v1602_v15 = vadd.f32 %v1601_v19, %v1600_v14 }
 0x1d3   : > { %v1532_v17 = vadd.f32 %v1531_v41, %v1530_v20  ;;  %v1603_v13 = vrot.slane %v1602_v15, 1 }
 0x1d5   : > { %v1634_v58 = vsel %vm1633_vm2, %v1532_v17, %v1632_v39  ;;  %v1604_v47 = vadd.f32 %v1603_v13, %v1602_v15 }
 0x1d6   : > { %v1644_v59 = vadd.f32 %v1634_v58, %v1459_v63  ;;  %1651 = sbr.rel (%p2605_p0) target bundleno = 2580 (0xa14), region = 92 }
 0x1d7   : > { %v1641_v26 = vsel %vm1633_vm2, %v1604_v47, %v1640_v53 }
 0x1d8   : > { %1646 = vst.msk [vmem:[#allocation2] sm:$0xff] %vm579_vm1, %v1644_v59  ;;  %v1645_v57 = vadd.f32 %v1641_v26, %v1460_v35 }
 0x1da   : > { %1647 = vst.msk [vmem:[#allocation2 + $0x8] sm:$0xff] %vm579_vm1, %v1645_v57 }
 0x1db   : > { %v2672_v32 = vld [vmem:[#allocation5 + $0x8] sm:$0xff]  ;;  %v3064_v36 = vmov 0   ;;  %v1656_v1 = vld [vmem:[%s4694_s1] sm:$0xff]  ;;  %v3065_v7 = vmov 1   ;;  %v2671_v42 = vld [vmem:[#allocation5] sm:$0xff] }
 0x1dc   : > { %2912 = vset.pattern.permute.xlu0 %v3064_v36  ;;  %2913 = vset.pattern.permute.xlu1 %v3065_v7  ;;  %v1657_v51 = vld [vmem:[%s4694_s1 + $0x8] sm:$0xff]  ;;  %v1709_v55 = vld [vmem:[%s4699_s6] sm:$0x3]  ;;  %v2674_v0 = vld [vmem:[#allocation7 + $0x8] sm:$0xff] }
 0x1dd   : > { %1734 = vmatpush.bf16.msra.mxu0 %v2672_v32  ;;  %1660 = vperm.xlu0 %2912, %v1656_v1   ;;  %v1710_v5 = vperm.slane %v1709_v55, 0  ;;  %v1742_v6 = vperm.slane %v1709_v55, 1  ;;  %v2915_v61 = vld [vmem:[%s4700_s7] ss:$0 sm:$0xff]  ;;  %v2673_v38 = vld [vmem:[#allocation7] sm:$0xff] }
 0x1de   : > { %1669 = vperm.xlu1 %2913, %v1656_v1   ;;  %1929 = vmatpush.bf16.msra.mxu1 %v2674_v0  ;;  %v2917_v1 = vld [vmem:[%s4702_s9] ss:$0 sm:$0xff] }
 0x1df   : > { %v1652_v43 = vld [vmem:[#allocation2] sm:$0xff] }
 0x1e0   : > { %v1654_v49 = vmul.f32 0.03125, %v1652_v43  ;;  %v2916_v43 = vld [vmem:[%s4701_s8] ss:$0 sm:$0xff] }
 0x1e1   : > { %v1653_v52 = vld [vmem:[#allocation2 + $0x8] sm:$0xff]  ;;  %1735 = vmatpush.bf16.msra.mxu0 %v2671_v42 }
 0x1e2   : > { %v1655_v40 = vmul.f32 0.03125, %v1653_v52  ;;  %1930 = vmatpush.bf16.msra.mxu1 %v2673_v38 }
 0x1e4   : > { %v1704_v12 = vpack.c.bf16 %v1655_v40, %v1654_v49 }
 0x1e5   : > { %1665 = vperm.xlu0 %2912, %v1657_v51  }
 0x1e6   : > { %2620 = vmatmul.msk.bf16.vlgmr.msra.gmra.mxu0 %vm579_vm1, %v1704_v12  ;;  %1673 = vperm.xlu1 %2913, %v1657_v51  }
 0x1ed   : > { %2914 = vset.pattern.permute.xlu0 %v3065_v7 }
 0x24f   : > { %v4479_v28 = vpop.permute.xlu0 %1660 }
 0x250   : > { %v4481_v27 = vpop.permute.xlu1 %1669  ;;  %v1711_v2 = vmul.f32 %v1710_v5, %v4479_v28 }
 0x251   : > { %v1743_v18 = vmul.f32 %v1742_v6, %v4481_v27 }
 0x257   : > { %v4488_v56 = vpop.permute.xlu0 %1665 }
 0x258   : > { %v4490_v16 = vpop.permute.xlu1 %1673  ;;  %v1712_v53 = vmul.f32 %v1710_v5, %v4488_v56 }
 0x259   : > { %v1744_v34 = vmul.f32 %v1742_v6, %v4490_v16 }
 0x263   : > { %v1737_v4 = vpop.f32.mrf.mxu0 }
 0x264   : > { %v1738_v24 = vadd.f32 %v1737_v4, %v1711_v2 }
 0x266   : > { %v1745_v62 = vadd.f32 %v1743_v18, %v1738_v24 }
 0x268   : > { %v1751_v9 = vadd.f32 %v2915_v61, %v1745_v62 }
 0x26a   : > { %v1753_v37 = vsel %vm579_vm1, %v1751_v9, 0.0  ;;  %v1761_v31 = vmul.f32 %v1751_v9, %v1751_v9 }
 0x26b   : > { %v1739_v45 = vpop.f32.mrf.mxu0  ;;  %1754 = vadd.xlane.f32.xlu2 %v1753_v37 }
 0x26c   : > { %v1740_v10 = vadd.f32 %v1739_v45, %v1712_v53  ;;  %v1763_v48 = vsel %vm579_vm1, %v1761_v31, 0.0 }
 0x26d   : > { %1764 = vadd.xlane.f32.xlu0 %v1763_v48 }
 0x26e   : > { %v1746_v54 = vadd.f32 %v1744_v34, %v1740_v10 }
 0x270   : > { %v1752_v25 = vadd.f32 %v2915_v61, %v1746_v54 }
 0x272   : > { %v1756_v44 = vsel %vm579_vm1, %v1752_v25, 0.0  ;;  %v1762_v8 = vmul.f32 %v1752_v25, %v1752_v25 }
 0x273   : > { %1757 = vadd.xlane.f32.xlu2 %v1756_v44 }
 0x274   : > { %v1766_v33 = vsel %vm579_vm1, %v1762_v8, 0.0 }
 0x275   : > { %1767 = vadd.xlane.f32.xlu1 %v1766_v33 }
 0x2de   : > { %v1755_v23 = vpop.xlane.xlu2 %1754 }
 0x2df   : > { %v1759_v39 = vmul.f32 %v1755_v23, %v3535_v29 }
 0x2e0   : > { %v1765_v3 = vpop.xlane.xlu0 %1764 }
 0x2e1   : > { %v1771_v46 = vmul.f32 %v1759_v39, %v1759_v39  ;;  %v1769_v50 = vmul.f32 %v1765_v3, %v3535_v29  ;;  %v1777_v57 = vsub.f32 %v1751_v9, %v1759_v39 }
 0x2e3   : > { %v1773_v11 = vsub.f32 %v1769_v50, %v1771_v46 }
 0x2e5   : > { %v1775_v60 = vmax.f32 %v1773_v11, 0.0 }
 0x2e6   : > { %v1758_v22 = vpop.xlane.xlu2 %1757 }
 0x2e7   : > { %v1779_v21 = vadd.f32 1e-05, %v1775_v60  ;;  %v1760_v30 = vmul.f32 %v1758_v22, %v3535_v29 }
 0x2e8   : > { %v1768_v14 = vpop.xlane.xlu1 %1767 }
 0x2e9   : > { %2924 = vrsqrt.f32 %v1779_v21  ;;  %v1772_v20 = vmul.f32 %v1760_v30, %v1760_v30  ;;  %v1770_v19 = vmul.f32 %v1768_v14, %v3535_v29  ;;  %vm1787_vm4 = vweird.f32 %v1779_v21 }
 0x2ea   : > { %v1778_v5 = vsub.f32 %v1752_v25, %v1760_v30 }
 0x2eb   : > { %v1774_v41 = vsub.f32 %v1770_v19, %v1772_v20 }
 0x2ed   : > { %v1776_v15 = vmax.f32 %v1774_v41, 0.0 }
 0x2ef   : > { %v2925_v63 = vpop.eup %2924  ;;  %v1780_v13 = vadd.f32 1e-05, %v1776_v15 }
 0x2f0   : > { %v1782_v17 = vmul.f32 %v2925_v63, %v1779_v21  ;;  %vm1788_vm3 = vweird.f32 %v2925_v63 }
 0x2f1   : > { %2926 = vrsqrt.f32 %v1780_v13  ;;  %vm1789_vm9 = vmor %vm1787_vm4, %vm1788_vm3  ;;  %vm1797_vm5 = vweird.f32 %v1780_v13  ;;  %vm1948_vm3 = vcmask 1043456   ;;  %vm1944_vm4 = vcmask 64512  }
 0x2f2   : > { %v1783_v58 = vmul.f32 %v2925_v63, %v1782_v17 }
 0x2f4   : > { %v1784_v35 = vmul.f32 0.5, %v1783_v58 }
 0x2f6   : > { %v1785_v47 = vsub.f32 1.5, %v1784_v35 }
 0x2f7   : > { %v2927_v59 = vpop.eup %2926 }
 0x2f8   : > { %v1786_v26 = vmul.f32 %v2925_v63, %v1785_v47  ;;  %v1792_v32 = vmul.f32 %v2927_v59, %v1780_v13  ;;  %vm1798_vm0 = vweird.f32 %v2927_v59 }
 0x2f9   : > { %vm1799_vm7 = vmor %vm1797_vm5, %vm1798_vm0 }
 0x2fa   : > { %v1790_v36 = vsel %vm1789_vm9, %v2925_v63, %v1786_v26  ;;  %v1793_v52 = vmul.f32 %v2927_v59, %v1792_v32 }
 0x2fb   : > { %v1801_v49 = vmul.f32 %v1790_v36, %v1777_v57 }
 0x2fc   : > { %v1794_v7 = vmul.f32 0.5, %v1793_v52 }
 0x2fd   : > { %v1807_v42 = vmul.f32 %v2916_v43, %v1801_v49 }
 0x2fe   : > { %v1795_v40 = vsub.f32 1.5, %v1794_v7 }
 0x2ff   : > { %v4508_v12 = vadd.f32 %v2917_v1, %v1807_v42 }
 0x300   : > { %v1796_v51 = vmul.f32 %v2927_v59, %v1795_v40 }
 0x301   : > { %v4511_v55 = vmul.f32 0.70710677, %v4508_v12 }
 0x302   : > { %v1800_v6 = vsel %vm1799_vm7, %v2927_v59, %v1796_v51 }
 0x303   : > { %v1819_v2 = vmul.f32 %v4511_v55, %v4511_v55  ;;  %v1802_v18 = vmul.f32 %v1800_v6, %v1778_v5 }
 0x305   : > { %v1820_v4 = vmin.f32 %v1819_v2, 16.0  ;;  %v1808_v24 = vmul.f32 %v2916_v43, %v1802_v18 }
 0x307   : > { %v1821_v61 = vmul.f32 2.1237322e-06, %v1820_v4  ;;  %v1832_v62 = vmul.f32 3.8918573e-05, %v1820_v4  ;;  %v4515_v9 = vadd.f32 %v2917_v1, %v1808_v24 }
 0x309   : > { %v1822_v53 = vadd.f32 0.00028619796, %v1821_v61  ;;  %v1833_v37 = vadd.f32 0.001143296, %v1832_v62  ;;  %v4518_v31 = vmul.f32 0.70710677, %v4515_v9 }
 0x30b   : > { %v1834_v45 = vmul.f32 %v1833_v37, %v1820_v4  ;;  %v1859_v34 = vmul.f32 %v4518_v31, %v4518_v31  ;;  %v1823_v10 = vmul.f32 %v1822_v53, %v1820_v4 }
 0x30d   : > { %v1835_v48 = vadd.f32 0.014752088, %v1834_v45  ;;  %v1860_v54 = vmin.f32 %v1859_v34, 16.0  ;;  %v1824_v33 = vadd.f32 0.0036580483, %v1823_v10 }
 0x30f   : > { %v1836_v25 = vmul.f32 %v1835_v48, %v1820_v4  ;;  %v1861_v44 = vmul.f32 2.1237322e-06, %v1860_v54  ;;  %v1872_v8 = vmul.f32 3.8918573e-05, %v1860_v54  ;;  %v1825_v0 = vmul.f32 %v1824_v33, %v1820_v4 }
 0x311   : > { %v1837_v23 = vadd.f32 0.112945676, %v1836_v25  ;;  %v1862_v39 = vadd.f32 0.00028619796, %v1861_v44  ;;  %v1873_v3 = vadd.f32 0.001143296, %v1872_v8 }
 0x312   : > { %v1826_v14 = vadd.f32 0.05243302, %v1825_v0 }
 0x313   : > { %v1838_v46 = vmul.f32 %v1837_v23, %v1820_v4  ;;  %v1863_v50 = vmul.f32 %v1862_v39, %v1860_v54  ;;  %v1874_v11 = vmul.f32 %v1873_v3, %v1860_v54  ;;  %v1815_v23 = vmul.f32 0.5, %v4508_v12 }
 0x314   : > { %v1827_v63 = vmul.f32 %v1826_v14, %v1820_v4  ;;  %v1816_v39 = vmul.f32 0.5, %v4515_v9 }
 0x315   : > { %v1839_v60 = vadd.f32 0.4994258, %v1838_v46  ;;  %v1864_v38 = vadd.f32 0.0036580483, %v1863_v50  ;;  %v1875_v22 = vadd.f32 0.014752088, %v1874_v11 }
 0x316   : > { %v1828_v47 = vadd.f32 0.18741608, %v1827_v63 }
 0x317   : > { %v1840_v21 = vmul.f32 %v1839_v60, %v1820_v4  ;;  %v1876_v30 = vmul.f32 %v1875_v22, %v1860_v54  ;;  %v1865_v19 = vmul.f32 %v1864_v38, %v1860_v54 }
 0x318   : > { %v1829_v43 = vmul.f32 %v1828_v47, %v1820_v4 }
 0x319   : > { %v1841_v20 = vadd.f32 1.0, %v1840_v21  ;;  %v1877_v41 = vadd.f32 0.112945676, %v1876_v30  ;;  %v1866_v17 = vadd.f32 0.05243302, %v1865_v19 }
 0x31a   : > { %v1830_v42 = vadd.f32 1.1283791, %v1829_v43  ;;  %v2759_v30 = vld [vmem:[%s4695_s2] sm:$0xf]  }
 0x31b   : > { %2928 = vrcp.f32 %v1841_v20  ;;  %v1878_v15 = vmul.f32 %v1877_v41, %v1860_v54  ;;  %v1867_v26 = vmul.f32 %v1866_v17, %v1860_v54  ;;  %v1853_v52 = vand.u32 2147483648, %v1841_v20 }
 0x31c   : > { %v1851_v1 = vand.u32 2147483647, %v1841_v20  ;;  %vm1847_vm10 = vweird.f32 %v1841_v20  ;;  %v1831_v24 = vmul.f32 %v1830_v42, %v4511_v55  ;;  %v2760_v14 = vunpack.c.0.s8 %v2759_v30 }
 0x31d   : > { %v1879_v13 = vadd.f32 0.4994258, %v1878_v15  ;;  %v1868_v49 = vadd.f32 0.18741608, %v1867_v26  ;;  %v1854_v5 = vor.u32 1.1754944e-38, %v1853_v52  ;;  %v2761_v41 = vunpack.c.1.s8 %v2759_v30 }
 0x31e   : > { %vm1852_vm12 = vcmp.eq.f32.partialorder %v1851_v1, 8.507059e+37  ;;  %vm1680_vm2 = vcmp.eq.s32.totalorder %v2760_v14, 1  ;;  %vm1688_vm0 = vcmp.eq.s32.totalorder %v2760_v14, 2  ;;  %vm1696_vm7 = vcmp.eq.s32.totalorder %v2760_v14, 3 }
 0x31f   : > { %v1880_v58 = vmul.f32 %v1879_v13, %v1860_v54  ;;  %v1869_v6 = vmul.f32 %v1868_v49, %v1860_v54  ;;  %vm1681_vm9 = vcmp.eq.s32.totalorder %v2761_v41, 1  ;;  %vm1689_vm5 = vcmp.eq.s32.totalorder %v2761_v41, 2 }
 0x321   : > { %v2929_v35 = vpop.eup %2928  ;;  %v1881_v57 = vadd.f32 1.0, %v1880_v58  ;;  %v1870_v4 = vadd.f32 1.1283791, %v1869_v6 }
 0x322   : > { %v1843_v59 = vmul.f32 %v2929_v35, %v1841_v20  ;;  %vm1848_vm8 = vweird.f32 %v2929_v35  ;;  %v3069_v20 = vmov 0.0  }
 0x323   : > { %2930 = vrcp.f32 %v1881_v57  ;;  %vm1849_vm11 = vmor %vm1847_vm10, %vm1848_vm8  ;;  %v1893_v62 = vand.u32 2147483648, %v1881_v57  ;;  %v1891_v45 = vand.u32 2147483647, %v1881_v57  ;;  %vm1887_vm13 = vweird.f32 %v1881_v57 }
 0x324   : > { %v1844_v32 = vsub.f32 1.0, %v1843_v59  ;;  %v1871_v25 = vmul.f32 %v1870_v4, %v4518_v31  ;;  %v2606_v19 = vsel %vm1680_vm2, 1.0, %v3069_v20  ;;  %v2607_v13 = vsel %vm1681_vm9, 1.0, %v3069_v20 }
 0x325   : > { %v1894_v10 = vor.u32 1.1754944e-38, %v1893_v62  ;;  %vm1892_vm15 = vcmp.eq.f32.partialorder %v1891_v45, 8.507059e+37  ;;  %v4545_v17 = vpack.c.bf16 %v2606_v19, %v2606_v19  ;;  %v4550_v47 = vpack.c.bf16 %v2607_v13, %v2607_v13 }
 0x326   : > { %v1845_v36 = vmul.f32 %v2929_v35, %v1844_v32  ;;  %v2608_v59 = vsel %vm1688_vm0, 1.0, %v3069_v20  ;;  %v2609_v43 = vsel %vm1689_vm5, 1.0, %v3069_v20  ;;  %vm1697_vm8 = vcmp.eq.s32.totalorder %v2761_v41, 3 }
 0x327   : > { %v4555_v32 = vpack.c.bf16 %v2608_v59, %v2608_v59  ;;  %v4561_v42 = vpack.c.bf16 %v2609_v43, %v2609_v43 }
 0x328   : > { %v1846_v7 = vadd.f32 %v2929_v35, %v1845_v36  ;;  %v2610_v36 = vsel %vm1696_vm7, 1.0, %v3069_v20 }
 0x329   : > { %v2931_v40 = vpop.eup %2930 }
 0x32a   : > { %v1850_v51 = vsel %vm1849_vm11, %v2929_v35, %v1846_v7  ;;  %v1883_v2 = vmul.f32 %v2931_v40, %v1881_v57  ;;  %vm1888_vm6 = vweird.f32 %v2931_v40 }
 0x32b   : > { %v1855_v18 = vsel %vm1852_vm12, %v1854_v5, %v1850_v51  ;;  %vm1889_vm14 = vmor %vm1887_vm13, %vm1888_vm6  ;;  %v2611_v51 = vsel %vm1697_vm8, 1.0, %v3069_v20 }
 0x32c   : > { %v1884_v61 = vsub.f32 1.0, %v1883_v2  ;;  %v1856_v53 = vmul.f32 %v1855_v18, %v1831_v24  ;;  %v4570_v2 = vpack.c.bf16 %v2611_v51, %v2611_v51  ;;  %v2676_v18 = vld [vmem:[#allocation5 + $0x18] sm:$0xff]  ;;  %v2675_v24 = vld [vmem:[#allocation5 + $0x10] sm:$0xff] }
 0x32e   : > { %v1885_v37 = vmul.f32 %v2931_v40, %v1884_v61  ;;  %v2621_v48 = vclamps-f32 %v1856_v53, 1.0 }
 0x330   : > { %v1886_v34 = vadd.f32 %v2931_v40, %v1885_v37  ;;  %v1899_v55 = vadd.f32 1.0, %v2621_v48 }
 0x332   : > { %v1890_v54 = vsel %vm1889_vm14, %v2931_v40, %v1886_v34  ;;  %v1901_v46 = vmul.f32 %v1899_v55, %v1815_v23  ;;  %v4563_v40 = vpack.c.bf16 %v2610_v36, %v2610_v36 }
 0x333   : > { %v1895_v44 = vsel %vm1892_vm15, %v1894_v10, %v1890_v54 }
 0x334   : > { %v1896_v8 = vmul.f32 %v1895_v44, %v1871_v25 }
 0x336   : > { %v2622_v33 = vclamps-f32 %v1896_v8, 1.0 }
 0x338   : > { %v1900_v3 = vadd.f32 1.0, %v2622_v33 }
 0x33a   : > { %v1902_v50 = vmul.f32 %v1900_v3, %v1816_v39 }
 0x33c   : > { %v1903_v11 = vpack.c.bf16 %v1902_v50, %v1901_v46  ;;  %v2638_v50 = vld [vmem:[%s4699_s6 + $0x2] sm:$0x3] }
 0x33e   : > { %2631 = vmatmul.msk.bf16.vlgmr.msra.gmra.mxu1 %vm579_vm1, %v1903_v11  ;;  %v2087_v11 = vperm.slane %v2638_v50, 0 }
 0x340   : > { %v2089_v30 = vmul.f32 %v2087_v11, %v4488_v56 }
 0x3bb   : > { %v4527_v0 = vpop.f32.mrf.mxu1 }
 0x3bc   : > { %v1937_v31 = vpack.c.bf16 %v4527_v0, %v4527_v0 }
 0x3be   : > { %v1940_v60 = vunpack.c.l.b16 %v1937_v31  ;;  %v2088_v31 = vmul.f32 %v2087_v11, %v4479_v28 }
 0x3c0   : > { %v1941_v38 = vpack.c.b16 %v1940_v60, %v1940_v60 }
 0x3c2   : > { %2035 = vrot.lane.b32.xlu0 %v1941_v38, %s3066_s21  ;;  %1942 = vrot.lane.b32.xlu2 %v1941_v38, %s3067_s30 }
 0x3c3   : > { %v4533_v12 = vpop.f32.mrf.mxu1 }
 0x3c4   : > { %v1938_v9 = vpack.c.bf16 %v4533_v12, %v4533_v12 }
 0x3c6   : > { %v1966_v22 = vunpack.c.l.b16 %v1938_v9  ;;  %v2918_v9 = vld [vmem:[%s4700_s7 + $0x1] ss:$0 sm:$0xff] }
 0x3c8   : > { %v1967_v21 = vpack.c.b16 %v1966_v22, %v1966_v22 }
 0x3ca   : > { %2056 = vrot.lane.b32.xlu1 %v1967_v21, %s3066_s21  ;;  %1968 = vrot.lane.b32.xlu2 %v1967_v21, %s3067_s30 }
 0x3d2   : > { %1991 = vrot.lane.b32.xlu2 %v1941_v38, %s3068_s24 }
 0x3da   : > { %2012 = vrot.lane.b32.xlu2 %v1967_v21, %s3068_s24 }
 0x41c   : > { %v1943_v15 = vpop.permute.xlu2 %1942 }
 0x41d   : > { %v1950_v63 = vsel %vm1948_vm3, %v1943_v15, 0 }
 0x41e   : > { %1959 = vmatpush.bf16.msra.mxu2 %v1950_v63 }
 0x421   : > { %2632 = vmatmul.msk.bf16.vlgmr.msra.gmra.mxu2 %vm1944_vm4, %v4545_v17 }
 0x424   : > { %v1969_v58 = vpop.permute.xlu2 %1968 }
 0x425   : > { %v1974_v35 = vsel %vm1948_vm3, %v1969_v58, 0 }
 0x426   : > { %1983 = vmatpush.bf16.msra.mxu3 %v1974_v35 }
 0x429   : > { %2633 = vmatmul.msk.bf16.vlgmr.msra.gmra.mxu3 %vm1944_vm4, %v4550_v47 }
 0x42c   : > { %v1992_v26 = vpop.permute.xlu2 %1991 }
 0x42d   : > { %v1997_v57 = vsel %vm1948_vm3, %v1992_v26, 0 }
 0x42e   : > { %2006 = vmatpush.bf16.msrb.mxu2 %v1997_v57 }
 0x431   : > { %2634 = vmatmul.msk.bf16.vlgmr.msrb.gmra.mxu2 %vm1944_vm4, %v4555_v32 }
 0x432   : > { %2111 = vmatpush.bf16.msra.mxu2 %v2676_v18 }
 0x434   : > { %v2036_v52 = vpop.permute.xlu0 %2035  ;;  %v2013_v49 = vpop.permute.xlu2 %2012 }
 0x435   : > { %v2018_v1 = vsel %vm1948_vm3, %v2013_v49, 0  ;;  %v2041_v7 = vsel %vm1948_vm3, %v2036_v52, 0  ;;  %v2678_v49 = vld [vmem:[#allocation7 + $0x18] sm:$0xff] }
 0x436   : > { %2027 = vmatpush.bf16.msrb.mxu3 %v2018_v1  ;;  %2050 = vmatpush.bf16.msrb.mxu0 %v2041_v7 }
 0x437   : > { %2112 = vmatpush.bf16.msra.mxu2 %v2675_v24 }
 0x439   : > { %2635 = vmatmul.msk.bf16.vlgmr.msrb.gmra.mxu3 %vm1944_vm4, %v4561_v42  ;;  %2636 = vmatmul.msk.bf16.vlgmr.msrb.gmra.mxu0 %vm1944_vm4, %v4563_v40 }
 0x43a   : > { %2310 = vmatpush.bf16.msra.mxu3 %v2678_v49 }
 0x43c   : > { %v2057_v5 = vpop.permute.xlu1 %2056 }
 0x43d   : > { %v2062_v6 = vsel %vm1948_vm3, %v2057_v5, 0  ;;  %v2677_v5 = vld [vmem:[#allocation7 + $0x10] sm:$0xff] }
 0x43e   : > { %2071 = vmatpush.bf16.msrb.mxu1 %v2062_v6  ;;  %2311 = vmatpush.bf16.msra.mxu3 %v2677_v5 }
 0x441   : > { %2637 = vmatmul.msk.bf16.vlgmr.msrb.gmra.mxu1 %vm1944_vm4, %v4570_v2 }
 0x4a4   : > { %v1961_v61 = vpop.f32.mrf.mxu2 }
 0x4a5   : > { %v1989_v34 = vadd.f32 %v1961_v61, %v4527_v0  ;;  %v2119_v0 = vperm.slane %v2638_v50, 1 }
 0x4a7   : > { %v2120_v38 = vmul.f32 %v2119_v0, %v4481_v27  ;;  %v2121_v41 = vmul.f32 %v2119_v0, %v4490_v16 }
 0x4ac   : > { %v1963_v4 = vpop.f32.mrf.mxu2  ;;  %v1985_v62 = vpop.f32.mrf.mxu3 }
 0x4ad   : > { %v1990_v10 = vadd.f32 %v1985_v62, %v4533_v12 }
 0x4b4   : > { %v1987_v53 = vpop.f32.mrf.mxu3  ;;  %v2008_v37 = vpop.f32.mrf.mxu2 }
 0x4b5   : > { %v2033_v48 = vadd.f32 %v2008_v37, %v1989_v34 }
 0x4b6   : > { %v2052_v45 = vpop.f32.mrf.mxu0 }
 0x4b7   : > { %v2077_v55 = vadd.f32 %v2052_v45, %v2033_v48 }
 0x4bc   : > { %v2010_v25 = vpop.f32.mrf.mxu2  ;;  %v2029_v54 = vpop.f32.mrf.mxu3 }
 0x4bd   : > { %v2034_v44 = vadd.f32 %v2029_v54, %v1990_v10  ;;  %v2919_v54 = vld [vmem:[%s4701_s8 + $0x1] ss:$0 sm:$0xff] }
 0x4be   : > { %v2054_v8 = vpop.f32.mrf.mxu0  ;;  %v2073_v33 = vpop.f32.mrf.mxu1 }
 0x4bf   : > { %v2078_v23 = vadd.f32 %v2073_v33, %v2034_v44 }
 0x4c1   : > { %v2079_v39 = vpack.c.bf16 %v2078_v23, %v2077_v55  ;;  %v2920_v55 = vld [vmem:[%s4702_s9 + $0x1] ss:$0 sm:$0xff] }
 0x4c3   : > { %2647 = vmatmul.msk.bf16.vlgmr.msra.gmra.mxu2 %vm579_vm1, %v2079_v39 }
 0x4c4   : > { %v2031_v3 = vpop.f32.mrf.mxu3 }
 0x4c6   : > { %v2075_v46 = vpop.f32.mrf.mxu1 }
 0x546   : > { %v2114_v60 = vpop.f32.mrf.mxu2 }
 0x547   : > { %v2115_v12 = vadd.f32 %v2114_v60, %v2088_v31 }
 0x549   : > { %v2122_v22 = vadd.f32 %v2120_v38, %v2115_v12 }
 0x54b   : > { %v2129_v21 = vadd.f32 %v2918_v9, %v2122_v22 }
 0x54d   : > { %v2131_v14 = vsel %vm579_vm1, %v2129_v21, 0.0  ;;  %v2139_v20 = vmul.f32 %v2129_v21, %v2129_v21 }
 0x54e   : > { %v2116_v19 = vpop.f32.mrf.mxu2  ;;  %2132 = vadd.xlane.f32.xlu2 %v2131_v14 }
 0x54f   : > { %v2117_v28 = vadd.f32 %v2116_v19, %v2089_v30  ;;  %v2141_v15 = vsel %vm579_vm1, %v2139_v20, 0.0 }
 0x550   : > { %2142 = vadd.xlane.f32.xlu1 %v2141_v15 }
 0x551   : > { %v2123_v27 = vadd.f32 %v2121_v41, %v2117_v28 }
 0x553   : > { %v2130_v63 = vadd.f32 %v2918_v9, %v2123_v27 }
 0x555   : > { %v2134_v13 = vsel %vm579_vm1, %v2130_v63, 0.0  ;;  %v2140_v58 = vmul.f32 %v2130_v63, %v2130_v63 }
 0x556   : > { %2135 = vadd.xlane.f32.xlu0 %v2134_v13 }
 0x557   : > { %v2144_v35 = vsel %vm579_vm1, %v2140_v58, 0.0 }
 0x558   : > { %2145 = vadd.xlane.f32.xlu2 %v2144_v35 }
 0x5c1   : > { %v2133_v56 = vpop.xlane.xlu2 %2132 }
 0x5c2   : > { %v2137_v59 = vmul.f32 %v2133_v56, %v3535_v29 }
 0x5c3   : > { %v2143_v26 = vpop.xlane.xlu1 %2142 }
 0x5c4   : > { %v2149_v57 = vmul.f32 %v2137_v59, %v2137_v59  ;;  %v2147_v16 = vmul.f32 %v2143_v26, %v3535_v29  ;;  %v2155_v25 = vsub.f32 %v2129_v21, %v2137_v59 }
 0x5c6   : > { %v2151_v43 = vsub.f32 %v2147_v16, %v2149_v57 }
 0x5c8   : > { %v2153_v36 = vmax.f32 %v2151_v43, 0.0 }
 0x5c9   : > { %v2136_v52 = vpop.xlane.xlu0 %2135 }
 0x5ca   : > { %v2157_v1 = vadd.f32 1e-05, %v2153_v36  ;;  %v2138_v7 = vmul.f32 %v2136_v52, %v3535_v29 }
 0x5cb   : > { %v2146_v51 = vpop.xlane.xlu2 %2145 }
 0x5cc   : > { %2932 = vrsqrt.f32 %v2157_v1  ;;  %v2150_v6 = vmul.f32 %v2138_v7, %v2138_v7  ;;  %v2148_v18 = vmul.f32 %v2146_v51, %v3535_v29  ;;  %vm2165_vm11 = vweird.f32 %v2157_v1 }
 0x5cd   : > { %v2156_v0 = vsub.f32 %v2130_v63, %v2138_v7 }
 0x5ce   : > { %v2152_v24 = vsub.f32 %v2148_v18, %v2150_v6 }
 0x5d0   : > { %v2154_v61 = vmax.f32 %v2152_v24, 0.0 }
 0x5d2   : > { %v2933_v4 = vpop.eup %2932  ;;  %v2158_v53 = vadd.f32 1e-05, %v2154_v61 }
 0x5d3   : > { %v2160_v62 = vmul.f32 %v2933_v4, %v2157_v1  ;;  %vm2166_vm10 = vweird.f32 %v2933_v4 }
 0x5d4   : > { %2934 = vrsqrt.f32 %v2158_v53  ;;  %vm2167_vm12 = vmor %vm2165_vm11, %vm2166_vm10  ;;  %vm2175_vm13 = vweird.f32 %v2158_v53 }
 0x5d5   : > { %v2161_v37 = vmul.f32 %v2933_v4, %v2160_v62 }
 0x5d7   : > { %v2162_v45 = vmul.f32 0.5, %v2161_v37 }
 0x5d9   : > { %v2163_v34 = vsub.f32 1.5, %v2162_v45 }
 0x5da   : > { %v2935_v10 = vpop.eup %2934 }
 0x5db   : > { %v2164_v48 = vmul.f32 %v2933_v4, %v2163_v34  ;;  %v2170_v29 = vmul.f32 %v2935_v10, %v2158_v53  ;;  %vm2176_vm6 = vweird.f32 %v2935_v10 }
 0x5dc   : > { %vm2177_vm14 = vmor %vm2175_vm13, %vm2176_vm6 }
 0x5dd   : > { %v2168_v44 = vsel %vm2167_vm12, %v2933_v4, %v2164_v48  ;;  %v2171_v33 = vmul.f32 %v2935_v10, %v2170_v29 }
 0x5de   : > { %v2179_v8 = vmul.f32 %v2168_v44, %v2155_v25 }
 0x5df   : > { %v2172_v39 = vmul.f32 0.5, %v2171_v33 }
 0x5e0   : > { %v2186_v23 = vmul.f32 %v2919_v54, %v2179_v8 }
 0x5e1   : > { %v2173_v3 = vsub.f32 1.5, %v2172_v39 }
 0x5e2   : > { %v4601_v46 = vadd.f32 %v2920_v55, %v2186_v23 }
 0x5e3   : > { %v2174_v50 = vmul.f32 %v2935_v10, %v2173_v3 }
 0x5e4   : > { %v4604_v11 = vmul.f32 0.70710677, %v4601_v46 }
 0x5e5   : > { %v2178_v31 = vsel %vm2177_vm14, %v2935_v10, %v2174_v50 }
 0x5e6   : > { %v2199_v60 = vmul.f32 %v4604_v11, %v4604_v11  ;;  %v2180_v38 = vmul.f32 %v2178_v31, %v2156_v0 }
 0x5e8   : > { %v2200_v12 = vmin.f32 %v2199_v60, 16.0  ;;  %v2187_v9 = vmul.f32 %v2919_v54, %v2180_v38 }
 0x5ea   : > { %v2201_v22 = vmul.f32 2.1237322e-06, %v2200_v12  ;;  %v2212_v21 = vmul.f32 3.8918573e-05, %v2200_v12  ;;  %v4608_v30 = vadd.f32 %v2920_v55, %v2187_v9 }
 0x5ec   : > { %v2202_v14 = vadd.f32 0.00028619796, %v2201_v22  ;;  %v2213_v20 = vadd.f32 0.001143296, %v2212_v21  ;;  %v4611_v19 = vmul.f32 0.70710677, %v4608_v30 }
 0x5ee   : > { %v2214_v41 = vmul.f32 %v2213_v20, %v2200_v12  ;;  %v2239_v28 = vmul.f32 %v4611_v19, %v4611_v19  ;;  %v2203_v15 = vmul.f32 %v2202_v14, %v2200_v12 }
 0x5f0   : > { %v2215_v27 = vadd.f32 0.014752088, %v2214_v41  ;;  %v2240_v63 = vmin.f32 %v2239_v28, 16.0  ;;  %v2204_v56 = vadd.f32 0.0036580483, %v2203_v15 }
 0x5f2   : > { %v2216_v13 = vmul.f32 %v2215_v27, %v2200_v12  ;;  %v2241_v58 = vmul.f32 2.1237322e-06, %v2240_v63  ;;  %v2252_v35 = vmul.f32 3.8918573e-05, %v2240_v63  ;;  %v2205_v52 = vmul.f32 %v2204_v56, %v2200_v12 }
 0x5f4   : > { %v2217_v59 = vadd.f32 0.112945676, %v2216_v13  ;;  %v2242_v26 = vadd.f32 0.00028619796, %v2241_v58  ;;  %v2253_v57 = vadd.f32 0.001143296, %v2252_v35 }
 0x5f5   : > { %v2206_v6 = vadd.f32 0.05243302, %v2205_v52 }
 0x5f6   : > { %v2218_v16 = vmul.f32 %v2217_v59, %v2200_v12  ;;  %v2243_v43 = vmul.f32 %v2242_v26, %v2240_v63  ;;  %v2254_v36 = vmul.f32 %v2253_v57, %v2240_v63  ;;  %v2195_v26 = vmul.f32 0.5, %v4601_v46 }
 0x5f7   : > { %v2207_v62 = vmul.f32 %v2206_v6, %v2200_v12  ;;  %v2196_v57 = vmul.f32 0.5, %v4608_v30 }
 0x5f8   : > { %v2219_v49 = vadd.f32 0.4994258, %v2218_v16  ;;  %v2244_v1 = vadd.f32 0.0036580483, %v2243_v43  ;;  %v2255_v7 = vadd.f32 0.014752088, %v2254_v36 }
 0x5f9   : > { %v2208_v10 = vadd.f32 0.18741608, %v2207_v62 }
 0x5fa   : > { %v2220_v51 = vmul.f32 %v2219_v49, %v2200_v12  ;;  %v2256_v5 = vmul.f32 %v2255_v7, %v2240_v63  ;;  %v2245_v24 = vmul.f32 %v2244_v1, %v2240_v63 }
 0x5fb   : > { %v2209_v44 = vmul.f32 %v2208_v10, %v2200_v12 }
 0x5fc   : > { %v2221_v18 = vadd.f32 1.0, %v2220_v51  ;;  %v2257_v61 = vadd.f32 0.112945676, %v2256_v5  ;;  %v2246_v53 = vadd.f32 0.05243302, %v2245_v24 }
 0x5fd   : > { %v2210_v3 = vadd.f32 1.1283791, %v2209_v44 }
 0x5fe   : > { %2936 = vrcp.f32 %v2221_v18  ;;  %v2258_v4 = vmul.f32 %v2257_v61, %v2240_v63  ;;  %v2247_v25 = vmul.f32 %v2246_v53, %v2240_v63  ;;  %v2233_v33 = vand.u32 2147483648, %v2221_v18 }
 0x5ff   : > { %v2231_v23 = vand.u32 2147483647, %v2221_v18  ;;  %vm2227_vm2 = vweird.f32 %v2221_v18  ;;  %v2211_v22 = vmul.f32 %v2210_v3, %v4604_v11 }
 0x600   : > { %v2259_v37 = vadd.f32 0.4994258, %v2258_v4  ;;  %v2248_v55 = vadd.f32 0.18741608, %v2247_v25  ;;  %v2234_v31 = vor.u32 1.1754944e-38, %v2233_v33 }
 0x601   : > { %vm2232_vm0 = vcmp.eq.f32.partialorder %v2231_v23, 8.507059e+37 }
 0x602   : > { %v2260_v45 = vmul.f32 %v2259_v37, %v2240_v63  ;;  %v2249_v60 = vmul.f32 %v2248_v55, %v2240_v63 }
 0x604   : > { %v2937_v34 = vpop.eup %2936  ;;  %v2261_v54 = vadd.f32 1.0, %v2260_v45  ;;  %v2250_v12 = vadd.f32 1.1283791, %v2249_v60 }
 0x605   : > { %v2223_v48 = vmul.f32 %v2937_v34, %v2221_v18  ;;  %vm2228_vm15 = vweird.f32 %v2937_v34 }
 0x606   : > { %2938 = vrcp.f32 %v2261_v54  ;;  %vm2229_vm9 = vmor %vm2227_vm2, %vm2228_vm15  ;;  %v2273_v14 = vand.u32 2147483648, %v2261_v54  ;;  %v2271_v28 = vand.u32 2147483647, %v2261_v54  ;;  %vm2267_vm7 = vweird.f32 %v2261_v54 }
 0x607   : > { %v2224_v29 = vsub.f32 1.0, %v2223_v48  ;;  %v2251_v58 = vmul.f32 %v2250_v12, %v4611_v19 }
 0x608   : > { %v2274_v27 = vor.u32 1.1754944e-38, %v2273_v14  ;;  %vm2272_vm10 = vcmp.eq.f32.partialorder %v2271_v28, 8.507059e+37  ;;  %v2923_v28 = vld [vmem:[%s4705_s12] ss:$0 sm:$0xff] }
 0x609   : > { %v2225_v8 = vmul.f32 %v2937_v34, %v2224_v29 }
 0x60b   : > { %v2226_v39 = vadd.f32 %v2937_v34, %v2225_v8 }
 0x60c   : > { %v2939_v50 = vpop.eup %2938 }
 0x60d   : > { %v2230_v0 = vsel %vm2229_vm9, %v2937_v34, %v2226_v39  ;;  %v2263_v38 = vmul.f32 %v2939_v50, %v2261_v54  ;;  %vm2268_vm5 = vweird.f32 %v2939_v50 }
 0x60e   : > { %v2235_v9 = vsel %vm2232_vm0, %v2234_v31, %v2230_v0  ;;  %vm2269_vm8 = vmor %vm2267_vm7, %vm2268_vm5 }
 0x60f   : > { %v2264_v21 = vsub.f32 1.0, %v2263_v38  ;;  %v2236_v20 = vmul.f32 %v2235_v9, %v2211_v22 }
 0x611   : > { %v2265_v41 = vmul.f32 %v2939_v50, %v2264_v21  ;;  %v2651_v13 = vclamps-f32 %v2236_v20, 1.0 }
 0x613   : > { %v2266_v15 = vadd.f32 %v2939_v50, %v2265_v41  ;;  %v2279_v11 = vadd.f32 1.0, %v2651_v13 }
 0x615   : > { %v2270_v63 = vsel %vm2269_vm8, %v2939_v50, %v2266_v15  ;;  %v2281_v43 = vmul.f32 %v2279_v11, %v2195_v26 }
 0x616   : > { %v2275_v35 = vsel %vm2272_vm10, %v2274_v27, %v2270_v63 }
 0x617   : > { %v2276_v56 = vmul.f32 %v2275_v35, %v2251_v58 }
 0x619   : > { %v2652_v59 = vclamps-f32 %v2276_v56, 1.0 }
 0x61b   : > { %v2280_v16 = vadd.f32 1.0, %v2652_v59 }
 0x61d   : > { %v2282_v36 = vmul.f32 %v2280_v16, %v2196_v57 }
 0x61f   : > { %v2283_v52 = vpack.c.bf16 %v2282_v36, %v2281_v43 }
 0x621   : > { %2661 = vmatmul.msk.bf16.vlgmr.msra.gmra.mxu3 %vm579_vm1, %v2283_v52 }
 0x6a4   : > { %v2313_v49 = vpop.f32.mrf.mxu3 }
 0x6a5   : > { %v2318_v1 = vpack.c.bf16 %v2313_v49, %v2313_v49 }
 0x6a7   : > { %v2321_v7 = vunpack.c.l.b16 %v2318_v1 }
 0x6a9   : > { %v2322_v19 = vpack.c.b16 %v2321_v7, %v2321_v7 }
 0x6ab   : > { %2364 = vrot.lane.b32.xlu1 %v2322_v19, %s3068_s24  ;;  %2323 = vrot.lane.b32.xlu2 %v2322_v19, %s3067_s30 }
 0x6ac   : > { %v2315_v51 = vpop.f32.mrf.mxu3 }
 0x6ad   : > { %v2319_v5 = vpack.c.bf16 %v2315_v51, %v2315_v51 }
 0x6af   : > { %v2342_v6 = vunpack.c.l.b16 %v2319_v5 }
 0x6b1   : > { %v2343_v46 = vpack.c.b16 %v2342_v6, %v2342_v6 }
 0x6b3   : > { %2382 = vrot.lane.b32.xlu2 %v2343_v46, %s3068_s24  ;;  %2344 = vrot.lane.b32.xlu0 %v2343_v46, %s3067_s30  ;;  %s3070_s24 = smov 127  }
 0x6bb   : > { %2420 = vrot.lane.b32.xlu2 %v2343_v46, %s3066_s21  ;;  %2402 = vrot.lane.b32.xlu0 %v2322_v19, %s3066_s21 }
 0x705   : > { %v2324_v30 = vpop.permute.xlu2 %2323 }
 0x706   : > { %v2326_v18 = vsel %vm1948_vm3, %v2324_v30, 0 }
 0x707   : > { %2335 = vmatpush.bf16.msra.mxu0 %v2326_v18 }
 0x70a   : > { %2662 = vmatmul.msk.bf16.vlgmr.msra.gmra.mxu0 %vm1944_vm4, %v4545_v17 }
 0x70d   : > { %v2383_v24 = vpop.permute.xlu2 %2382 }
 0x70e   : > { %v2385_v61 = vsel %vm1948_vm3, %v2383_v24, 0 }
 0x70f   : > { %2394 = vmatpush.bf16.msrb.mxu3 %v2385_v61 }
 0x712   : > { %2665 = vmatmul.msk.bf16.vlgmr.msrb.gmra.mxu3 %vm1944_vm4, %v4561_v42 }
 0x715   : > { %v2421_v53 = vpop.permute.xlu2 %2420 }
 0x716   : > { %v2423_v17 = vsel %vm1948_vm3, %v2421_v53, 0 }
 0x71d   : > { %v2365_v4 = vpop.permute.xlu1 %2364 }
 0x71e   : > { %v2367_v62 = vsel %vm1948_vm3, %v2365_v4, 0 }
 0x71f   : > { %2376 = vmatpush.bf16.msrb.mxu2 %v2367_v62 }
 0x722   : > { %2664 = vmatmul.msk.bf16.vlgmr.msrb.gmra.mxu2 %vm1944_vm4, %v4555_v32 }
 0x725   : > { %v2345_v37 = vpop.permute.xlu0 %2344 }
 0x726   : > { %v2347_v45 = vsel %vm1948_vm3, %v2345_v37, 0 }
 0x727   : > { %2356 = vmatpush.bf16.msra.mxu1 %v2347_v45 }
 0x72a   : > { %2663 = vmatmul.msk.bf16.vlgmr.msra.gmra.mxu1 %vm1944_vm4, %v4550_v47  ;;  %v2921_v47 = vld [vmem:[%s4704_s11 + $0x1] ss:$0 sm:$0xff] }
 0x72b   : > { %2432 = vmatpush.bf16.msrb.mxu1 %v2423_v17 }
 0x72d   : > { %v2403_v34 = vpop.permute.xlu0 %2402 }
 0x72e   : > { %v2405_v42 = vsel %vm1948_vm3, %v2403_v34, 0  ;;  %vm2529_vm3 = vcmask 15368  }
 0x72f   : > { %2414 = vmatpush.bf16.msrb.mxu0 %v2405_v42 }
 0x732   : > { %2666 = vmatmul.msk.bf16.vlgmr.msrb.gmra.mxu0 %vm1944_vm4, %v4563_v40  ;;  %v2922_v40 = vld [vmem:[%s4704_s11] ss:$0 sm:$0xff] }
 0x73a   : > { %2667 = vmatmul.msk.bf16.vlgmr.msrb.gmra.mxu1 %vm1944_vm4, %v4570_v2 }
 0x787   : > { %v2337_v32 = vpop.f32.mrf.mxu0 }
 0x788   : > { %v2362_v44 = vadd.f32 %v2337_v32, %v2313_v49 }
 0x78f   : > { %v2339_v10 = vpop.f32.mrf.mxu0 }
 0x795   : > { %v2396_v48 = vpop.f32.mrf.mxu3 }
 0x79d   : > { %v2398_v25 = vpop.f32.mrf.mxu3 }
 0x7a5   : > { %v2378_v54 = vpop.f32.mrf.mxu2 }
 0x7a6   : > { %v2400_v33 = vadd.f32 %v2378_v54, %v2362_v44 }
 0x7a7   : > { %v2358_v29 = vpop.f32.mrf.mxu1 }
 0x7a8   : > { %v2363_v39 = vadd.f32 %v2358_v29, %v2315_v51 }
 0x7aa   : > { %v2401_v60 = vadd.f32 %v2396_v48, %v2363_v39 }
 0x7ad   : > { %v2380_v8 = vpop.f32.mrf.mxu2 }
 0x7af   : > { %v2360_v55 = vpop.f32.mrf.mxu1  ;;  %v2416_v23 = vpop.f32.mrf.mxu0 }
 0x7b0   : > { %v2438_v2 = vadd.f32 %v2416_v23, %v2400_v33 }
 0x7b2   : > { %v2458_v3 = vmul.f32 %v2921_v47, %v2438_v2  ;;  %v2443_v50 = vmul.f32 %v2922_v40, %v2438_v2 }
 0x7b4   : > { %v2460_v0 = vsel %vm579_vm1, %v2458_v3, 0.0  ;;  %v2445_v31 = vsel %vm579_vm1, %v2443_v50, 0.0 }
 0x7b5   : > { %2461 = vadd.xlane.f32.xlu0 %v2460_v0  ;;  %2446 = vadd.xlane.f32.xlu2 %v2445_v31 }
 0x7b7   : > { %v2434_v38 = vpop.f32.mrf.mxu1  ;;  %v2418_v9 = vpop.f32.mrf.mxu0 }
 0x7b8   : > { %v2439_v22 = vadd.f32 %v2434_v38, %v2401_v60 }
 0x7ba   : > { %v2459_v21 = vmul.f32 %v2921_v47, %v2439_v22  ;;  %v2444_v12 = vmul.f32 %v2922_v40, %v2439_v22 }
 0x7bc   : > { %v2463_v14 = vsel %vm579_vm1, %v2459_v21, 0.0  ;;  %v2448_v20 = vsel %vm579_vm1, %v2444_v12, 0.0  ;;  %vm2516_vm1 = vcmask 7168  }
 0x7bd   : > { %2464 = vadd.xlane.f32.xlu1 %v2463_v14  ;;  %2449 = vadd.xlane.f32.xlu0 %v2448_v20 }
 0x7bf   : > { %v2436_v41 = vpop.f32.mrf.mxu1 }
 0x828   : > { %v2462_v15 = vpop.xlane.xlu0 %2461  ;;  %v2447_v63 = vpop.xlane.xlu2 %2446 }
 0x829   : > { %v4657_v27 = vadd.f32 %v2923_v28, %v2462_v15  ;;  %v2454_v26 = vadd.f32 %v2923_v28, %v2447_v63 }
 0x82b   : > { %2470 = vrot.lane.b32.xlu1 %v4657_v27, %s3070_s24 }
 0x830   : > { %v2465_v13 = vpop.xlane.xlu1 %2464  ;;  %v2450_v35 = vpop.xlane.xlu0 %2449 }
 0x831   : > { %v2467_v58 = vadd.f32 %v2923_v28, %v2465_v13  ;;  %v2455_v56 = vadd.f32 %v2923_v28, %v2450_v35 }
 0x833   : > { %2472 = vrot.lane.b32.xlu2 %v2467_v58, %s3070_s24 }
 0x88d   : > { %v2473_v59 = vpop.permute.xlu2 %2472 }
 0x88e   : > { %v2477_v11 = vmax.f32 %v2455_v56, %v2473_v59 }
 0x890   : > { %2488 = vrot.lane.b32.xlu1 %v2477_v11, %s3071_s23  ;;  %v2479_v5 = vsub.f32 %v2455_v56, %v2477_v11 }
 0x892   : > { %v2482_v6 = vmul.f32 1.442695, %v2479_v5 }
 0x89d   : > { %v2471_v57 = vpop.permute.xlu1 %2470 }
 0x89e   : > { %v2476_v16 = vmax.f32 %v2454_v26, %v2471_v57 }
 0x8a0   : > { %2486 = vrot.lane.b32.xlu0 %v2476_v16, %s3071_s23  ;;  %v2478_v53 = vsub.f32 %v2454_v26, %v2476_v16 }
 0x8a2   : > { %v2480_v37 = vmul.f32 1.442695, %v2478_v53 }
 0x902   : > { %v2489_v43 = vpop.permute.xlu1 %2488 }
 0x903   : > { %v2493_v36 = vsub.f32 %v2467_v58, %v2489_v43 }
 0x905   : > { %v2496_v52 = vmul.f32 1.442695, %v2493_v36 }
 0x907   : > { %2940 = vpow2.f32 %v2496_v52 }
 0x90d   : > { %v2941_v49 = vpop.eup %2940 }
 0x90e   : > { %2502 = vrot.lane.b32.xlu2 %v2941_v49, %s3070_s24 }
 0x912   : > { %v2487_v1 = vpop.permute.xlu0 %2486 }
 0x913   : > { %v2492_v7 = vsub.f32 %v4657_v27, %v2487_v1 }
 0x915   : > { %v2494_v19 = vmul.f32 1.442695, %v2492_v7 }
 0x917   : > { %2942 = vpow2.f32 %v2494_v19 }
 0x918   : > { %2944 = vpow2.f32 %v2482_v6 }
 0x91d   : > { %v2943_v51 = vpop.eup %2942 }
 0x91e   : > { %2500 = vrot.lane.b32.xlu0 %v2943_v51, %s3070_s24  ;;  %v2945_v46 = vpop.eup %2944 }
 0x968   : > { %v2503_v30 = vpop.permute.xlu2 %2502 }
 0x969   : > { %v2507_v18 = vadd.f32 %v2945_v46, %v2503_v30 }
 0x96b   : > { %2946 = vlog2.f32 %v2507_v18 }
 0x96c   : > { %2948 = vpow2.f32 %v2480_v37 }
 0x971   : > { %v2947_v24 = vpop.eup %2946 }
 0x972   : > { %v2511_v61 = vmul.f32 0.6931472, %v2947_v24  ;;  %v2949_v45 = vpop.eup %2948 }
 0x974   : > { %v2513_v4 = vadd.f32 %v2511_v61, %v2477_v11 }
 0x976   : > { %2523 = vrot.lane.b32.xlu0 %v2513_v4, %s3071_s23  ;;  %v2515_v62 = vsub.f32 %v2455_v56, %v2513_v4 }
 0x978   : > { %2518 = vst.msk [vmem:[%s4883_s22 + $0x8] sm:$0xff] %vm2516_vm1, %v2515_v62 }
 0x990   : > { %v2501_v17 = vpop.permute.xlu0 %2500 }
 0x991   : > { %v2506_v34 = vadd.f32 %v2949_v45, %v2501_v17 }
 0x993   : > { %2950 = vlog2.f32 %v2506_v34 }
 0x999   : > { %v2951_v42 = vpop.eup %2950 }
 0x99a   : > { %v2509_v32 = vmul.f32 0.6931472, %v2951_v42 }
 0x99c   : > { %v2512_v10 = vadd.f32 %v2509_v32, %v2476_v16 }
 0x99e   : > { %v2514_v48 = vsub.f32 %v2454_v26, %v2512_v10  ;;  %2521 = vrot.lane.b32.xlu1 %v2512_v10, %s3071_s23 }
 0x9a0   : > { %2517 = vst.msk [vmem:[%s4883_s22] sm:$0xff] %vm2516_vm1, %v2514_v48 }
 0x9e8   : > { %v2524_v25 = vpop.permute.xlu0 %2523 }
 0x9e9   : > { %v2528_v54 = vsub.f32 %v2467_v58, %v2524_v25 }
 0x9eb   : > { %2531 = vst.msk [vmem:[%s4883_s22 + $0x8] sm:$0xff] %vm2529_vm3, %v2528_v54 }
 0xa10   : > { %v2522_v29 = vpop.permute.xlu1 %2521 }
 0xa11   : > { %v2527_v44 = vsub.f32 %v4657_v27, %v2522_v29 }
 0xa13   : > { %2530 = vst.msk [vmem:[%s4883_s22] sm:$0xff] %vm2529_vm3, %v2527_v44 }
 0xa14 PF: > { %s4884_s28 = sld [smem:[#allocation13_spill]]  ;;  %s4886_s25 = smov %s3042_s26 }
 0xa15   : > { %s4885_s15 = sld [smem:[#allocation14_spill]]  ;;  %s4887_s26 = smov %s3046_s27 }
 0xa1a   : > { %p24_p1 = scmp.ge.s32.totalorder %s4884_s28, 4  }
 0xa1b   : > { %s4888_s27 = smov %s4885_s15 }
 0xa1c   :  { %26 = sbr.rel (!%p24_p1) target bundleno = 7 (0x7), region = 135 }
 0xa21   :  { %2543 = vsyncpa [#allocation4], 1 }
 0xa22   :  { %2545 = vsyncpa [#allocation4 + $0x1], 1 }
 0xa23   :  { %2546 = vsyncpa [#allocation6], 1 }

</bundles_post_ra>
